<compile_context>
chip_gen: v5e
topology: v5e:2x2
jax: 0.10.0
libtpu: 0.0.40
codegen_flags: <defaults>
</compile_context>

<pallas_src>
import functools
import math

import jax
import jax.numpy as jnp
from jax.experimental import pallas as pl
from jax.experimental.pallas import tpu as pltpu

_VMEM_LIMIT = 32 * 1024 * 1024
_LANE_TILES = (512, 256, 128)                 # last-dim tiles (multiples of 128)
_ROW_TILES = (512, 256, 128, 64, 32, 16, 8)   # sublane-dim tiles (multiples of 8)


def _pick_tile(dim, candidates):
    """Largest candidate that evenly divides `dim`, else the full extent
    (a full-extent block is always legal regardless of (8,128) alignment)."""
    for c in candidates:
        if dim % c == 0:
            return c
    return dim


# ----------------------------------------------------------------------------
# Tiled linear (Conv1D rf=1):  y = act(x @ w + b)   (bf16 operands, f32 acc)
# ----------------------------------------------------------------------------
def _matmul_kernel(x_ref, w_ref, b_ref, o_ref, acc_ref, *, activation):
    @pl.when(pl.program_id(2) == 0)
    def _():
        acc_ref[...] = jnp.zeros_like(acc_ref)

    acc_ref[...] += jnp.dot(x_ref[...], w_ref[...],
                            preferred_element_type=jnp.float32)

    @pl.when(pl.program_id(2) == pl.num_programs(2) - 1)
    def _():
        y = acc_ref[...] + b_ref[...]
        if activation == "gelu":
            c = math.sqrt(2.0 / math.pi)
            y = 0.5 * y * (1.0 + jnp.tanh(c * (y + 0.044715 * y * y * y)))
        o_ref[...] = y.astype(o_ref.dtype)


def linear(x_bf16, w_bf16, b, activation="none", out_dtype=jnp.bfloat16):
    n, nx = x_bf16.shape
    nf = w_bf16.shape[1]
    tm = _pick_tile(n, _ROW_TILES)
    tk = _pick_tile(nx, _LANE_TILES)
    tn = _pick_tile(nf, _LANE_TILES)
    grid = (n // tm, nf // tn, nx // tk)
    bytes_accessed = n * nx * 2 + nx * nf * 2 + n * nf * jnp.dtype(out_dtype).itemsize
    return pl.pallas_call(
        functools.partial(_matmul_kernel, activation=activation),
        grid=grid,
        in_specs=[
            pl.BlockSpec((tm, tk), lambda i, j, k: (i, k)),
            pl.BlockSpec((tk, tn), lambda i, j, k: (k, j)),
            pl.BlockSpec((1, tn), lambda i, j, k: (0, j)),
        ],
        out_specs=pl.BlockSpec((tm, tn), lambda i, j, k: (i, j)),
        out_shape=jax.ShapeDtypeStruct((n, nf), out_dtype),
        scratch_shapes=[pltpu.VMEM((tm, tn), jnp.float32)],
        compiler_params=pltpu.CompilerParams(
            dimension_semantics=("parallel", "parallel", "arbitrary"),
            vmem_limit_bytes=_VMEM_LIMIT,
        ),
        cost_estimate=pl.CostEstimate(
            flops=2 * n * nf * nx,
            transcendentals=(n * nf if activation == "gelu" else 0),
            bytes_accessed=int(bytes_accessed),
        ),
    )(x_bf16, w_bf16, b.reshape(1, nf).astype(jnp.float32))


# ----------------------------------------------------------------------------
# Fused linear + residual-add + LayerNorm:  LN(r + x @ w + b)
# (output tile spans the full feature dim; dual f32 / bf16 outputs)
# ----------------------------------------------------------------------------
def _matmul_res_ln_kernel(x_ref, w_ref, b_ref, r_ref, g_ref, bln_ref,
                          o32_ref, o16_ref, acc_ref, *, eps):
    @pl.when(pl.program_id(1) == 0)
    def _():
        acc_ref[...] = jnp.zeros_like(acc_ref)

    acc_ref[...] += jnp.dot(x_ref[...], w_ref[...],
                            preferred_element_type=jnp.float32)

    @pl.when(pl.program_id(1) == pl.num_programs(1) - 1)
    def _():
        y = acc_ref[...] + b_ref[...] + r_ref[...]
        u = jnp.mean(y, axis=-1, keepdims=True)
        yc = y - u
        s = jnp.mean(yc * yc, axis=-1, keepdims=True)
        out = g_ref[...] * (yc * jax.lax.rsqrt(s + eps)) + bln_ref[...]
        o32_ref[...] = out
        o16_ref[...] = out.astype(jnp.bfloat16)


def linear_residual_layernorm(x_bf16, w_bf16, b, resid_f32, g, bln, eps=1e-5):
    n, nx = x_bf16.shape
    nf = w_bf16.shape[1]
    tm = _pick_tile(n, _ROW_TILES)
    tk = _pick_tile(nx, _LANE_TILES)
    grid = (n // tm, nx // tk)
    return pl.pallas_call(
        functools.partial(_matmul_res_ln_kernel, eps=eps),
        grid=grid,
        in_specs=[
            pl.BlockSpec((tm, tk), lambda i, k: (i, k)),
            pl.BlockSpec((tk, nf), lambda i, k: (k, 0)),
            pl.BlockSpec((1, nf), lambda i, k: (0, 0)),
            pl.BlockSpec((tm, nf), lambda i, k: (i, 0)),
            pl.BlockSpec((1, nf), lambda i, k: (0, 0)),
            pl.BlockSpec((1, nf), lambda i, k: (0, 0)),
        ],
        out_specs=(
            pl.BlockSpec((tm, nf), lambda i, k: (i, 0)),
            pl.BlockSpec((tm, nf), lambda i, k: (i, 0)),
        ),
        out_shape=(
            jax.ShapeDtypeStruct((n, nf), jnp.float32),
            jax.ShapeDtypeStruct((n, nf), jnp.bfloat16),
        ),
        scratch_shapes=[pltpu.VMEM((tm, nf), jnp.float32)],
        compiler_params=pltpu.CompilerParams(
            dimension_semantics=("parallel", "arbitrary"),
            vmem_limit_bytes=_VMEM_LIMIT,
        ),
        cost_estimate=pl.CostEstimate(
            flops=2 * n * nf * nx,
            transcendentals=0,
            bytes_accessed=int(n * nx * 2 + nx * nf * 2 + n * nf * (4 + 4 + 2)),
        ),
    )(x_bf16, w_bf16, b.reshape(1, nf).astype(jnp.float32),
      resid_f32, g.reshape(1, nf), bln.reshape(1, nf))


# ----------------------------------------------------------------------------
# Initial LayerNorm (dual f32 / bf16 outputs)
# ----------------------------------------------------------------------------
def _layernorm_kernel(x_ref, g_ref, b_ref, o32_ref, o16_ref, *, eps):
    x = x_ref[...]
    u = jnp.mean(x, axis=-1, keepdims=True)
    xc = x - u
    s = jnp.mean(xc * xc, axis=-1, keepdims=True)
    y = g_ref[...] * (xc * jax.lax.rsqrt(s + eps)) + b_ref[...]
    o32_ref[...] = y
    o16_ref[...] = y.astype(jnp.bfloat16)


def layernorm_dual(x2d, g, b, eps=1e-5):
    n, d = x2d.shape
    tm = _pick_tile(n, _ROW_TILES)
    return pl.pallas_call(
        functools.partial(_layernorm_kernel, eps=eps),
        grid=(n // tm,),
        in_specs=[
            pl.BlockSpec((tm, d), lambda i: (i, 0)),
            pl.BlockSpec((1, d), lambda i: (0, 0)),
            pl.BlockSpec((1, d), lambda i: (0, 0)),
        ],
        out_specs=(
            pl.BlockSpec((tm, d), lambda i: (i, 0)),
            pl.BlockSpec((tm, d), lambda i: (i, 0)),
        ),
        out_shape=(
            jax.ShapeDtypeStruct((n, d), jnp.float32),
            jax.ShapeDtypeStruct((n, d), jnp.bfloat16),
        ),
        compiler_params=pltpu.CompilerParams(
            dimension_semantics=("parallel",), vmem_limit_bytes=_VMEM_LIMIT),
    )(x2d.astype(jnp.float32), g.reshape(1, d), b.reshape(1, d))


# ----------------------------------------------------------------------------
# Cosine similarity (f32 so top-k ordering matches the f32 reference)
# ----------------------------------------------------------------------------
def _cos_sim_kernel(x_ref, o_ref):
    x = x_ref[...]                                   # (dl, d) f32
    sumsq = jnp.sum(x * x, axis=-1, keepdims=True)
    xn = x * jax.lax.rsqrt(jnp.maximum(sumsq, 1e-24))  # clamp guards zero rows
    o_ref[...] = jax.lax.dot_general(
        xn, xn, (((1,), (1,)), ((), ())), preferred_element_type=jnp.float32)


def cosine_similarity(x):
    bs, dl, d = x.shape
    return pl.pallas_call(
        _cos_sim_kernel,
        grid=(bs,),
        in_specs=[pl.BlockSpec((None, dl, d), lambda b: (b, 0, 0))],
        out_specs=pl.BlockSpec((None, dl, dl), lambda b: (b, 0, 0)),
        out_shape=jax.ShapeDtypeStruct((bs, dl, dl), jnp.float32),
        compiler_params=pltpu.CompilerParams(
            dimension_semantics=("parallel",), vmem_limit_bytes=_VMEM_LIMIT),
    )(x.astype(jnp.float32))


# ----------------------------------------------------------------------------
# rns attention: one batch per grid step, lane-dense qkv/out, per-head loop,
# mask rebuilt in-kernel from the (dl, topk) / (topk, dl) int32 indices.
# ----------------------------------------------------------------------------
def _attn_kernel(idx_ref, idxt_ref, qkv_ref, o_ref, *, n_head, topk):
    dl, dim = o_ref.shape
    dh = dim // n_head

    # Symmetric 0/1 keep mask:  keep[i,j] = (j in topk(i)) AND (i in topk(j)).
    idx = idx_ref[...]                    # (dl, topk) int32
    idxt = idxt_ref[...]                  # (topk, dl) int32
    col = jax.lax.broadcasted_iota(jnp.int32, (dl, dl), 1)
    row = jax.lax.broadcasted_iota(jnp.int32, (dl, dl), 0)
    m = col == idx[:, 0:1]
    mt = row == idxt[0:1, :]
    for t in range(1, topk):              # topk is small & static -> unrolled
        m = jnp.logical_or(m, col == idx[:, t:t + 1])
        mt = jnp.logical_or(mt, row == idxt[t:t + 1, :])
    keep = jnp.logical_and(m, mt)

    # Per-head attention; 1/sqrt(dh) scale is pre-folded into the q weights.
    for h in range(n_head):
        q = qkv_ref[:, h * dh:(h + 1) * dh]                       # (dl, dh) bf16
        k = qkv_ref[:, dim + h * dh:dim + (h + 1) * dh]           # (dl, dh) bf16
        v = qkv_ref[:, 2 * dim + h * dh:2 * dim + (h + 1) * dh]   # (dl, dh) bf16
        s = jax.lax.dot_general(q, k, (((1,), (1,)), ((), ())),
                                preferred_element_type=jnp.float32)
        s = jnp.where(keep, s, jnp.float32(-1e9))   # == w*mask + (-1e9)*(1-mask)
        s = s - jnp.max(s, axis=-1, keepdims=True)
        p = jnp.exp(s)
        denom = jnp.sum(p, axis=-1, keepdims=True)
        a = jnp.dot(p.astype(jnp.bfloat16), v, preferred_element_type=jnp.float32)
        o_ref[:, h * dh:(h + 1) * dh] = (a * (1.0 / denom)).astype(o_ref.dtype)


def rns_attention(qkv_bf16, rns_idx, rns_idx_t, n_head):
    bs, dl, three_dim = qkv_bf16.shape
    dim = three_dim // 3
    topk = rns_idx.shape[-1]
    dh = dim // n_head
    return pl.pallas_call(
        functools.partial(_attn_kernel, n_head=n_head, topk=topk),
        grid=(bs,),
        in_specs=[
            pl.BlockSpec((None, dl, topk), lambda b: (b, 0, 0)),
            pl.BlockSpec((None, topk, dl), lambda b: (b, 0, 0)),
            pl.BlockSpec((None, dl, three_dim), lambda b: (b, 0, 0)),
        ],
        out_specs=pl.BlockSpec((None, dl, dim), lambda b: (b, 0, 0)),
        out_shape=jax.ShapeDtypeStruct((bs, dl, dim), jnp.bfloat16),
        compiler_params=pltpu.CompilerParams(
            dimension_semantics=("parallel",), vmem_limit_bytes=_VMEM_LIMIT),
        cost_estimate=pl.CostEstimate(
            flops=4 * bs * n_head * dl * dl * dh,
            transcendentals=bs * n_head * dl * dl,
            bytes_accessed=int(bs * dl * three_dim * 2 + bs * dl * dim * 2
                               + 2 * bs * dl * topk * 4),
        ),
    )(rns_idx, rns_idx_t, qkv_bf16)


# ----------------------------------------------------------------------------
# BatchNorm1d (training mode, batch stats): row-tiled stats + apply kernels
# ----------------------------------------------------------------------------
def _bn_stats_kernel(x_ref, o_ref, sum_ref, sq_ref, *, n_total, eps):
    @pl.when(pl.program_id(1) == 0)
    def _():
        sum_ref[...] = jnp.zeros_like(sum_ref)
        sq_ref[...] = jnp.zeros_like(sq_ref)

    x = x_ref[...]
    sum_ref[...] += jnp.sum(x, axis=0, keepdims=True)
    sq_ref[...] += jnp.sum(x * x, axis=0, keepdims=True)

    @pl.when(pl.program_id(1) == pl.num_programs(1) - 1)
    def _():
        mean = sum_ref[...] * (1.0 / n_total)
        var = jnp.maximum(sq_ref[...] * (1.0 / n_total) - mean * mean, 0.0)
        o_ref[0:1, :] = mean
        o_ref[1:2, :] = jax.lax.rsqrt(var + eps)


def _bn_apply_kernel(x_ref, s_ref, g_ref, b_ref, o_ref):
    x = x_ref[...]
    mean = s_ref[0:1, :]
    rstd = s_ref[1:2, :]
    o_ref[...] = (g_ref[...] * ((x - mean) * rstd) + b_ref[...]).astype(o_ref.dtype)


def batchnorm1d_train(x2d, g, b, eps=1e-5):
    n, d = x2d.shape
    tm = _pick_tile(n, _ROW_TILES)
    tn = _pick_tile(d, _LANE_TILES)
    x2d = x2d.astype(jnp.float32)
    stats = pl.pallas_call(
        functools.partial(_bn_stats_kernel, n_total=float(n), eps=eps),
        grid=(d // tn, n // tm),
        in_specs=[pl.BlockSpec((tm, tn), lambda j, i: (i, j))],
        out_specs=pl.BlockSpec((2, tn), lambda j, i: (0, j)),
        out_shape=jax.ShapeDtypeStruct((2, d), jnp.float32),
        scratch_shapes=[pltpu.VMEM((1, tn), jnp.float32),
                        pltpu.VMEM((1, tn), jnp.float32)],
        compiler_params=pltpu.CompilerParams(
            dimension_semantics=("parallel", "arbitrary"),
            vmem_limit_bytes=_VMEM_LIMIT),
    )(x2d)
    # bf16 output feeds only the classifier matmul.
    return pl.pallas_call(
        _bn_apply_kernel,
        grid=(n // tm, d // tn),
        in_specs=[
            pl.BlockSpec((tm, tn), lambda i, j: (i, j)),
            pl.BlockSpec((2, tn), lambda i, j: (0, j)),
            pl.BlockSpec((1, tn), lambda i, j: (0, j)),
            pl.BlockSpec((1, tn), lambda i, j: (0, j)),
        ],
        out_specs=pl.BlockSpec((tm, tn), lambda i, j: (i, j)),
        out_shape=jax.ShapeDtypeStruct((n, d), jnp.bfloat16),
        compiler_params=pltpu.CompilerParams(
            dimension_semantics=("parallel", "parallel"),
            vmem_limit_bytes=_VMEM_LIMIT),
    )(x2d, stats, g.reshape(1, d), b.reshape(1, d))


# ----------------------------------------------------------------------------
# Model glue (plain JAX: reshapes / topk / parameter handling)
# ----------------------------------------------------------------------------
def block_forward(p, x32, x16, rns_idx, rns_idx_t, n_head):
    bs, dl, dim = x32.shape
    x32_2d = x32.reshape(bs * dl, dim)
    x16_2d = x16.reshape(bs * dl, dim)

    # qkv projection (bf16 out), attention over rns mask
    qkv = linear(x16_2d, p["attn_w"], p["attn_b"])               # (bs*dl, 3*dim) bf16
    a = rns_attention(qkv.reshape(bs, dl, 3 * dim), rns_idx, rns_idx_t, n_head)
    a2d = a.reshape(bs * dl, dim)                                 # bf16, lane-dense

    # c_proj fused with LN(x + a)
    n32, n16 = linear_residual_layernorm(a2d, p["proj_w"], p["proj_b"],
                                         x32_2d, p["ln1_g"], p["ln1_b"])
    # MLP: gelu fc (bf16 out), then c_proj fused with LN(n + m)
    h = linear(n16, p["fc_w"], p["fc_b"], activation="gelu")      # (bs*dl, 4*dim) bf16
    y32, y16 = linear_residual_layernorm(h, p["mproj_w"], p["mproj_b"],
                                         n32, p["ln2_g"], p["ln2_b"])
    return y32.reshape(bs, dl, dim), y16.reshape(bs, dl, dim)


def nformer_forward(params, x, *, n_head, topk):
    bs, dl, dim = x.shape

    # initial nn.LayerNorm (dual f32 / bf16 outputs)
    x32_2d, x16_2d = layernorm_dual(x.reshape(bs * dl, dim),
                                    params["norm_g"], params["norm_b"])
    x32 = x32_2d.reshape(bs, dl, dim)
    x16 = x16_2d.reshape(bs, dl, dim)

    # cosine-similarity top-k -> rns indices (mask is rebuilt inside attention)
    sim = cosine_similarity(x32)
    # TODO(synk): torch.topk has no clean Pallas equivalent; jax.lax.top_k used.
    _, rns_idx = jax.lax.top_k(sim, topk)            # (bs, dl, topk) int32
    rns_idx = rns_idx.astype(jnp.int32)
    rns_idx_t = jnp.swapaxes(rns_idx, 1, 2)          # (bs, topk, dl), tiny

    for bp in params["blocks"]:
        x32, x16 = block_forward(bp, x32, x16, rns_idx, rns_idx_t, n_head)

    x2d = x32.reshape(bs * dl, dim)
    feat = batchnorm1d_train(x2d, params["bn_g"], params["bn_b"])  # bf16
    cls = linear(feat, params["cls_w"], params["cls_b"], out_dtype=jnp.float32)
    num_classes = params["cls_w"].shape[1]
    return x2d.reshape(bs, dl, dim), cls.reshape(bs, dl, num_classes)


def init_params(key, dim, n_head, layers, num_classes):
    k1, k2, k3, k4, k5 = jax.random.split(key, 5)
    std = 0.02
    block = dict(
        attn_w=jax.random.normal(k1, (dim, 3 * dim), jnp.float32) * std,
        attn_b=jnp.zeros((3 * dim,), jnp.float32),
        proj_w=jax.random.normal(k2, (dim, dim), jnp.float32) * std,
        proj_b=jnp.zeros((dim,), jnp.float32),
        ln1_g=jnp.ones((dim,), jnp.float32),
        ln1_b=jnp.zeros((dim,), jnp.float32),
        fc_w=jax.random.normal(k3, (dim, 4 * dim), jnp.float32) * std,
        fc_b=jnp.zeros((4 * dim,), jnp.float32),
        mproj_w=jax.random.normal(k4, (4 * dim, dim), jnp.float32) * std,
        mproj_b=jnp.zeros((dim,), jnp.float32),
        ln2_g=jnp.ones((dim,), jnp.float32),
        ln2_b=jnp.zeros((dim,), jnp.float32),
    )
    return dict(
        norm_g=jnp.ones((dim,), jnp.float32),
        norm_b=jnp.zeros((dim,), jnp.float32),
        # copy.deepcopy(block) in the reference -> identical weights per layer
        blocks=[block] * layers,
        bn_g=jnp.ones((dim,), jnp.float32),
        bn_b=jnp.zeros((dim,), jnp.float32),
        # stored pre-transposed as (dim, num_classes); classifier has no bias
        cls_w=jax.random.normal(k5, (dim, num_classes), jnp.float32) * 0.001,
        cls_b=jnp.zeros((num_classes,), jnp.float32),
    )


def prepare_params(params, n_head):
    """One-time (eager) prep: bf16 weight casts (shared blocks cast once) and
    the 1/sqrt(dh) attention scale folded into the q-columns of attn_w/attn_b."""
    dim = params["norm_g"].shape[0]
    dh = dim // n_head
    scale = 1.0 / math.sqrt(dh)
    qscale = jnp.concatenate([jnp.full((dim,), scale, jnp.float32),
                              jnp.ones((2 * dim,), jnp.float32)])

    cache = {}

    def prep_block(b):
        if id(b) in cache:
            return cache[id(b)]
        pb = dict(
            attn_w=(b["attn_w"] * qscale[None, :]).astype(jnp.bfloat16),
            attn_b=(b["attn_b"] * qscale).astype(jnp.float32),
            proj_w=b["proj_w"].astype(jnp.bfloat16),
            proj_b=b["proj_b"].astype(jnp.float32),
            ln1_g=b["ln1_g"].astype(jnp.float32),
            ln1_b=b["ln1_b"].astype(jnp.float32),
            fc_w=b["fc_w"].astype(jnp.bfloat16),
            fc_b=b["fc_b"].astype(jnp.float32),
            mproj_w=b["mproj_w"].astype(jnp.bfloat16),
            mproj_b=b["mproj_b"].astype(jnp.float32),
            ln2_g=b["ln2_g"].astype(jnp.float32),
            ln2_b=b["ln2_b"].astype(jnp.float32),
        )
        cache[id(b)] = pb
        return pb

    return dict(
        norm_g=params["norm_g"].astype(jnp.float32),
        norm_b=params["norm_b"].astype(jnp.float32),
        blocks=[prep_block(b) for b in params["blocks"]],
        bn_g=params["bn_g"].astype(jnp.float32),
        bn_b=params["bn_b"].astype(jnp.float32),
        cls_w=params["cls_w"].astype(jnp.bfloat16),
        cls_b=params["cls_b"].astype(jnp.float32),
    )


if __name__ == "__main__":
    # Small config consistent with NFormer(dim, n_head, layers, dropout, topk,
    # num_landmark, num_classes); dropout=0 (identity), landmark path dead code.
    bs, dl, dim = 2, 8, 32
    n_head, layers, topk, num_classes = 4, 2, 4, 16

    key = jax.random.PRNGKey(0)
    kx, kp = jax.random.split(key)
    x = jax.random.normal(kx, (bs, dl, dim), jnp.float32)
    params = prepare_params(init_params(kp, dim, n_head, layers, num_classes), n_head)

    fwd = jax.jit(functools.partial(nformer_forward, n_head=n_head, topk=topk))
    feats, cls_score = fwd(params, x)
    jax.block_until_ready((feats, cls_score))

    assert feats.shape == (bs, dl, dim)
    assert cls_score.shape == (bs, dl, num_classes)
    assert bool(jnp.all(jnp.isfinite(feats))) and bool(jnp.all(jnp.isfinite(cls_score)))
    print("KERNEL_OK")
</pallas_src>

<mosaic_0001>
module attributes {stable_mosaic.version = 11 : i64} {
  func.func @_layernorm_kernel(%arg0: i32, %arg1: memref<16x32xf32, #tpu.memory_space<vmem>>, %arg2: memref<1x32xf32, #tpu.memory_space<vmem>>, %arg3: memref<1x32xf32, #tpu.memory_space<vmem>>, %arg4: memref<16x32xf32, #tpu.memory_space<vmem>>, %arg5: memref<16x32xbf16, #tpu.memory_space<vmem>>) attributes {dimension_semantics = [#tpu.dimension_semantics<parallel>], iteration_bounds = array<i64: 1>, scalar_prefetch = 0 : i64, scratch_operands = 0 : i64, tpu.core_type = #tpu.core_type<tc>, window_params = [{transform_indices = @transform_0, window_bounds = array<i64: 16, 32>}, {pipeline_mode = #tpu.pipeline_mode<synchronous>, transform_indices = @transform_1, window_bounds = array<i64: 1, 32>}, {pipeline_mode = #tpu.pipeline_mode<synchronous>, transform_indices = @transform_2, window_bounds = array<i64: 1, 32>}, {transform_indices = @transform_3, window_bounds = array<i64: 16, 32>}, {transform_indices = @transform_4, window_bounds = array<i64: 16, 32>}]} {
    %c0 = arith.constant 0 : index
    %c0_0 = arith.constant 0 : index
    %0 = vector.load %arg1[%c0, %c0_0] : memref<16x32xf32, #tpu.memory_space<vmem>>, vector<16x32xf32>
    %cst = arith.constant dense<0.000000e+00> : vector<16xf32>
    %1 = vector.multi_reduction <add>, %0, %cst [1] : vector<16x32xf32> to vector<16xf32>
    %2 = vector.shape_cast %1 : vector<16xf32> to vector<16x1xf32>
    %cst_1 = arith.constant 3.200000e+01 : f32
    %3 = vector.broadcast %cst_1 : f32 to vector<16x1xf32>
    %4 = arith.divf %2, %3 : vector<16x1xf32>
    %5 = vector.broadcast %4 : vector<16x1xf32> to vector<16x32xf32>
    %6 = arith.subf %0, %5 : vector<16x32xf32>
    %7 = arith.mulf %6, %6 : vector<16x32xf32>
    %cst_2 = arith.constant dense<0.000000e+00> : vector<16xf32>
    %8 = vector.multi_reduction <add>, %7, %cst_2 [1] : vector<16x32xf32> to vector<16xf32>
    %9 = vector.shape_cast %8 : vector<16xf32> to vector<16x1xf32>
    %cst_3 = arith.constant 3.200000e+01 : f32
    %10 = vector.broadcast %cst_3 : f32 to vector<16x1xf32>
    %11 = arith.divf %9, %10 : vector<16x1xf32>
    %c0_4 = arith.constant 0 : index
    %c0_5 = arith.constant 0 : index
    %12 = vector.load %arg2[%c0_4, %c0_5] : memref<1x32xf32, #tpu.memory_space<vmem>>, vector<1x32xf32>
    %cst_6 = arith.constant 9.99999974E-6 : f32
    %13 = vector.broadcast %cst_6 : f32 to vector<16x1xf32>
    %14 = arith.addf %11, %13 : vector<16x1xf32>
    %15 = math.rsqrt %14 : vector<16x1xf32>
    %16 = vector.broadcast %15 : vector<16x1xf32> to vector<16x32xf32>
    %17 = arith.mulf %6, %16 : vector<16x32xf32>
    %18 = vector.broadcast %12 : vector<1x32xf32> to vector<16x32xf32>
    %19 = arith.mulf %18, %17 : vector<16x32xf32>
    %c0_7 = arith.constant 0 : index
    %c0_8 = arith.constant 0 : index
    %20 = vector.load %arg3[%c0_7, %c0_8] : memref<1x32xf32, #tpu.memory_space<vmem>>, vector<1x32xf32>
    %21 = vector.broadcast %20 : vector<1x32xf32> to vector<16x32xf32>
    %22 = arith.addf %19, %21 : vector<16x32xf32>
    %c0_9 = arith.constant 0 : index
    %c0_10 = arith.constant 0 : index
    %23 = vector.load %arg4[%c0_9, %c0_10] : memref<16x32xf32, #tpu.memory_space<vmem>>, vector<16x32xf32>
    tpu.vector_store %arg4[%c0_9, %c0_10], %22 {strides = array<i32>} : memref<16x32xf32, #tpu.memory_space<vmem>>, vector<16x32xf32>,
    %24 = arith.truncf %22 : vector<16x32xf32> to vector<16x32xbf16>
    %c0_11 = arith.constant 0 : index
    %c0_12 = arith.constant 0 : index
    %25 = vector.load %arg5[%c0_11, %c0_12] : memref<16x32xbf16, #tpu.memory_space<vmem>>, vector<16x32xbf16>
    tpu.vector_store %arg5[%c0_11, %c0_12], %24 {strides = array<i32>} : memref<16x32xbf16, #tpu.memory_space<vmem>>, vector<16x32xbf16>,
    return
  }
  func.func @transform_0(%arg0: i32) -> (i32, i32) {
    %c0_i32 = arith.constant 0 : i32
    %c0_i32_0 = arith.constant 0 : i32
    return %arg0, %c0_i32 : i32, i32
  }
  func.func @transform_1(%arg0: i32) -> (i32, i32) {
    %c0_i32 = arith.constant 0 : i32
    %c0_i32_0 = arith.constant 0 : i32
    %c0_i32_1 = arith.constant 0 : i32
    return %c0_i32, %c0_i32_0 : i32, i32
  }
  func.func @transform_2(%arg0: i32) -> (i32, i32) {
    %c0_i32 = arith.constant 0 : i32
    %c0_i32_0 = arith.constant 0 : i32
    %c0_i32_1 = arith.constant 0 : i32
    return %c0_i32, %c0_i32_0 : i32, i32
  }
  func.func @transform_3(%arg0: i32) -> (i32, i32) {
    %c0_i32 = arith.constant 0 : i32
    %c0_i32_0 = arith.constant 0 : i32
    return %arg0, %c0_i32 : i32, i32
  }
  func.func @transform_4(%arg0: i32) -> (i32, i32) {
    %c0_i32 = arith.constant 0 : i32
    %c0_i32_0 = arith.constant 0 : i32
    return %arg0, %c0_i32 : i32, i32
  }
}

module attributes {stable_mosaic.version = 11 : i64} {
  func.func @_cos_sim_kernel(%arg0: i32, %arg1: memref<1x8x32xf32, #tpu.memory_space<vmem>>, %arg2: memref<1x8x8xf32, #tpu.memory_space<vmem>>) attributes {dimension_semantics = [#tpu.dimension_semantics<parallel>], iteration_bounds = array<i64: 2>, scalar_prefetch = 0 : i64, scratch_operands = 0 : i64, tpu.core_type = #tpu.core_type<tc>, window_params = [{transform_indices = @transform_0, window_bounds = array<i64: 1, 8, 32>}, {transform_indices = @transform_1, window_bounds = array<i64: 1, 8, 8>}]} {
    %c0 = arith.constant 0 : index
    %c0_0 = arith.constant 0 : index
    %c0_1 = arith.constant 0 : index
    %0 = vector.load %arg1[%c0, %c0_0, %c0_1] : memref<1x8x32xf32, #tpu.memory_space<vmem>>, vector<1x8x32xf32>
    %1 = vector.shape_cast %0 : vector<1x8x32xf32> to vector<8x32xf32>
    %2 = arith.mulf %1, %1 : vector<8x32xf32>
    %cst = arith.constant dense<0.000000e+00> : vector<8xf32>
    %3 = vector.multi_reduction <add>, %2, %cst [1] : vector<8x32xf32> to vector<8xf32>
    %4 = vector.shape_cast %3 : vector<8xf32> to vector<8x1xf32>
    %cst_2 = arith.constant 1.000000e-24 : f32
    %5 = vector.broadcast %cst_2 : f32 to vector<8x1xf32>
    %6 = arith.maximumf %4, %5 : vector<8x1xf32>
    %7 = math.rsqrt %6 : vector<8x1xf32>
    %8 = vector.broadcast %7 : vector<8x1xf32> to vector<8x32xf32>
    %9 = arith.mulf %1, %8 : vector<8x32xf32>
    %cst_3 = arith.constant dense<0.000000e+00> : vector<8x8xf32>
    %10 = tpu.matmul %9, %9, %cst_3 {dimension_numbers = #tpu.dot_dimension_numbers<[1], [1], [0], [0], [0, 0, 1, 0], [], []>} : vector<8x32xf32>, vector<8x32xf32>, vector<8x8xf32> -> vector<8x8xf32>
    %c0_4 = arith.constant 0 : index
    %c0_5 = arith.constant 0 : index
    %c0_6 = arith.constant 0 : index
    %11 = vector.load %arg2[%c0_4, %c0_5, %c0_6] : memref<1x8x8xf32, #tpu.memory_space<vmem>>, vector<1x8x8xf32>
    %12 = vector.shape_cast %11 : vector<1x8x8xf32> to vector<8x8xf32>
    %13 = vector.shape_cast %10 : vector<8x8xf32> to vector<1x8x8xf32>
    tpu.vector_store %arg2[%c0_4, %c0_5, %c0_6], %13 {strides = array<i32>} : memref<1x8x8xf32, #tpu.memory_space<vmem>>, vector<1x8x8xf32>,
    return
  }
  func.func @transform_0(%arg0: i32) -> (i32, i32, i32) {
    %c0_i32 = arith.constant 0 : i32
    %c0_i32_0 = arith.constant 0 : i32
    %c0_i32_1 = arith.constant 0 : i32
    return %arg0, %c0_i32, %c0_i32_0 : i32, i32, i32
  }
  func.func @transform_1(%arg0: i32) -> (i32, i32, i32) {
    %c0_i32 = arith.constant 0 : i32
    %c0_i32_0 = arith.constant 0 : i32
    %c0_i32_1 = arith.constant 0 : i32
    return %arg0, %c0_i32, %c0_i32_0 : i32, i32, i32
  }
}

module attributes {stable_mosaic.version = 11 : i64} {
  func.func @_matmul_kernel(%arg0: i32, %arg1: i32, %arg2: i32, %arg3: memref<16x32xbf16, #tpu.memory_space<vmem>>, %arg4: memref<32x96xbf16, #tpu.memory_space<vmem>>, %arg5: memref<1x96xf32, #tpu.memory_space<vmem>>, %arg6: memref<16x96xbf16, #tpu.memory_space<vmem>>, %arg7: memref<16x96xf32, #tpu.memory_space<vmem>>) attributes {dimension_semantics = [#tpu.dimension_semantics<parallel>, #tpu.dimension_semantics<parallel>, #tpu.dimension_semantics<arbitrary>], iteration_bounds = array<i64: 1, 1, 1>, scalar_prefetch = 0 : i64, scratch_operands = 1 : i64, tpu.core_type = #tpu.core_type<tc>, window_params = [{transform_indices = @transform_0, window_bounds = array<i64: 16, 32>}, {transform_indices = @transform_1, window_bounds = array<i64: 32, 96>}, {transform_indices = @transform_2, window_bounds = array<i64: 1, 96>}, {transform_indices = @transform_3, window_bounds = array<i64: 16, 96>}]} {
    %c0_i32 = arith.constant 0 : i32
    %0 = arith.cmpi eq, %arg2, %c0_i32 : i32
    %1 = arith.extui %0 : i1 to i32
    %c0_i32_0 = arith.constant 0 : i32
    %2 = arith.cmpi ne, %1, %c0_i32_0 : i32
    scf.if %2 {
      %cst_10 = arith.constant 0.000000e+00 : f32
      %12 = vector.broadcast %cst_10 : f32 to vector<16x96xf32>
      %c0_11 = arith.constant 0 : index
      %c0_12 = arith.constant 0 : index
      %13 = vector.load %arg7[%c0_11, %c0_12] : memref<16x96xf32, #tpu.memory_space<vmem>>, vector<16x96xf32>
      tpu.vector_store %arg7[%c0_11, %c0_12], %12 {strides = array<i32>} : memref<16x96xf32, #tpu.memory_space<vmem>>, vector<16x96xf32>,
    } else {
    }
    %c0 = arith.constant 0 : index
    %c0_1 = arith.constant 0 : index
    %3 = vector.load %arg7[%c0, %c0_1] : memref<16x96xf32, #tpu.memory_space<vmem>>, vector<16x96xf32>
    %c0_2 = arith.constant 0 : index
    %c0_3 = arith.constant 0 : index
    %4 = vector.load %arg3[%c0_2, %c0_3] : memref<16x32xbf16, #tpu.memory_space<vmem>>, vector<16x32xbf16>
    %c0_4 = arith.constant 0 : index
    %c0_5 = arith.constant 0 : index
    %5 = vector.load %arg4[%c0_4, %c0_5] : memref<32x96xbf16, #tpu.memory_space<vmem>>, vector<32x96xbf16>
    %cst = arith.constant dense<0.000000e+00> : vector<16x96xf32>
    %6 = tpu.matmul %4, %5, %cst {dimension_numbers = #tpu.dot_dimension_numbers<[1], [0], [0], [1], [0, 0, 1, 1], [], []>} : vector<16x32xbf16>, vector<32x96xbf16>, vector<16x96xf32> -> vector<16x96xf32>
    %7 = arith.addf %3, %6 : vector<16x96xf32>
    %c0_6 = arith.constant 0 : index
    %c0_7 = arith.constant 0 : index
    %8 = vector.load %arg7[%c0_6, %c0_7] : memref<16x96xf32, #tpu.memory_space<vmem>>, vector<16x96xf32>
    tpu.vector_store %arg7[%c0_6, %c0_7], %7 {strides = array<i32>} : memref<16x96xf32, #tpu.memory_space<vmem>>, vector<16x96xf32>,
    %c0_i32_8 = arith.constant 0 : i32
    %9 = arith.cmpi eq, %arg2, %c0_i32_8 : i32
    %10 = arith.extui %9 : i1 to i32
    %c0_i32_9 = arith.constant 0 : i32
    %11 = arith.cmpi ne, %10, %c0_i32_9 : i32
    scf.if %11 {
      %c0_10 = arith.constant 0 : index
      %c0_11 = arith.constant 0 : index
      %12 = vector.load %arg7[%c0_10, %c0_11] : memref<16x96xf32, #tpu.memory_space<vmem>>, vector<16x96xf32>
      %c0_12 = arith.constant 0 : index
      %c0_13 = arith.constant 0 : index
      %13 = vector.load %arg5[%c0_12, %c0_13] : memref<1x96xf32, #tpu.memory_space<vmem>>, vector<1x96xf32>
      %14 = vector.broadcast %13 : vector<1x96xf32> to vector<16x96xf32>
      %15 = arith.addf %12, %14 : vector<16x96xf32>
      %16 = arith.truncf %15 : vector<16x96xf32> to vector<16x96xbf16>
      %c0_14 = arith.constant 0 : index
      %c0_15 = arith.constant 0 : index
      %17 = vector.load %arg6[%c0_14, %c0_15] : memref<16x96xbf16, #tpu.memory_space<vmem>>, vector<16x96xbf16>
      tpu.vector_store %arg6[%c0_14, %c0_15], %16 {strides = array<i32>} : memref<16x96xbf16, #tpu.memory_space<vmem>>, vector<16x96xbf16>,
    } else {
    }
    return
  }
  func.func @transform_0(%arg0: i32, %arg1: i32, %arg2: i32) -> (i32, i32) {
    %c0_i32 = arith.constant 0 : i32
    return %arg0, %arg2 : i32, i32
  }
  func.func @transform_1(%arg0: i32, %arg1: i32, %arg2: i32) -> (i32, i32) {
    %c0_i32 = arith.constant 0 : i32
    return %arg2, %arg1 : i32, i32
  }
  func.func @transform_2(%arg0: i32, %arg1: i32, %arg2: i32) -> (i32, i32) {
    %c0_i32 = arith.constant 0 : i32
    %c0_i32_0 = arith.constant 0 : i32
    return %c0_i32, %arg1 : i32, i32
  }
  func.func @transform_3(%arg0: i32, %arg1: i32, %arg2: i32) -> (i32, i32) {
    %c0_i32 = arith.constant 0 : i32
    return %arg0, %arg1 : i32, i32
  }
}

module attributes {stable_mosaic.version = 11 : i64} {
  func.func @_attn_kernel(%arg0: i32, %arg1: memref<1x8x4xi32, #tpu.memory_space<vmem>>, %arg2: memref<1x4x8xi32, #tpu.memory_space<vmem>>, %arg3: memref<1x8x96xbf16, #tpu.memory_space<vmem>>, %arg4: memref<1x8x32xbf16, #tpu.memory_space<vmem>>) attributes {dimension_semantics = [#tpu.dimension_semantics<parallel>], iteration_bounds = array<i64: 2>, scalar_prefetch = 0 : i64, scratch_operands = 0 : i64, tpu.core_type = #tpu.core_type<tc>, window_params = [{transform_indices = @transform_0, window_bounds = array<i64: 1, 8, 4>}, {transform_indices = @transform_1, window_bounds = array<i64: 1, 4, 8>}, {transform_indices = @transform_2, window_bounds = array<i64: 1, 8, 96>}, {transform_indices = @transform_3, window_bounds = array<i64: 1, 8, 32>}]} {
    %c0 = arith.constant 0 : index
    %c0_0 = arith.constant 0 : index
    %c0_1 = arith.constant 0 : index
    %0 = vector.load %arg1[%c0, %c0_0, %c0_1] : memref<1x8x4xi32, #tpu.memory_space<vmem>>, vector<1x8x4xi32>
    %1 = vector.shape_cast %0 : vector<1x8x4xi32> to vector<8x4xi32>
    %c0_2 = arith.constant 0 : index
    %c0_3 = arith.constant 0 : index
    %c0_4 = arith.constant 0 : index
    %2 = vector.load %arg2[%c0_2, %c0_3, %c0_4] : memref<1x4x8xi32, #tpu.memory_space<vmem>>, vector<1x4x8xi32>
    %3 = vector.shape_cast %2 : vector<1x4x8xi32> to vector<4x8xi32>
    %4 = tpu.iota {dimensions = array<i32: 1>} : vector<8x8xi32>
    %5 = tpu.iota {dimensions = array<i32: 0>} : vector<8x8xi32>
    %6 = vector.extract_strided_slice %1 {offsets = [0, 0], sizes = [8, 1], strides = [1, 1]} : vector<8x4xi32> to vector<8x1xi32>
    %7 = vector.broadcast %6 : vector<8x1xi32> to vector<8x8xi32>
    %8 = arith.cmpi eq, %4, %7 : vector<8x8xi32>
    %9 = vector.extract_strided_slice %3 {offsets = [0, 0], sizes = [1, 8], strides = [1, 1]} : vector<4x8xi32> to vector<1x8xi32>
    %10 = vector.broadcast %9 : vector<1x8xi32> to vector<8x8xi32>
    %11 = arith.cmpi eq, %5, %10 : vector<8x8xi32>
    %12 = vector.extract_strided_slice %1 {offsets = [0, 1], sizes = [8, 1], strides = [1, 1]} : vector<8x4xi32> to vector<8x1xi32>
    %13 = vector.broadcast %12 : vector<8x1xi32> to vector<8x8xi32>
    %14 = arith.cmpi eq, %4, %13 : vector<8x8xi32>
    %15 = arith.ori %8, %14 : vector<8x8xi1>
    %16 = vector.extract_strided_slice %3 {offsets = [1, 0], sizes = [1, 8], strides = [1, 1]} : vector<4x8xi32> to vector<1x8xi32>
    %17 = vector.broadcast %16 : vector<1x8xi32> to vector<8x8xi32>
    %18 = arith.cmpi eq, %5, %17 : vector<8x8xi32>
    %19 = arith.ori %11, %18 : vector<8x8xi1>
    %20 = vector.extract_strided_slice %1 {offsets = [0, 2], sizes = [8, 1], strides = [1, 1]} : vector<8x4xi32> to vector<8x1xi32>
    %21 = vector.broadcast %20 : vector<8x1xi32> to vector<8x8xi32>
    %22 = arith.cmpi eq, %4, %21 : vector<8x8xi32>
    %23 = arith.ori %15, %22 : vector<8x8xi1>
    %24 = vector.extract_strided_slice %3 {offsets = [2, 0], sizes = [1, 8], strides = [1, 1]} : vector<4x8xi32> to vector<1x8xi32>
    %25 = vector.broadcast %24 : vector<1x8xi32> to vector<8x8xi32>
    %26 = arith.cmpi eq, %5, %25 : vector<8x8xi32>
    %27 = arith.ori %19, %26 : vector<8x8xi1>
    %28 = vector.extract_strided_slice %1 {offsets = [0, 3], sizes = [8, 1], strides = [1, 1]} : vector<8x4xi32> to vector<8x1xi32>
    %29 = vector.broadcast %28 : vector<8x1xi32> to vector<8x8xi32>
    %30 = arith.cmpi eq, %4, %29 : vector<8x8xi32>
    %31 = arith.ori %23, %30 : vector<8x8xi1>
    %32 = vector.extract_strided_slice %3 {offsets = [3, 0], sizes = [1, 8], strides = [1, 1]} : vector<4x8xi32> to vector<1x8xi32>
    %33 = vector.broadcast %32 : vector<1x8xi32> to vector<8x8xi32>
    %34 = arith.cmpi eq, %5, %33 : vector<8x8xi32>
    %35 = arith.ori %27, %34 : vector<8x8xi1>
    %36 = arith.andi %31, %35 : vector<8x8xi1>
    %c0_5 = arith.constant 0 : index
    %c0_6 = arith.constant 0 : index
    %c0_7 = arith.constant 0 : index
    %37 = vector.load %arg3[%c0_5, %c0_6, %c0_7] : memref<1x8x96xbf16, #tpu.memory_space<vmem>>, vector<1x8x8xbf16>
    %38 = vector.shape_cast %37 : vector<1x8x8xbf16> to vector<8x8xbf16>
    %c0_8 = arith.constant 0 : index
    %c0_9 = arith.constant 0 : index
    %c32 = arith.constant 32 : index
    %39 = vector.load %arg3[%c0_8, %c0_9, %c32] : memref<1x8x96xbf16, #tpu.memory_space<vmem>>, vector<1x8x8xbf16>
    %40 = vector.shape_cast %39 : vector<1x8x8xbf16> to vector<8x8xbf16>
    %c0_10 = arith.constant 0 : index
    %c0_11 = arith.constant 0 : index
    %c64 = arith.constant 64 : index
    %41 = vector.load %arg3[%c0_10, %c0_11, %c64] : memref<1x8x96xbf16, #tpu.memory_space<vmem>>, vector<1x8x8xbf16>
    %42 = vector.shape_cast %41 : vector<1x8x8xbf16> to vector<8x8xbf16>
    %cst = arith.constant dense<0.000000e+00> : vector<8x8xf32>
    %43 = tpu.matmul %38, %40, %cst {dimension_numbers = #tpu.dot_dimension_numbers<[1], [1], [0], [0], [0, 0, 1, 0], [], []>} : vector<8x8xbf16>, vector<8x8xbf16>, vector<8x8xf32> -> vector<8x8xf32>
    %cst_12 = arith.constant -1.000000e+09 : f32
    %44 = vector.broadcast %cst_12 : f32 to vector<8x8xf32>
    %45 = arith.select %36, %43, %44 : vector<8x8xi1>, vector<8x8xf32>
    %cst_13 = arith.constant dense<0xFF800000> : vector<8xf32>
    %46 = vector.multi_reduction <maximumf>, %45, %cst_13 [1] : vector<8x8xf32> to vector<8xf32>
    %47 = vector.shape_cast %46 : vector<8xf32> to vector<8x1xf32>
    %48 = vector.broadcast %47 : vector<8x1xf32> to vector<8x8xf32>
    %49 = arith.subf %45, %48 : vector<8x8xf32>
    %50 = math.exp %49 : vector<8x8xf32>
    %cst_14 = arith.constant dense<0.000000e+00> : vector<8xf32>
    %51 = vector.multi_reduction <add>, %50, %cst_14 [1] : vector<8x8xf32> to vector<8xf32>
    %52 = vector.shape_cast %51 : vector<8xf32> to vector<8x1xf32>
    %53 = arith.truncf %50 : vector<8x8xf32> to vector<8x8xbf16>
    %cst_15 = arith.constant dense<0.000000e+00> : vector<8x8xf32>
    %54 = tpu.matmul %53, %42, %cst_15 {dimension_numbers = #tpu.dot_dimension_numbers<[1], [0], [0], [1], [0, 0, 1, 1], [], []>} : vector<8x8xbf16>, vector<8x8xbf16>, vector<8x8xf32> -> vector<8x8xf32>
    %cst_16 = arith.constant 1.000000e+00 : f32
    %55 = vector.broadcast %cst_16 : f32 to vector<8x1xf32>
    %56 = arith.divf %55, %52 : vector<8x1xf32>
    %57 = vector.broadcast %56 : vector<8x1xf32> to vector<8x8xf32>
    %58 = arith.mulf %54, %57 : vector<8x8xf32>
    %59 = arith.truncf %58 : vector<8x8xf32> to vector<8x8xbf16>
    %c0_17 = arith.constant 0 : index
    %c0_18 = arith.constant 0 : index
    %c0_19 = arith.constant 0 : index
    %60 = vector.load %arg4[%c0_17, %c0_18, %c0_19] : memref<1x8x32xbf16, #tpu.memory_space<vmem>>, vector<1x8x8xbf16>
    %61 = vector.shape_cast %60 : vector<1x8x8xbf16> to vector<8x8xbf16>
    %62 = vector.shape_cast %59 : vector<8x8xbf16> to vector<1x8x8xbf16>
    tpu.vector_store %arg4[%c0_17, %c0_18, %c0_19], %62 {strides = array<i32>} : memref<1x8x32xbf16, #tpu.memory_space<vmem>>, vector<1x8x8xbf16>,
    %c0_20 = arith.constant 0 : index
    %c0_21 = arith.constant 0 : index
    %c8 = arith.constant 8 : index
    %63 = vector.load %arg3[%c0_20, %c0_21, %c8] : memref<1x8x96xbf16, #tpu.memory_space<vmem>>, vector<1x8x8xbf16>
    %64 = vector.shape_cast %63 : vector<1x8x8xbf16> to vector<8x8xbf16>
    %c0_22 = arith.constant 0 : index
    %c0_23 = arith.constant 0 : index
    %c40 = arith.constant 40 : index
    %65 = vector.load %arg3[%c0_22, %c0_23, %c40] : memref<1x8x96xbf16, #tpu.memory_space<vmem>>, vector<1x8x8xbf16>
    %66 = vector.shape_cast %65 : vector<1x8x8xbf16> to vector<8x8xbf16>
    %c0_24 = arith.constant 0 : index
    %c0_25 = arith.constant 0 : index
    %c72 = arith.constant 72 : index
    %67 = vector.load %arg3[%c0_24, %c0_25, %c72] : memref<1x8x96xbf16, #tpu.memory_space<vmem>>, vector<1x8x8xbf16>
    %68 = vector.shape_cast %67 : vector<1x8x8xbf16> to vector<8x8xbf16>
    %cst_26 = arith.constant dense<0.000000e+00> : vector<8x8xf32>
    %69 = tpu.matmul %64, %66, %cst_26 {dimension_numbers = #tpu.dot_dimension_numbers<[1], [1], [0], [0], [0, 0, 1, 0], [], []>} : vector<8x8xbf16>, vector<8x8xbf16>, vector<8x8xf32> -> vector<8x8xf32>
    %cst_27 = arith.constant -1.000000e+09 : f32
    %70 = vector.broadcast %cst_27 : f32 to vector<8x8xf32>
    %71 = arith.select %36, %69, %70 : vector<8x8xi1>, vector<8x8xf32>
    %cst_28 = arith.constant dense<0xFF800000> : vector<8xf32>
    %72 = vector.multi_reduction <maximumf>, %71, %cst_28 [1] : vector<8x8xf32> to vector<8xf32>
    %73 = vector.shape_cast %72 : vector<8xf32> to vector<8x1xf32>
    %74 = vector.broadcast %73 : vector<8x1xf32> to vector<8x8xf32>
    %75 = arith.subf %71, %74 : vector<8x8xf32>
    %76 = math.exp %75 : vector<8x8xf32>
    %cst_29 = arith.constant dense<0.000000e+00> : vector<8xf32>
    %77 = vector.multi_reduction <add>, %76, %cst_29 [1] : vector<8x8xf32> to vector<8xf32>
    %78 = vector.shape_cast %77 : vector<8xf32> to vector<8x1xf32>
    %79 = arith.truncf %76 : vector<8x8xf32> to vector<8x8xbf16>
    %cst_30 = arith.constant dense<0.000000e+00> : vector<8x8xf32>
    %80 = tpu.matmul %79, %68, %cst_30 {dimension_numbers = #tpu.dot_dimension_numbers<[1], [0], [0], [1], [0, 0, 1, 1], [], []>} : vector<8x8xbf16>, vector<8x8xbf16>, vector<8x8xf32> -> vector<8x8xf32>
    %cst_31 = arith.constant 1.000000e+00 : f32
    %81 = vector.broadcast %cst_31 : f32 to vector<8x1xf32>
    %82 = arith.divf %81, %78 : vector<8x1xf32>
    %83 = vector.broadcast %82 : vector<8x1xf32> to vector<8x8xf32>
    %84 = arith.mulf %80, %83 : vector<8x8xf32>
    %85 = arith.truncf %84 : vector<8x8xf32> to vector<8x8xbf16>
    %c0_32 = arith.constant 0 : index
    %c0_33 = arith.constant 0 : index
    %c8_34 = arith.constant 8 : index
    %86 = vector.load %arg4[%c0_32, %c0_33, %c8_34] : memref<1x8x32xbf16, #tpu.memory_space<vmem>>, vector<1x8x8xbf16>
    %87 = vector.shape_cast %86 : vector<1x8x8xbf16> to vector<8x8xbf16>
    %88 = vector.shape_cast %85 : vector<8x8xbf16> to vector<1x8x8xbf16>
    tpu.vector_store %arg4[%c0_32, %c0_33, %c8_34], %88 {strides = array<i32>} : memref<1x8x32xbf16, #tpu.memory_space<vmem>>, vector<1x8x8xbf16>,
    %c0_35 = arith.constant 0 : index
    %c0_36 = arith.constant 0 : index
    %c16 = arith.constant 16 : index
    %89 = vector.load %arg3[%c0_35, %c0_36, %c16] : memref<1x8x96xbf16, #tpu.memory_space<vmem>>, vector<1x8x8xbf16>
    %90 = vector.shape_cast %89 : vector<1x8x8xbf16> to vector<8x8xbf16>
    %c0_37 = arith.constant 0 : index
    %c0_38 = arith.constant 0 : index
    %c48 = arith.constant 48 : index
    %91 = vector.load %arg3[%c0_37, %c0_38, %c48] : memref<1x8x96xbf16, #tpu.memory_space<vmem>>, vector<1x8x8xbf16>
    %92 = vector.shape_cast %91 : vector<1x8x8xbf16> to vector<8x8xbf16>
    %c0_39 = arith.constant 0 : index
    %c0_40 = arith.constant 0 : index
    %c80 = arith.constant 80 : index
    %93 = vector.load %arg3[%c0_39, %c0_40, %c80] : memref<1x8x96xbf16, #tpu.memory_space<vmem>>, vector<1x8x8xbf16>
    %94 = vector.shape_cast %93 : vector<1x8x8xbf16> to vector<8x8xbf16>
    %cst_41 = arith.constant dense<0.000000e+00> : vector<8x8xf32>
    %95 = tpu.matmul %90, %92, %cst_41 {dimension_numbers = #tpu.dot_dimension_numbers<[1], [1], [0], [0], [0, 0, 1, 0], [], []>} : vector<8x8xbf16>, vector<8x8xbf16>, vector<8x8xf32> -> vector<8x8xf32>
    %cst_42 = arith.constant -1.000000e+09 : f32
    %96 = vector.broadcast %cst_42 : f32 to vector<8x8xf32>
    %97 = arith.select %36, %95, %96 : vector<8x8xi1>, vector<8x8xf32>
    %cst_43 = arith.constant dense<0xFF800000> : vector<8xf32>
    %98 = vector.multi_reduction <maximumf>, %97, %cst_43 [1] : vector<8x8xf32> to vector<8xf32>
    %99 = vector.shape_cast %98 : vector<8xf32> to vector<8x1xf32>
    %100 = vector.broadcast %99 : vector<8x1xf32> to vector<8x8xf32>
    %101 = arith.subf %97, %100 : vector<8x8xf32>
    %102 = math.exp %101 : vector<8x8xf32>
    %cst_44 = arith.constant dense<0.000000e+00> : vector<8xf32>
    %103 = vector.multi_reduction <add>, %102, %cst_44 [1] : vector<8x8xf32> to vector<8xf32>
    %104 = vector.shape_cast %103 : vector<8xf32> to vector<8x1xf32>
    %105 = arith.truncf %102 : vector<8x8xf32> to vector<8x8xbf16>
    %cst_45 = arith.constant dense<0.000000e+00> : vector<8x8xf32>
    %106 = tpu.matmul %105, %94, %cst_45 {dimension_numbers = #tpu.dot_dimension_numbers<[1], [0], [0], [1], [0, 0, 1, 1], [], []>} : vector<8x8xbf16>, vector<8x8xbf16>, vector<8x8xf32> -> vector<8x8xf32>
    %cst_46 = arith.constant 1.000000e+00 : f32
    %107 = vector.broadcast %cst_46 : f32 to vector<8x1xf32>
    %108 = arith.divf %107, %104 : vector<8x1xf32>
    %109 = vector.broadcast %108 : vector<8x1xf32> to vector<8x8xf32>
    %110 = arith.mulf %106, %109 : vector<8x8xf32>
    %111 = arith.truncf %110 : vector<8x8xf32> to vector<8x8xbf16>
    %c0_47 = arith.constant 0 : index
    %c0_48 = arith.constant 0 : index
    %c16_49 = arith.constant 16 : index
    %112 = vector.load %arg4[%c0_47, %c0_48, %c16_49] : memref<1x8x32xbf16, #tpu.memory_space<vmem>>, vector<1x8x8xbf16>
    %113 = vector.shape_cast %112 : vector<1x8x8xbf16> to vector<8x8xbf16>
    %114 = vector.shape_cast %111 : vector<8x8xbf16> to vector<1x8x8xbf16>
    tpu.vector_store %arg4[%c0_47, %c0_48, %c16_49], %114 {strides = array<i32>} : memref<1x8x32xbf16, #tpu.memory_space<vmem>>, vector<1x8x8xbf16>,
    %c0_50 = arith.constant 0 : index
    %c0_51 = arith.constant 0 : index
    %c24 = arith.constant 24 : index
    %115 = vector.load %arg3[%c0_50, %c0_51, %c24] : memref<1x8x96xbf16, #tpu.memory_space<vmem>>, vector<1x8x8xbf16>
    %116 = vector.shape_cast %115 : vector<1x8x8xbf16> to vector<8x8xbf16>
    %c0_52 = arith.constant 0 : index
    %c0_53 = arith.constant 0 : index
    %c56 = arith.constant 56 : index
    %117 = vector.load %arg3[%c0_52, %c0_53, %c56] : memref<1x8x96xbf16, #tpu.memory_space<vmem>>, vector<1x8x8xbf16>
    %118 = vector.shape_cast %117 : vector<1x8x8xbf16> to vector<8x8xbf16>
    %c0_54 = arith.constant 0 : index
    %c0_55 = arith.constant 0 : index
    %c88 = arith.constant 88 : index
    %119 = vector.load %arg3[%c0_54, %c0_55, %c88] : memref<1x8x96xbf16, #tpu.memory_space<vmem>>, vector<1x8x8xbf16>
    %120 = vector.shape_cast %119 : vector<1x8x8xbf16> to vector<8x8xbf16>
    %cst_56 = arith.constant dense<0.000000e+00> : vector<8x8xf32>
    %121 = tpu.matmul %116, %118, %cst_56 {dimension_numbers = #tpu.dot_dimension_numbers<[1], [1], [0], [0], [0, 0, 1, 0], [], []>} : vector<8x8xbf16>, vector<8x8xbf16>, vector<8x8xf32> -> vector<8x8xf32>
    %cst_57 = arith.constant -1.000000e+09 : f32
    %122 = vector.broadcast %cst_57 : f32 to vector<8x8xf32>
    %123 = arith.select %36, %121, %122 : vector<8x8xi1>, vector<8x8xf32>
    %cst_58 = arith.constant dense<0xFF800000> : vector<8xf32>
    %124 = vector.multi_reduction <maximumf>, %123, %cst_58 [1] : vector<8x8xf32> to vector<8xf32>
    %125 = vector.shape_cast %124 : vector<8xf32> to vector<8x1xf32>
    %126 = vector.broadcast %125 : vector<8x1xf32> to vector<8x8xf32>
    %127 = arith.subf %123, %126 : vector<8x8xf32>
    %128 = math.exp %127 : vector<8x8xf32>
    %cst_59 = arith.constant dense<0.000000e+00> : vector<8xf32>
    %129 = vector.multi_reduction <add>, %128, %cst_59 [1] : vector<8x8xf32> to vector<8xf32>
    %130 = vector.shape_cast %129 : vector<8xf32> to vector<8x1xf32>
    %131 = arith.truncf %128 : vector<8x8xf32> to vector<8x8xbf16>
    %cst_60 = arith.constant dense<0.000000e+00> : vector<8x8xf32>
    %132 = tpu.matmul %131, %120, %cst_60 {dimension_numbers = #tpu.dot_dimension_numbers<[1], [0], [0], [1], [0, 0, 1, 1], [], []>} : vector<8x8xbf16>, vector<8x8xbf16>, vector<8x8xf32> -> vector<8x8xf32>
    %cst_61 = arith.constant 1.000000e+00 : f32
    %133 = vector.broadcast %cst_61 : f32 to vector<8x1xf32>
    %134 = arith.divf %133, %130 : vector<8x1xf32>
    %135 = vector.broadcast %134 : vector<8x1xf32> to vector<8x8xf32>
    %136 = arith.mulf %132, %135 : vector<8x8xf32>
    %137 = arith.truncf %136 : vector<8x8xf32> to vector<8x8xbf16>
    %c0_62 = arith.constant 0 : index
    %c0_63 = arith.constant 0 : index
    %c24_64 = arith.constant 24 : index
    %138 = vector.load %arg4[%c0_62, %c0_63, %c24_64] : memref<1x8x32xbf16, #tpu.memory_space<vmem>>, vector<1x8x8xbf16>
    %139 = vector.shape_cast %138 : vector<1x8x8xbf16> to vector<8x8xbf16>
    %140 = vector.shape_cast %137 : vector<8x8xbf16> to vector<1x8x8xbf16>
    tpu.vector_store %arg4[%c0_62, %c0_63, %c24_64], %140 {strides = array<i32>} : memref<1x8x32xbf16, #tpu.memory_space<vmem>>, vector<1x8x8xbf16>,
    return
  }
  func.func @transform_0(%arg0: i32) -> (i32, i32, i32) {
    %c0_i32 = arith.constant 0 : i32
    %c0_i32_0 = arith.constant 0 : i32
    %c0_i32_1 = arith.constant 0 : i32
    return %arg0, %c0_i32, %c0_i32_0 : i32, i32, i32
  }
  func.func @transform_1(%arg0: i32) -> (i32, i32, i32) {
    %c0_i32 = arith.constant 0 : i32
    %c0_i32_0 = arith.constant 0 : i32
    %c0_i32_1 = arith.constant 0 : i32
    return %arg0, %c0_i32, %c0_i32_0 : i32, i32, i32
  }
  func.func @transform_2(%arg0: i32) -> (i32, i32, i32) {
    %c0_i32 = arith.constant 0 : i32
    %c0_i32_0 = arith.constant 0 : i32
    %c0_i32_1 = arith.constant 0 : i32
    return %arg0, %c0_i32, %c0_i32_0 : i32, i32, i32
  }
  func.func @transform_3(%arg0: i32) -> (i32, i32, i32) {
    %c0_i32 = arith.constant 0 : i32
    %c0_i32_0 = arith.constant 0 : i32
    %c0_i32_1 = arith.constant 0 : i32
    return %arg0, %c0_i32, %c0_i32_0 : i32, i32, i32
  }
}

module attributes {stable_mosaic.version = 11 : i64} {
  func.func @_matmul_res_ln_kernel(%arg0: i32, %arg1: i32, %arg2: memref<16x32xbf16, #tpu.memory_space<vmem>>, %arg3: memref<32x32xbf16, #tpu.memory_space<vmem>>, %arg4: memref<1x32xf32, #tpu.memory_space<vmem>>, %arg5: memref<16x32xf32, #tpu.memory_space<vmem>>, %arg6: memref<1x32xf32, #tpu.memory_space<vmem>>, %arg7: memref<1x32xf32, #tpu.memory_space<vmem>>, %arg8: memref<16x32xf32, #tpu.memory_space<vmem>>, %arg9: memref<16x32xbf16, #tpu.memory_space<vmem>>, %arg10: memref<16x32xf32, #tpu.memory_space<vmem>>) attributes {dimension_semantics = [#tpu.dimension_semantics<parallel>, #tpu.dimension_semantics<arbitrary>], iteration_bounds = array<i64: 1, 1>, scalar_prefetch = 0 : i64, scratch_operands = 1 : i64, tpu.core_type = #tpu.core_type<tc>, window_params = [{transform_indices = @transform_0, window_bounds = array<i64: 16, 32>}, {transform_indices = @transform_1, window_bounds = array<i64: 32, 32>}, {pipeline_mode = #tpu.pipeline_mode<synchronous>, transform_indices = @transform_2, window_bounds = array<i64: 1, 32>}, {transform_indices = @transform_3, window_bounds = array<i64: 16, 32>}, {pipeline_mode = #tpu.pipeline_mode<synchronous>, transform_indices = @transform_4, window_bounds = array<i64: 1, 32>}, {pipeline_mode = #tpu.pipeline_mode<synchronous>, transform_indices = @transform_5, window_bounds = array<i64: 1, 32>}, {transform_indices = @transform_6, window_bounds = array<i64: 16, 32>}, {transform_indices = @transform_7, window_bounds = array<i64: 16, 32>}]} {
    %c0_i32 = arith.constant 0 : i32
    %0 = arith.cmpi eq, %arg1, %c0_i32 : i32
    %1 = arith.extui %0 : i1 to i32
    %c0_i32_0 = arith.constant 0 : i32
    %2 = arith.cmpi ne, %1, %c0_i32_0 : i32
    scf.if %2 {
      %cst_10 = arith.constant 0.000000e+00 : f32
      %12 = vector.broadcast %cst_10 : f32 to vector<16x32xf32>
      %c0_11 = arith.constant 0 : index
      %c0_12 = arith.constant 0 : index
      %13 = vector.load %arg10[%c0_11, %c0_12] : memref<16x32xf32, #tpu.memory_space<vmem>>, vector<16x32xf32>
      tpu.vector_store %arg10[%c0_11, %c0_12], %12 {strides = array<i32>} : memref<16x32xf32, #tpu.memory_space<vmem>>, vector<16x32xf32>,
    } else {
    }
    %c0 = arith.constant 0 : index
    %c0_1 = arith.constant 0 : index
    %3 = vector.load %arg10[%c0, %c0_1] : memref<16x32xf32, #tpu.memory_space<vmem>>, vector<16x32xf32>
    %c0_2 = arith.constant 0 : index
    %c0_3 = arith.constant 0 : index
    %4 = vector.load %arg2[%c0_2, %c0_3] : memref<16x32xbf16, #tpu.memory_space<vmem>>, vector<16x32xbf16>
    %c0_4 = arith.constant 0 : index
    %c0_5 = arith.constant 0 : index
    %5 = vector.load %arg3[%c0_4, %c0_5] : memref<32x32xbf16, #tpu.memory_space<vmem>>, vector<32x32xbf16>
    %cst = arith.constant dense<0.000000e+00> : vector<16x32xf32>
    %6 = tpu.matmul %4, %5, %cst {dimension_numbers = #tpu.dot_dimension_numbers<[1], [0], [0], [1], [0, 0, 1, 1], [], []>} : vector<16x32xbf16>, vector<32x32xbf16>, vector<16x32xf32> -> vector<16x32xf32>
    %7 = arith.addf %3, %6 : vector<16x32xf32>
    %c0_6 = arith.constant 0 : index
    %c0_7 = arith.constant 0 : index
    %8 = vector.load %arg10[%c0_6, %c0_7] : memref<16x32xf32, #tpu.memory_space<vmem>>, vector<16x32xf32>
    tpu.vector_store %arg10[%c0_6, %c0_7], %7 {strides = array<i32>} : memref<16x32xf32, #tpu.memory_space<vmem>>, vector<16x32xf32>,
    %c0_i32_8 = arith.constant 0 : i32
    %9 = arith.cmpi eq, %arg1, %c0_i32_8 : i32
    %10 = arith.extui %9 : i1 to i32
    %c0_i32_9 = arith.constant 0 : i32
    %11 = arith.cmpi ne, %10, %c0_i32_9 : i32
    scf.if %11 {
      %c0_10 = arith.constant 0 : index
      %c0_11 = arith.constant 0 : index
      %12 = vector.load %arg10[%c0_10, %c0_11] : memref<16x32xf32, #tpu.memory_space<vmem>>, vector<16x32xf32>
      %c0_12 = arith.constant 0 : index
      %c0_13 = arith.constant 0 : index
      %13 = vector.load %arg4[%c0_12, %c0_13] : memref<1x32xf32, #tpu.memory_space<vmem>>, vector<1x32xf32>
      %14 = vector.broadcast %13 : vector<1x32xf32> to vector<16x32xf32>
      %15 = arith.addf %12, %14 : vector<16x32xf32>
      %c0_14 = arith.constant 0 : index
      %c0_15 = arith.constant 0 : index
      %16 = vector.load %arg5[%c0_14, %c0_15] : memref<16x32xf32, #tpu.memory_space<vmem>>, vector<16x32xf32>
      %17 = arith.addf %15, %16 : vector<16x32xf32>
      %cst_16 = arith.constant dense<0.000000e+00> : vector<16xf32>
      %18 = vector.multi_reduction <add>, %17, %cst_16 [1] : vector<16x32xf32> to vector<16xf32>
      %19 = vector.shape_cast %18 : vector<16xf32> to vector<16x1xf32>
      %cst_17 = arith.constant 3.200000e+01 : f32
      %20 = vector.broadcast %cst_17 : f32 to vector<16x1xf32>
      %21 = arith.divf %19, %20 : vector<16x1xf32>
      %22 = vector.broadcast %21 : vector<16x1xf32> to vector<16x32xf32>
      %23 = arith.subf %17, %22 : vector<16x32xf32>
      %24 = arith.mulf %23, %23 : vector<16x32xf32>
      %cst_18 = arith.constant dense<0.000000e+00> : vector<16xf32>
      %25 = vector.multi_reduction <add>, %24, %cst_18 [1] : vector<16x32xf32> to vector<16xf32>
      %26 = vector.shape_cast %25 : vector<16xf32> to vector<16x1xf32>
      %cst_19 = arith.constant 3.200000e+01 : f32
      %27 = vector.broadcast %cst_19 : f32 to vector<16x1xf32>
      %28 = arith.divf %26, %27 : vector<16x1xf32>
      %c0_20 = arith.constant 0 : index
      %c0_21 = arith.constant 0 : index
      %29 = vector.load %arg6[%c0_20, %c0_21] : memref<1x32xf32, #tpu.memory_space<vmem>>, vector<1x32xf32>
      %cst_22 = arith.constant 9.99999974E-6 : f32
      %30 = vector.broadcast %cst_22 : f32 to vector<16x1xf32>
      %31 = arith.addf %28, %30 : vector<16x1xf32>
      %32 = math.rsqrt %31 : vector<16x1xf32>
      %33 = vector.broadcast %32 : vector<16x1xf32> to vector<16x32xf32>
      %34 = arith.mulf %23, %33 : vector<16x32xf32>
      %35 = vector.broadcast %29 : vector<1x32xf32> to vector<16x32xf32>
      %36 = arith.mulf %35, %34 : vector<16x32xf32>
      %c0_23 = arith.constant 0 : index
      %c0_24 = arith.constant 0 : index
      %37 = vector.load %arg7[%c0_23, %c0_24] : memref<1x32xf32, #tpu.memory_space<vmem>>, vector<1x32xf32>
      %38 = vector.broadcast %37 : vector<1x32xf32> to vector<16x32xf32>
      %39 = arith.addf %36, %38 : vector<16x32xf32>
      %c0_25 = arith.constant 0 : index
      %c0_26 = arith.constant 0 : index
      %40 = vector.load %arg8[%c0_25, %c0_26] : memref<16x32xf32, #tpu.memory_space<vmem>>, vector<16x32xf32>
      tpu.vector_store %arg8[%c0_25, %c0_26], %39 {strides = array<i32>} : memref<16x32xf32, #tpu.memory_space<vmem>>, vector<16x32xf32>,
      %41 = arith.truncf %39 : vector<16x32xf32> to vector<16x32xbf16>
      %c0_27 = arith.constant 0 : index
      %c0_28 = arith.constant 0 : index
      %42 = vector.load %arg9[%c0_27, %c0_28] : memref<16x32xbf16, #tpu.memory_space<vmem>>, vector<16x32xbf16>
      tpu.vector_store %arg9[%c0_27, %c0_28], %41 {strides = array<i32>} : memref<16x32xbf16, #tpu.memory_space<vmem>>, vector<16x32xbf16>,
    } else {
    }
    return
  }
  func.func @transform_0(%arg0: i32, %arg1: i32) -> (i32, i32) {
    %c0_i32 = arith.constant 0 : i32
    return %arg0, %arg1 : i32, i32
  }
  func.func @transform_1(%arg0: i32, %arg1: i32) -> (i32, i32) {
    %c0_i32 = arith.constant 0 : i32
    %c0_i32_0 = arith.constant 0 : i32
    return %arg1, %c0_i32 : i32, i32
  }
  func.func @transform_2(%arg0: i32, %arg1: i32) -> (i32, i32) {
    %c0_i32 = arith.constant 0 : i32
    %c0_i32_0 = arith.constant 0 : i32
    %c0_i32_1 = arith.constant 0 : i32
    return %c0_i32, %c0_i32_0 : i32, i32
  }
  func.func @transform_3(%arg0: i32, %arg1: i32) -> (i32, i32) {
    %c0_i32 = arith.constant 0 : i32
    %c0_i32_0 = arith.constant 0 : i32
    return %arg0, %c0_i32 : i32, i32
  }
  func.func @transform_4(%arg0: i32, %arg1: i32) -> (i32, i32) {
    %c0_i32 = arith.constant 0 : i32
    %c0_i32_0 = arith.constant 0 : i32
    %c0_i32_1 = arith.constant 0 : i32
    return %c0_i32, %c0_i32_0 : i32, i32
  }
  func.func @transform_5(%arg0: i32, %arg1: i32) -> (i32, i32) {
    %c0_i32 = arith.constant 0 : i32
    %c0_i32_0 = arith.constant 0 : i32
    %c0_i32_1 = arith.constant 0 : i32
    return %c0_i32, %c0_i32_0 : i32, i32
  }
  func.func @transform_6(%arg0: i32, %arg1: i32) -> (i32, i32) {
    %c0_i32 = arith.constant 0 : i32
    %c0_i32_0 = arith.constant 0 : i32
    return %arg0, %c0_i32 : i32, i32
  }
  func.func @transform_7(%arg0: i32, %arg1: i32) -> (i32, i32) {
    %c0_i32 = arith.constant 0 : i32
    %c0_i32_0 = arith.constant 0 : i32
    return %arg0, %c0_i32 : i32, i32
  }
}

module attributes {stable_mosaic.version = 11 : i64} {
  func.func @_matmul_kernel(%arg0: i32, %arg1: i32, %arg2: i32, %arg3: memref<16x32xbf16, #tpu.memory_space<vmem>>, %arg4: memref<32x128xbf16, #tpu.memory_space<vmem>>, %arg5: memref<1x128xf32, #tpu.memory_space<vmem>>, %arg6: memref<16x128xbf16, #tpu.memory_space<vmem>>, %arg7: memref<16x128xf32, #tpu.memory_space<vmem>>) attributes {dimension_semantics = [#tpu.dimension_semantics<parallel>, #tpu.dimension_semantics<parallel>, #tpu.dimension_semantics<arbitrary>], iteration_bounds = array<i64: 1, 1, 1>, scalar_prefetch = 0 : i64, scratch_operands = 1 : i64, tpu.core_type = #tpu.core_type<tc>, window_params = [{transform_indices = @transform_0, window_bounds = array<i64: 16, 32>}, {transform_indices = @transform_1, window_bounds = array<i64: 32, 128>}, {transform_indices = @transform_2, window_bounds = array<i64: 1, 128>}, {transform_indices = @transform_3, window_bounds = array<i64: 16, 128>}]} {
    %c0_i32 = arith.constant 0 : i32
    %0 = arith.cmpi eq, %arg2, %c0_i32 : i32
    %1 = arith.extui %0 : i1 to i32
    %c0_i32_0 = arith.constant 0 : i32
    %2 = arith.cmpi ne, %1, %c0_i32_0 : i32
    scf.if %2 {
      %cst_10 = arith.constant 0.000000e+00 : f32
      %12 = vector.broadcast %cst_10 : f32 to vector<16x128xf32>
      %c0_11 = arith.constant 0 : index
      %c0_12 = arith.constant 0 : index
      %13 = vector.load %arg7[%c0_11, %c0_12] : memref<16x128xf32, #tpu.memory_space<vmem>>, vector<16x128xf32>
      tpu.vector_store %arg7[%c0_11, %c0_12], %12 {strides = array<i32>} : memref<16x128xf32, #tpu.memory_space<vmem>>, vector<16x128xf32>,
    } else {
    }
    %c0 = arith.constant 0 : index
    %c0_1 = arith.constant 0 : index
    %3 = vector.load %arg7[%c0, %c0_1] : memref<16x128xf32, #tpu.memory_space<vmem>>, vector<16x128xf32>
    %c0_2 = arith.constant 0 : index
    %c0_3 = arith.constant 0 : index
    %4 = vector.load %arg3[%c0_2, %c0_3] : memref<16x32xbf16, #tpu.memory_space<vmem>>, vector<16x32xbf16>
    %c0_4 = arith.constant 0 : index
    %c0_5 = arith.constant 0 : index
    %5 = vector.load %arg4[%c0_4, %c0_5] : memref<32x128xbf16, #tpu.memory_space<vmem>>, vector<32x128xbf16>
    %cst = arith.constant dense<0.000000e+00> : vector<16x128xf32>
    %6 = tpu.matmul %4, %5, %cst {dimension_numbers = #tpu.dot_dimension_numbers<[1], [0], [0], [1], [0, 0, 1, 1], [], []>} : vector<16x32xbf16>, vector<32x128xbf16>, vector<16x128xf32> -> vector<16x128xf32>
    %7 = arith.addf %3, %6 : vector<16x128xf32>
    %c0_6 = arith.constant 0 : index
    %c0_7 = arith.constant 0 : index
    %8 = vector.load %arg7[%c0_6, %c0_7] : memref<16x128xf32, #tpu.memory_space<vmem>>, vector<16x128xf32>
    tpu.vector_store %arg7[%c0_6, %c0_7], %7 {strides = array<i32>} : memref<16x128xf32, #tpu.memory_space<vmem>>, vector<16x128xf32>,
    %c0_i32_8 = arith.constant 0 : i32
    %9 = arith.cmpi eq, %arg2, %c0_i32_8 : i32
    %10 = arith.extui %9 : i1 to i32
    %c0_i32_9 = arith.constant 0 : i32
    %11 = arith.cmpi ne, %10, %c0_i32_9 : i32
    scf.if %11 {
      %c0_10 = arith.constant 0 : index
      %c0_11 = arith.constant 0 : index
      %12 = vector.load %arg7[%c0_10, %c0_11] : memref<16x128xf32, #tpu.memory_space<vmem>>, vector<16x128xf32>
      %c0_12 = arith.constant 0 : index
      %c0_13 = arith.constant 0 : index
      %13 = vector.load %arg5[%c0_12, %c0_13] : memref<1x128xf32, #tpu.memory_space<vmem>>, vector<1x128xf32>
      %14 = vector.broadcast %13 : vector<1x128xf32> to vector<16x128xf32>
      %15 = arith.addf %12, %14 : vector<16x128xf32>
      %cst_14 = arith.constant 5.000000e-01 : f32
      %16 = vector.broadcast %cst_14 : f32 to vector<16x128xf32>
      %17 = arith.mulf %16, %15 : vector<16x128xf32>
      %cst_15 = arith.constant 4.471500e-02 : f32
      %18 = vector.broadcast %cst_15 : f32 to vector<16x128xf32>
      %19 = arith.mulf %18, %15 : vector<16x128xf32>
      %20 = arith.mulf %19, %15 : vector<16x128xf32>
      %21 = arith.mulf %20, %15 : vector<16x128xf32>
      %22 = arith.addf %15, %21 : vector<16x128xf32>
      %cst_16 = arith.constant 0.797884583 : f32
      %23 = vector.broadcast %cst_16 : f32 to vector<16x128xf32>
      %24 = arith.mulf %23, %22 : vector<16x128xf32>
      %25 = math.tanh %24 : vector<16x128xf32>
      %cst_17 = arith.constant 1.000000e+00 : f32
      %26 = vector.broadcast %cst_17 : f32 to vector<16x128xf32>
      %27 = arith.addf %26, %25 : vector<16x128xf32>
      %28 = arith.mulf %17, %27 : vector<16x128xf32>
      %29 = arith.truncf %28 : vector<16x128xf32> to vector<16x128xbf16>
      %c0_18 = arith.constant 0 : index
      %c0_19 = arith.constant 0 : index
      %30 = vector.load %arg6[%c0_18, %c0_19] : memref<16x128xbf16, #tpu.memory_space<vmem>>, vector<16x128xbf16>
      tpu.vector_store %arg6[%c0_18, %c0_19], %29 {strides = array<i32>} : memref<16x128xbf16, #tpu.memory_space<vmem>>, vector<16x128xbf16>,
    } else {
    }
    return
  }
  func.func @transform_0(%arg0: i32, %arg1: i32, %arg2: i32) -> (i32, i32) {
    %c0_i32 = arith.constant 0 : i32
    return %arg0, %arg2 : i32, i32
  }
  func.func @transform_1(%arg0: i32, %arg1: i32, %arg2: i32) -> (i32, i32) {
    %c0_i32 = arith.constant 0 : i32
    return %arg2, %arg1 : i32, i32
  }
  func.func @transform_2(%arg0: i32, %arg1: i32, %arg2: i32) -> (i32, i32) {
    %c0_i32 = arith.constant 0 : i32
    %c0_i32_0 = arith.constant 0 : i32
    return %c0_i32, %arg1 : i32, i32
  }
  func.func @transform_3(%arg0: i32, %arg1: i32, %arg2: i32) -> (i32, i32) {
    %c0_i32 = arith.constant 0 : i32
    return %arg0, %arg1 : i32, i32
  }
}

module attributes {stable_mosaic.version = 11 : i64} {
  func.func @_matmul_res_ln_kernel(%arg0: i32, %arg1: i32, %arg2: memref<16x128xbf16, #tpu.memory_space<vmem>>, %arg3: memref<128x32xbf16, #tpu.memory_space<vmem>>, %arg4: memref<1x32xf32, #tpu.memory_space<vmem>>, %arg5: memref<16x32xf32, #tpu.memory_space<vmem>>, %arg6: memref<1x32xf32, #tpu.memory_space<vmem>>, %arg7: memref<1x32xf32, #tpu.memory_space<vmem>>, %arg8: memref<16x32xf32, #tpu.memory_space<vmem>>, %arg9: memref<16x32xbf16, #tpu.memory_space<vmem>>, %arg10: memref<16x32xf32, #tpu.memory_space<vmem>>) attributes {dimension_semantics = [#tpu.dimension_semantics<parallel>, #tpu.dimension_semantics<arbitrary>], iteration_bounds = array<i64: 1, 1>, scalar_prefetch = 0 : i64, scratch_operands = 1 : i64, tpu.core_type = #tpu.core_type<tc>, window_params = [{transform_indices = @transform_0, window_bounds = array<i64: 16, 128>}, {transform_indices = @transform_1, window_bounds = array<i64: 128, 32>}, {pipeline_mode = #tpu.pipeline_mode<synchronous>, transform_indices = @transform_2, window_bounds = array<i64: 1, 32>}, {transform_indices = @transform_3, window_bounds = array<i64: 16, 32>}, {pipeline_mode = #tpu.pipeline_mode<synchronous>, transform_indices = @transform_4, window_bounds = array<i64: 1, 32>}, {pipeline_mode = #tpu.pipeline_mode<synchronous>, transform_indices = @transform_5, window_bounds = array<i64: 1, 32>}, {transform_indices = @transform_6, window_bounds = array<i64: 16, 32>}, {transform_indices = @transform_7, window_bounds = array<i64: 16, 32>}]} {
    %c0_i32 = arith.constant 0 : i32
    %0 = arith.cmpi eq, %arg1, %c0_i32 : i32
    %1 = arith.extui %0 : i1 to i32
    %c0_i32_0 = arith.constant 0 : i32
    %2 = arith.cmpi ne, %1, %c0_i32_0 : i32
    scf.if %2 {
      %cst_10 = arith.constant 0.000000e+00 : f32
      %12 = vector.broadcast %cst_10 : f32 to vector<16x32xf32>
      %c0_11 = arith.constant 0 : index
      %c0_12 = arith.constant 0 : index
      %13 = vector.load %arg10[%c0_11, %c0_12] : memref<16x32xf32, #tpu.memory_space<vmem>>, vector<16x32xf32>
      tpu.vector_store %arg10[%c0_11, %c0_12], %12 {strides = array<i32>} : memref<16x32xf32, #tpu.memory_space<vmem>>, vector<16x32xf32>,
    } else {
    }
    %c0 = arith.constant 0 : index
    %c0_1 = arith.constant 0 : index
    %3 = vector.load %arg10[%c0, %c0_1] : memref<16x32xf32, #tpu.memory_space<vmem>>, vector<16x32xf32>
    %c0_2 = arith.constant 0 : index
    %c0_3 = arith.constant 0 : index
    %4 = vector.load %arg2[%c0_2, %c0_3] : memref<16x128xbf16, #tpu.memory_space<vmem>>, vector<16x128xbf16>
    %c0_4 = arith.constant 0 : index
    %c0_5 = arith.constant 0 : index
    %5 = vector.load %arg3[%c0_4, %c0_5] : memref<128x32xbf16, #tpu.memory_space<vmem>>, vector<128x32xbf16>
    %cst = arith.constant dense<0.000000e+00> : vector<16x32xf32>
    %6 = tpu.matmul %4, %5, %cst {dimension_numbers = #tpu.dot_dimension_numbers<[1], [0], [0], [1], [0, 0, 1, 1], [], []>} : vector<16x128xbf16>, vector<128x32xbf16>, vector<16x32xf32> -> vector<16x32xf32>
    %7 = arith.addf %3, %6 : vector<16x32xf32>
    %c0_6 = arith.constant 0 : index
    %c0_7 = arith.constant 0 : index
    %8 = vector.load %arg10[%c0_6, %c0_7] : memref<16x32xf32, #tpu.memory_space<vmem>>, vector<16x32xf32>
    tpu.vector_store %arg10[%c0_6, %c0_7], %7 {strides = array<i32>} : memref<16x32xf32, #tpu.memory_space<vmem>>, vector<16x32xf32>,
    %c0_i32_8 = arith.constant 0 : i32
    %9 = arith.cmpi eq, %arg1, %c0_i32_8 : i32
    %10 = arith.extui %9 : i1 to i32
    %c0_i32_9 = arith.constant 0 : i32
    %11 = arith.cmpi ne, %10, %c0_i32_9 : i32
    scf.if %11 {
      %c0_10 = arith.constant 0 : index
      %c0_11 = arith.constant 0 : index
      %12 = vector.load %arg10[%c0_10, %c0_11] : memref<16x32xf32, #tpu.memory_space<vmem>>, vector<16x32xf32>
      %c0_12 = arith.constant 0 : index
      %c0_13 = arith.constant 0 : index
      %13 = vector.load %arg4[%c0_12, %c0_13] : memref<1x32xf32, #tpu.memory_space<vmem>>, vector<1x32xf32>
      %14 = vector.broadcast %13 : vector<1x32xf32> to vector<16x32xf32>
      %15 = arith.addf %12, %14 : vector<16x32xf32>
      %c0_14 = arith.constant 0 : index
      %c0_15 = arith.constant 0 : index
      %16 = vector.load %arg5[%c0_14, %c0_15] : memref<16x32xf32, #tpu.memory_space<vmem>>, vector<16x32xf32>
      %17 = arith.addf %15, %16 : vector<16x32xf32>
      %cst_16 = arith.constant dense<0.000000e+00> : vector<16xf32>
      %18 = vector.multi_reduction <add>, %17, %cst_16 [1] : vector<16x32xf32> to vector<16xf32>
      %19 = vector.shape_cast %18 : vector<16xf32> to vector<16x1xf32>
      %cst_17 = arith.constant 3.200000e+01 : f32
      %20 = vector.broadcast %cst_17 : f32 to vector<16x1xf32>
      %21 = arith.divf %19, %20 : vector<16x1xf32>
      %22 = vector.broadcast %21 : vector<16x1xf32> to vector<16x32xf32>
      %23 = arith.subf %17, %22 : vector<16x32xf32>
      %24 = arith.mulf %23, %23 : vector<16x32xf32>
      %cst_18 = arith.constant dense<0.000000e+00> : vector<16xf32>
      %25 = vector.multi_reduction <add>, %24, %cst_18 [1] : vector<16x32xf32> to vector<16xf32>
      %26 = vector.shape_cast %25 : vector<16xf32> to vector<16x1xf32>
      %cst_19 = arith.constant 3.200000e+01 : f32
      %27 = vector.broadcast %cst_19 : f32 to vector<16x1xf32>
      %28 = arith.divf %26, %27 : vector<16x1xf32>
      %c0_20 = arith.constant 0 : index
      %c0_21 = arith.constant 0 : index
      %29 = vector.load %arg6[%c0_20, %c0_21] : memref<1x32xf32, #tpu.memory_space<vmem>>, vector<1x32xf32>
      %cst_22 = arith.constant 9.99999974E-6 : f32
      %30 = vector.broadcast %cst_22 : f32 to vector<16x1xf32>
      %31 = arith.addf %28, %30 : vector<16x1xf32>
      %32 = math.rsqrt %31 : vector<16x1xf32>
      %33 = vector.broadcast %32 : vector<16x1xf32> to vector<16x32xf32>
      %34 = arith.mulf %23, %33 : vector<16x32xf32>
      %35 = vector.broadcast %29 : vector<1x32xf32> to vector<16x32xf32>
      %36 = arith.mulf %35, %34 : vector<16x32xf32>
      %c0_23 = arith.constant 0 : index
      %c0_24 = arith.constant 0 : index
      %37 = vector.load %arg7[%c0_23, %c0_24] : memref<1x32xf32, #tpu.memory_space<vmem>>, vector<1x32xf32>
      %38 = vector.broadcast %37 : vector<1x32xf32> to vector<16x32xf32>
      %39 = arith.addf %36, %38 : vector<16x32xf32>
      %c0_25 = arith.constant 0 : index
      %c0_26 = arith.constant 0 : index
      %40 = vector.load %arg8[%c0_25, %c0_26] : memref<16x32xf32, #tpu.memory_space<vmem>>, vector<16x32xf32>
      tpu.vector_store %arg8[%c0_25, %c0_26], %39 {strides = array<i32>} : memref<16x32xf32, #tpu.memory_space<vmem>>, vector<16x32xf32>,
      %41 = arith.truncf %39 : vector<16x32xf32> to vector<16x32xbf16>
      %c0_27 = arith.constant 0 : index
      %c0_28 = arith.constant 0 : index
      %42 = vector.load %arg9[%c0_27, %c0_28] : memref<16x32xbf16, #tpu.memory_space<vmem>>, vector<16x32xbf16>
      tpu.vector_store %arg9[%c0_27, %c0_28], %41 {strides = array<i32>} : memref<16x32xbf16, #tpu.memory_space<vmem>>, vector<16x32xbf16>,
    } else {
    }
    return
  }
  func.func @transform_0(%arg0: i32, %arg1: i32) -> (i32, i32) {
    %c0_i32 = arith.constant 0 : i32
    return %arg0, %arg1 : i32, i32
  }
  func.func @transform_1(%arg0: i32, %arg1: i32) -> (i32, i32) {
    %c0_i32 = arith.constant 0 : i32
    %c0_i32_0 = arith.constant 0 : i32
    return %arg1, %c0_i32 : i32, i32
  }
  func.func @transform_2(%arg0: i32, %arg1: i32) -> (i32, i32) {
    %c0_i32 = arith.constant 0 : i32
    %c0_i32_0 = arith.constant 0 : i32
    %c0_i32_1 = arith.constant 0 : i32
    return %c0_i32, %c0_i32_0 : i32, i32
  }
  func.func @transform_3(%arg0: i32, %arg1: i32) -> (i32, i32) {
    %c0_i32 = arith.constant 0 : i32
    %c0_i32_0 = arith.constant 0 : i32
    return %arg0, %c0_i32 : i32, i32
  }
  func.func @transform_4(%arg0: i32, %arg1: i32) -> (i32, i32) {
    %c0_i32 = arith.constant 0 : i32
    %c0_i32_0 = arith.constant 0 : i32
    %c0_i32_1 = arith.constant 0 : i32
    return %c0_i32, %c0_i32_0 : i32, i32
  }
  func.func @transform_5(%arg0: i32, %arg1: i32) -> (i32, i32) {
    %c0_i32 = arith.constant 0 : i32
    %c0_i32_0 = arith.constant 0 : i32
    %c0_i32_1 = arith.constant 0 : i32
    return %c0_i32, %c0_i32_0 : i32, i32
  }
  func.func @transform_6(%arg0: i32, %arg1: i32) -> (i32, i32) {
    %c0_i32 = arith.constant 0 : i32
    %c0_i32_0 = arith.constant 0 : i32
    return %arg0, %c0_i32 : i32, i32
  }
  func.func @transform_7(%arg0: i32, %arg1: i32) -> (i32, i32) {
    %c0_i32 = arith.constant 0 : i32
    %c0_i32_0 = arith.constant 0 : i32
    return %arg0, %c0_i32 : i32, i32
  }
}

module attributes {stable_mosaic.version = 11 : i64} {
  func.func @_bn_stats_kernel(%arg0: i32, %arg1: i32, %arg2: memref<16x32xf32, #tpu.memory_space<vmem>>, %arg3: memref<2x32xf32, #tpu.memory_space<vmem>>, %arg4: memref<1x32xf32, #tpu.memory_space<vmem>>, %arg5: memref<1x32xf32, #tpu.memory_space<vmem>>) attributes {dimension_semantics = [#tpu.dimension_semantics<parallel>, #tpu.dimension_semantics<arbitrary>], iteration_bounds = array<i64: 1, 1>, scalar_prefetch = 0 : i64, scratch_operands = 2 : i64, tpu.core_type = #tpu.core_type<tc>, window_params = [{transform_indices = @transform_0, window_bounds = array<i64: 16, 32>}, {transform_indices = @transform_1, window_bounds = array<i64: 2, 32>}]} {
    %c0_i32 = arith.constant 0 : i32
    %0 = arith.cmpi eq, %arg1, %c0_i32 : i32
    %1 = arith.extui %0 : i1 to i32
    %c0_i32_0 = arith.constant 0 : i32
    %2 = arith.cmpi ne, %1, %c0_i32_0 : i32
    scf.if %2 {
      %cst_13 = arith.constant 0.000000e+00 : f32
      %18 = vector.broadcast %cst_13 : f32 to vector<1x32xf32>
      %c0_14 = arith.constant 0 : index
      %c0_15 = arith.constant 0 : index
      %19 = vector.load %arg4[%c0_14, %c0_15] : memref<1x32xf32, #tpu.memory_space<vmem>>, vector<1x32xf32>
      tpu.vector_store %arg4[%c0_14, %c0_15], %18 {strides = array<i32>} : memref<1x32xf32, #tpu.memory_space<vmem>>, vector<1x32xf32>,
      %cst_16 = arith.constant 0.000000e+00 : f32
      %20 = vector.broadcast %cst_16 : f32 to vector<1x32xf32>
      %c0_17 = arith.constant 0 : index
      %c0_18 = arith.constant 0 : index
      %21 = vector.load %arg5[%c0_17, %c0_18] : memref<1x32xf32, #tpu.memory_space<vmem>>, vector<1x32xf32>
      tpu.vector_store %arg5[%c0_17, %c0_18], %20 {strides = array<i32>} : memref<1x32xf32, #tpu.memory_space<vmem>>, vector<1x32xf32>,
    } else {
    }
    %c0 = arith.constant 0 : index
    %c0_1 = arith.constant 0 : index
    %3 = vector.load %arg2[%c0, %c0_1] : memref<16x32xf32, #tpu.memory_space<vmem>>, vector<16x32xf32>
    %c0_2 = arith.constant 0 : index
    %c0_3 = arith.constant 0 : index
    %4 = vector.load %arg4[%c0_2, %c0_3] : memref<1x32xf32, #tpu.memory_space<vmem>>, vector<1x32xf32>
    %cst = arith.constant dense<0.000000e+00> : vector<32xf32>
    %5 = vector.multi_reduction <add>, %3, %cst [0] : vector<16x32xf32> to vector<32xf32>
    %6 = vector.shape_cast %5 : vector<32xf32> to vector<1x32xf32>
    %7 = arith.addf %4, %6 : vector<1x32xf32>
    %c0_4 = arith.constant 0 : index
    %c0_5 = arith.constant 0 : index
    %8 = vector.load %arg4[%c0_4, %c0_5] : memref<1x32xf32, #tpu.memory_space<vmem>>, vector<1x32xf32>
    tpu.vector_store %arg4[%c0_4, %c0_5], %7 {strides = array<i32>} : memref<1x32xf32, #tpu.memory_space<vmem>>, vector<1x32xf32>,
    %c0_6 = arith.constant 0 : index
    %c0_7 = arith.constant 0 : index
    %9 = vector.load %arg5[%c0_6, %c0_7] : memref<1x32xf32, #tpu.memory_space<vmem>>, vector<1x32xf32>
    %10 = arith.mulf %3, %3 : vector<16x32xf32>
    %cst_8 = arith.constant dense<0.000000e+00> : vector<32xf32>
    %11 = vector.multi_reduction <add>, %10, %cst_8 [0] : vector<16x32xf32> to vector<32xf32>
    %12 = vector.shape_cast %11 : vector<32xf32> to vector<1x32xf32>
    %13 = arith.addf %9, %12 : vector<1x32xf32>
    %c0_9 = arith.constant 0 : index
    %c0_10 = arith.constant 0 : index
    %14 = vector.load %arg5[%c0_9, %c0_10] : memref<1x32xf32, #tpu.memory_space<vmem>>, vector<1x32xf32>
    tpu.vector_store %arg5[%c0_9, %c0_10], %13 {strides = array<i32>} : memref<1x32xf32, #tpu.memory_space<vmem>>, vector<1x32xf32>,
    %c0_i32_11 = arith.constant 0 : i32
    %15 = arith.cmpi eq, %arg1, %c0_i32_11 : i32
    %16 = arith.extui %15 : i1 to i32
    %c0_i32_12 = arith.constant 0 : i32
    %17 = arith.cmpi ne, %16, %c0_i32_12 : i32
    scf.if %17 {
      %c0_13 = arith.constant 0 : index
      %c0_14 = arith.constant 0 : index
      %18 = vector.load %arg4[%c0_13, %c0_14] : memref<1x32xf32, #tpu.memory_space<vmem>>, vector<1x32xf32>
      %cst_15 = arith.constant 6.250000e-02 : f32
      %19 = vector.broadcast %cst_15 : f32 to vector<1x32xf32>
      %20 = arith.mulf %18, %19 : vector<1x32xf32>
      %c0_16 = arith.constant 0 : index
      %c0_17 = arith.constant 0 : index
      %21 = vector.load %arg5[%c0_16, %c0_17] : memref<1x32xf32, #tpu.memory_space<vmem>>, vector<1x32xf32>
      %cst_18 = arith.constant 6.250000e-02 : f32
      %22 = vector.broadcast %cst_18 : f32 to vector<1x32xf32>
      %23 = arith.mulf %21, %22 : vector<1x32xf32>
      %24 = arith.mulf %20, %20 : vector<1x32xf32>
      %25 = arith.subf %23, %24 : vector<1x32xf32>
      %cst_19 = arith.constant 0.000000e+00 : f32
      %26 = vector.broadcast %cst_19 : f32 to vector<1x32xf32>
      %27 = arith.maximumf %25, %26 : vector<1x32xf32>
      %c0_20 = arith.constant 0 : index
      %c0_21 = arith.constant 0 : index
      %28 = vector.load %arg3[%c0_20, %c0_21] : memref<2x32xf32, #tpu.memory_space<vmem>>, vector<1x32xf32>
      tpu.vector_store %arg3[%c0_20, %c0_21], %20 {strides = array<i32>} : memref<2x32xf32, #tpu.memory_space<vmem>>, vector<1x32xf32>,
      %cst_22 = arith.constant 9.99999974E-6 : f32
      %29 = vector.broadcast %cst_22 : f32 to vector<1x32xf32>
      %30 = arith.addf %27, %29 : vector<1x32xf32>
      %31 = math.rsqrt %30 : vector<1x32xf32>
      %c1 = arith.constant 1 : index
      %c0_23 = arith.constant 0 : index
      %32 = vector.load %arg3[%c1, %c0_23] : memref<2x32xf32, #tpu.memory_space<vmem>>, vector<1x32xf32>
      tpu.vector_store %arg3[%c1, %c0_23], %31 {strides = array<i32>} : memref<2x32xf32, #tpu.memory_space<vmem>>, vector<1x32xf32>,
    } else {
    }
    return
  }
  func.func @transform_0(%arg0: i32, %arg1: i32) -> (i32, i32) {
    %c0_i32 = arith.constant 0 : i32
    return %arg1, %arg0 : i32, i32
  }
  func.func @transform_1(%arg0: i32, %arg1: i32) -> (i32, i32) {
    %c0_i32 = arith.constant 0 : i32
    %c0_i32_0 = arith.constant 0 : i32
    return %c0_i32, %arg0 : i32, i32
  }
}

module attributes {stable_mosaic.version = 11 : i64} {
  func.func @_bn_apply_kernel(%arg0: i32, %arg1: i32, %arg2: memref<16x32xf32, #tpu.memory_space<vmem>>, %arg3: memref<2x32xf32, #tpu.memory_space<vmem>>, %arg4: memref<1x32xf32, #tpu.memory_space<vmem>>, %arg5: memref<1x32xf32, #tpu.memory_space<vmem>>, %arg6: memref<16x32xbf16, #tpu.memory_space<vmem>>) attributes {dimension_semantics = [#tpu.dimension_semantics<parallel>, #tpu.dimension_semantics<parallel>], iteration_bounds = array<i64: 1, 1>, scalar_prefetch = 0 : i64, scratch_operands = 0 : i64, tpu.core_type = #tpu.core_type<tc>, window_params = [{transform_indices = @transform_0, window_bounds = array<i64: 16, 32>}, {transform_indices = @transform_1, window_bounds = array<i64: 2, 32>}, {transform_indices = @transform_2, window_bounds = array<i64: 1, 32>}, {transform_indices = @transform_3, window_bounds = array<i64: 1, 32>}, {transform_indices = @transform_4, window_bounds = array<i64: 16, 32>}]} {
    %c0 = arith.constant 0 : index
    %c0_0 = arith.constant 0 : index
    %0 = vector.load %arg2[%c0, %c0_0] : memref<16x32xf32, #tpu.memory_space<vmem>>, vector<16x32xf32>
    %c0_1 = arith.constant 0 : index
    %c0_2 = arith.constant 0 : index
    %1 = vector.load %arg3[%c0_1, %c0_2] : memref<2x32xf32, #tpu.memory_space<vmem>>, vector<1x32xf32>
    %c1 = arith.constant 1 : index
    %c0_3 = arith.constant 0 : index
    %2 = vector.load %arg3[%c1, %c0_3] : memref<2x32xf32, #tpu.memory_space<vmem>>, vector<1x32xf32>
    %c0_4 = arith.constant 0 : index
    %c0_5 = arith.constant 0 : index
    %3 = vector.load %arg4[%c0_4, %c0_5] : memref<1x32xf32, #tpu.memory_space<vmem>>, vector<1x32xf32>
    %4 = vector.broadcast %1 : vector<1x32xf32> to vector<16x32xf32>
    %5 = arith.subf %0, %4 : vector<16x32xf32>
    %6 = vector.broadcast %2 : vector<1x32xf32> to vector<16x32xf32>
    %7 = arith.mulf %5, %6 : vector<16x32xf32>
    %8 = vector.broadcast %3 : vector<1x32xf32> to vector<16x32xf32>
    %9 = arith.mulf %8, %7 : vector<16x32xf32>
    %c0_6 = arith.constant 0 : index
    %c0_7 = arith.constant 0 : index
    %10 = vector.load %arg5[%c0_6, %c0_7] : memref<1x32xf32, #tpu.memory_space<vmem>>, vector<1x32xf32>
    %11 = vector.broadcast %10 : vector<1x32xf32> to vector<16x32xf32>
    %12 = arith.addf %9, %11 : vector<16x32xf32>
    %13 = arith.truncf %12 : vector<16x32xf32> to vector<16x32xbf16>
    %c0_8 = arith.constant 0 : index
    %c0_9 = arith.constant 0 : index
    %14 = vector.load %arg6[%c0_8, %c0_9] : memref<16x32xbf16, #tpu.memory_space<vmem>>, vector<16x32xbf16>
    tpu.vector_store %arg6[%c0_8, %c0_9], %13 {strides = array<i32>} : memref<16x32xbf16, #tpu.memory_space<vmem>>, vector<16x32xbf16>,
    return
  }
  func.func @transform_0(%arg0: i32, %arg1: i32) -> (i32, i32) {
    %c0_i32 = arith.constant 0 : i32
    return %arg0, %arg1 : i32, i32
  }
  func.func @transform_1(%arg0: i32, %arg1: i32) -> (i32, i32) {
    %c0_i32 = arith.constant 0 : i32
    %c0_i32_0 = arith.constant 0 : i32
    return %c0_i32, %arg1 : i32, i32
  }
  func.func @transform_2(%arg0: i32, %arg1: i32) -> (i32, i32) {
    %c0_i32 = arith.constant 0 : i32
    %c0_i32_0 = arith.constant 0 : i32
    return %c0_i32, %arg1 : i32, i32
  }
  func.func @transform_3(%arg0: i32, %arg1: i32) -> (i32, i32) {
    %c0_i32 = arith.constant 0 : i32
    %c0_i32_0 = arith.constant 0 : i32
    return %c0_i32, %arg1 : i32, i32
  }
  func.func @transform_4(%arg0: i32, %arg1: i32) -> (i32, i32) {
    %c0_i32 = arith.constant 0 : i32
    return %arg0, %arg1 : i32, i32
  }
}

module attributes {stable_mosaic.version = 11 : i64} {
  func.func @_matmul_res_ln_kernel(%arg0: i32, %arg1: i32, %arg2: memref<16x128xbf16, #tpu.memory_space<vmem>>, %arg3: memref<128x32xbf16, #tpu.memory_space<vmem>>, %arg4: memref<1x32xf32, #tpu.memory_space<vmem>>, %arg5: memref<16x32xf32, #tpu.memory_space<vmem>>, %arg6: memref<1x32xf32, #tpu.memory_space<vmem>>, %arg7: memref<1x32xf32, #tpu.memory_space<vmem>>, %arg8: memref<16x32xf32, #tpu.memory_space<vmem>>, %arg9: memref<16x32xbf16, #tpu.memory_space<vmem>>, %arg10: memref<16x32xf32, #tpu.memory_space<vmem>>) attributes {dimension_semantics = [#tpu.dimension_semantics<parallel>, #tpu.dimension_semantics<arbitrary>], iteration_bounds = array<i64: 1, 1>, scalar_prefetch = 0 : i64, scratch_operands = 1 : i64, tpu.core_type = #tpu.core_type<tc>, window_params = [{transform_indices = @transform_0, window_bounds = array<i64: 16, 128>}, {transform_indices = @transform_1, window_bounds = array<i64: 128, 32>}, {pipeline_mode = #tpu.pipeline_mode<synchronous>, transform_indices = @transform_2, window_bounds = array<i64: 1, 32>}, {transform_indices = @transform_3, window_bounds = array<i64: 16, 32>}, {pipeline_mode = #tpu.pipeline_mode<synchronous>, transform_indices = @transform_4, window_bounds = array<i64: 1, 32>}, {pipeline_mode = #tpu.pipeline_mode<synchronous>, transform_indices = @transform_5, window_bounds = array<i64: 1, 32>}, {transform_indices = @transform_6, window_bounds = array<i64: 16, 32>}, {transform_indices = @transform_7, window_bounds = array<i64: 16, 32>}]} {
    %c0_i32 = arith.constant 0 : i32
    %0 = arith.cmpi eq, %arg1, %c0_i32 : i32
    %1 = arith.extui %0 : i1 to i32
    %c0_i32_0 = arith.constant 0 : i32
    %2 = arith.cmpi ne, %1, %c0_i32_0 : i32
    scf.if %2 {
      %cst_10 = arith.constant 0.000000e+00 : f32
      %12 = vector.broadcast %cst_10 : f32 to vector<16x32xf32>
      %c0_11 = arith.constant 0 : index
      %c0_12 = arith.constant 0 : index
      %13 = vector.load %arg10[%c0_11, %c0_12] : memref<16x32xf32, #tpu.memory_space<vmem>>, vector<16x32xf32>
      tpu.vector_store %arg10[%c0_11, %c0_12], %12 {strides = array<i32>} : memref<16x32xf32, #tpu.memory_space<vmem>>, vector<16x32xf32>,
    } else {
    }
    %c0 = arith.constant 0 : index
    %c0_1 = arith.constant 0 : index
    %3 = vector.load %arg10[%c0, %c0_1] : memref<16x32xf32, #tpu.memory_space<vmem>>, vector<16x32xf32>
    %c0_2 = arith.constant 0 : index
    %c0_3 = arith.constant 0 : index
    %4 = vector.load %arg2[%c0_2, %c0_3] : memref<16x128xbf16, #tpu.memory_space<vmem>>, vector<16x128xbf16>
    %c0_4 = arith.constant 0 : index
    %c0_5 = arith.constant 0 : index
    %5 = vector.load %arg3[%c0_4, %c0_5] : memref<128x32xbf16, #tpu.memory_space<vmem>>, vector<128x32xbf16>
    %cst = arith.constant dense<0.000000e+00> : vector<16x32xf32>
    %6 = tpu.matmul %4, %5, %cst {dimension_numbers = #tpu.dot_dimension_numbers<[1], [0], [0], [1], [0, 0, 1, 1], [], []>} : vector<16x128xbf16>, vector<128x32xbf16>, vector<16x32xf32> -> vector<16x32xf32>
    %7 = arith.addf %3, %6 : vector<16x32xf32>
    %c0_6 = arith.constant 0 : index
    %c0_7 = arith.constant 0 : index
    %8 = vector.load %arg10[%c0_6, %c0_7] : memref<16x32xf32, #tpu.memory_space<vmem>>, vector<16x32xf32>
    tpu.vector_store %arg10[%c0_6, %c0_7], %7 {strides = array<i32>} : memref<16x32xf32, #tpu.memory_space<vmem>>, vector<16x32xf32>,
    %c0_i32_8 = arith.constant 0 : i32
    %9 = arith.cmpi eq, %arg1, %c0_i32_8 : i32
    %10 = arith.extui %9 : i1 to i32
    %c0_i32_9 = arith.constant 0 : i32
    %11 = arith.cmpi ne, %10, %c0_i32_9 : i32
    scf.if %11 {
      %c0_10 = arith.constant 0 : index
      %c0_11 = arith.constant 0 : index
      %12 = vector.load %arg10[%c0_10, %c0_11] : memref<16x32xf32, #tpu.memory_space<vmem>>, vector<16x32xf32>
      %c0_12 = arith.constant 0 : index
      %c0_13 = arith.constant 0 : index
      %13 = vector.load %arg4[%c0_12, %c0_13] : memref<1x32xf32, #tpu.memory_space<vmem>>, vector<1x32xf32>
      %14 = vector.broadcast %13 : vector<1x32xf32> to vector<16x32xf32>
      %15 = arith.addf %12, %14 : vector<16x32xf32>
      %c0_14 = arith.constant 0 : index
      %c0_15 = arith.constant 0 : index
      %16 = vector.load %arg5[%c0_14, %c0_15] : memref<16x32xf32, #tpu.memory_space<vmem>>, vector<16x32xf32>
      %17 = arith.addf %15, %16 : vector<16x32xf32>
      %cst_16 = arith.constant dense<0.000000e+00> : vector<16xf32>
      %18 = vector.multi_reduction <add>, %17, %cst_16 [1] : vector<16x32xf32> to vector<16xf32>
      %19 = vector.shape_cast %18 : vector<16xf32> to vector<16x1xf32>
      %cst_17 = arith.constant 3.200000e+01 : f32
      %20 = vector.broadcast %cst_17 : f32 to vector<16x1xf32>
      %21 = arith.divf %19, %20 : vector<16x1xf32>
      %22 = vector.broadcast %21 : vector<16x1xf32> to vector<16x32xf32>
      %23 = arith.subf %17, %22 : vector<16x32xf32>
      %24 = arith.mulf %23, %23 : vector<16x32xf32>
      %cst_18 = arith.constant dense<0.000000e+00> : vector<16xf32>
      %25 = vector.multi_reduction <add>, %24, %cst_18 [1] : vector<16x32xf32> to vector<16xf32>
      %26 = vector.shape_cast %25 : vector<16xf32> to vector<16x1xf32>
      %cst_19 = arith.constant 3.200000e+01 : f32
      %27 = vector.broadcast %cst_19 : f32 to vector<16x1xf32>
      %28 = arith.divf %26, %27 : vector<16x1xf32>
      %c0_20 = arith.constant 0 : index
      %c0_21 = arith.constant 0 : index
      %29 = vector.load %arg6[%c0_20, %c0_21] : memref<1x32xf32, #tpu.memory_space<vmem>>, vector<1x32xf32>
      %cst_22 = arith.constant 9.99999974E-6 : f32
      %30 = vector.broadcast %cst_22 : f32 to vector<16x1xf32>
      %31 = arith.addf %28, %30 : vector<16x1xf32>
      %32 = math.rsqrt %31 : vector<16x1xf32>
      %33 = vector.broadcast %32 : vector<16x1xf32> to vector<16x32xf32>
      %34 = arith.mulf %23, %33 : vector<16x32xf32>
      %35 = vector.broadcast %29 : vector<1x32xf32> to vector<16x32xf32>
      %36 = arith.mulf %35, %34 : vector<16x32xf32>
      %c0_23 = arith.constant 0 : index
      %c0_24 = arith.constant 0 : index
      %37 = vector.load %arg7[%c0_23, %c0_24] : memref<1x32xf32, #tpu.memory_space<vmem>>, vector<1x32xf32>
      %38 = vector.broadcast %37 : vector<1x32xf32> to vector<16x32xf32>
      %39 = arith.addf %36, %38 : vector<16x32xf32>
      %c0_25 = arith.constant 0 : index
      %c0_26 = arith.constant 0 : index
      %40 = vector.load %arg8[%c0_25, %c0_26] : memref<16x32xf32, #tpu.memory_space<vmem>>, vector<16x32xf32>
      tpu.vector_store %arg8[%c0_25, %c0_26], %39 {strides = array<i32>} : memref<16x32xf32, #tpu.memory_space<vmem>>, vector<16x32xf32>,
      %41 = arith.truncf %39 : vector<16x32xf32> to vector<16x32xbf16>
      %c0_27 = arith.constant 0 : index
      %c0_28 = arith.constant 0 : index
      %42 = vector.load %arg9[%c0_27, %c0_28] : memref<16x32xbf16, #tpu.memory_space<vmem>>, vector<16x32xbf16>
      tpu.vector_store %arg9[%c0_27, %c0_28], %41 {strides = array<i32>} : memref<16x32xbf16, #tpu.memory_space<vmem>>, vector<16x32xbf16>,
    } else {
    }
    return
  }
  func.func @transform_0(%arg0: i32, %arg1: i32) -> (i32, i32) {
    %c0_i32 = arith.constant 0 : i32
    return %arg0, %arg1 : i32, i32
  }
  func.func @transform_1(%arg0: i32, %arg1: i32) -> (i32, i32) {
    %c0_i32 = arith.constant 0 : i32
    %c0_i32_0 = arith.constant 0 : i32
    return %arg1, %c0_i32 : i32, i32
  }
  func.func @transform_2(%arg0: i32, %arg1: i32) -> (i32, i32) {
    %c0_i32 = arith.constant 0 : i32
    %c0_i32_0 = arith.constant 0 : i32
    %c0_i32_1 = arith.constant 0 : i32
    return %c0_i32, %c0_i32_0 : i32, i32
  }
  func.func @transform_3(%arg0: i32, %arg1: i32) -> (i32, i32) {
    %c0_i32 = arith.constant 0 : i32
    %c0_i32_0 = arith.constant 0 : i32
    return %arg0, %c0_i32 : i32, i32
  }
  func.func @transform_4(%arg0: i32, %arg1: i32) -> (i32, i32) {
    %c0_i32 = arith.constant 0 : i32
    %c0_i32_0 = arith.constant 0 : i32
    %c0_i32_1 = arith.constant 0 : i32
    return %c0_i32, %c0_i32_0 : i32, i32
  }
  func.func @transform_5(%arg0: i32, %arg1: i32) -> (i32, i32) {
    %c0_i32 = arith.constant 0 : i32
    %c0_i32_0 = arith.constant 0 : i32
    %c0_i32_1 = arith.constant 0 : i32
    return %c0_i32, %c0_i32_0 : i32, i32
  }
  func.func @transform_6(%arg0: i32, %arg1: i32) -> (i32, i32) {
    %c0_i32 = arith.constant 0 : i32
    %c0_i32_0 = arith.constant 0 : i32
    return %arg0, %c0_i32 : i32, i32
  }
  func.func @transform_7(%arg0: i32, %arg1: i32) -> (i32, i32) {
    %c0_i32 = arith.constant 0 : i32
    %c0_i32_0 = arith.constant 0 : i32
    return %arg0, %c0_i32 : i32, i32
  }
}

module attributes {stable_mosaic.version = 11 : i64} {
  func.func @_matmul_kernel(%arg0: i32, %arg1: i32, %arg2: i32, %arg3: memref<16x32xbf16, #tpu.memory_space<vmem>>, %arg4: memref<32x16xbf16, #tpu.memory_space<vmem>>, %arg5: memref<1x16xf32, #tpu.memory_space<vmem>>, %arg6: memref<16x16xf32, #tpu.memory_space<vmem>>, %arg7: memref<16x16xf32, #tpu.memory_space<vmem>>) attributes {dimension_semantics = [#tpu.dimension_semantics<parallel>, #tpu.dimension_semantics<parallel>, #tpu.dimension_semantics<arbitrary>], iteration_bounds = array<i64: 1, 1, 1>, scalar_prefetch = 0 : i64, scratch_operands = 1 : i64, tpu.core_type = #tpu.core_type<tc>, window_params = [{transform_indices = @transform_0, window_bounds = array<i64: 16, 32>}, {transform_indices = @transform_1, window_bounds = array<i64: 32, 16>}, {transform_indices = @transform_2, window_bounds = array<i64: 1, 16>}, {transform_indices = @transform_3, window_bounds = array<i64: 16, 16>}]} {
    %c0_i32 = arith.constant 0 : i32
    %0 = arith.cmpi eq, %arg2, %c0_i32 : i32
    %1 = arith.extui %0 : i1 to i32
    %c0_i32_0 = arith.constant 0 : i32
    %2 = arith.cmpi ne, %1, %c0_i32_0 : i32
    scf.if %2 {
      %cst_10 = arith.constant 0.000000e+00 : f32
      %12 = vector.broadcast %cst_10 : f32 to vector<16x16xf32>
      %c0_11 = arith.constant 0 : index
      %c0_12 = arith.constant 0 : index
      %13 = vector.load %arg7[%c0_11, %c0_12] : memref<16x16xf32, #tpu.memory_space<vmem>>, vector<16x16xf32>
      tpu.vector_store %arg7[%c0_11, %c0_12], %12 {strides = array<i32>} : memref<16x16xf32, #tpu.memory_space<vmem>>, vector<16x16xf32>,
    } else {
    }
    %c0 = arith.constant 0 : index
    %c0_1 = arith.constant 0 : index
    %3 = vector.load %arg7[%c0, %c0_1] : memref<16x16xf32, #tpu.memory_space<vmem>>, vector<16x16xf32>
    %c0_2 = arith.constant 0 : index
    %c0_3 = arith.constant 0 : index
    %4 = vector.load %arg3[%c0_2, %c0_3] : memref<16x32xbf16, #tpu.memory_space<vmem>>, vector<16x32xbf16>
    %c0_4 = arith.constant 0 : index
    %c0_5 = arith.constant 0 : index
    %5 = vector.load %arg4[%c0_4, %c0_5] : memref<32x16xbf16, #tpu.memory_space<vmem>>, vector<32x16xbf16>
    %cst = arith.constant dense<0.000000e+00> : vector<16x16xf32>
    %6 = tpu.matmul %4, %5, %cst {dimension_numbers = #tpu.dot_dimension_numbers<[1], [0], [0], [1], [0, 0, 1, 1], [], []>} : vector<16x32xbf16>, vector<32x16xbf16>, vector<16x16xf32> -> vector<16x16xf32>
    %7 = arith.addf %3, %6 : vector<16x16xf32>
    %c0_6 = arith.constant 0 : index
    %c0_7 = arith.constant 0 : index
    %8 = vector.load %arg7[%c0_6, %c0_7] : memref<16x16xf32, #tpu.memory_space<vmem>>, vector<16x16xf32>
    tpu.vector_store %arg7[%c0_6, %c0_7], %7 {strides = array<i32>} : memref<16x16xf32, #tpu.memory_space<vmem>>, vector<16x16xf32>,
    %c0_i32_8 = arith.constant 0 : i32
    %9 = arith.cmpi eq, %arg2, %c0_i32_8 : i32
    %10 = arith.extui %9 : i1 to i32
    %c0_i32_9 = arith.constant 0 : i32
    %11 = arith.cmpi ne, %10, %c0_i32_9 : i32
    scf.if %11 {
      %c0_10 = arith.constant 0 : index
      %c0_11 = arith.constant 0 : index
      %12 = vector.load %arg7[%c0_10, %c0_11] : memref<16x16xf32, #tpu.memory_space<vmem>>, vector<16x16xf32>
      %c0_12 = arith.constant 0 : index
      %c0_13 = arith.constant 0 : index
      %13 = vector.load %arg5[%c0_12, %c0_13] : memref<1x16xf32, #tpu.memory_space<vmem>>, vector<1x16xf32>
      %14 = vector.broadcast %13 : vector<1x16xf32> to vector<16x16xf32>
      %15 = arith.addf %12, %14 : vector<16x16xf32>
      %c0_14 = arith.constant 0 : index
      %c0_15 = arith.constant 0 : index
      %16 = vector.load %arg6[%c0_14, %c0_15] : memref<16x16xf32, #tpu.memory_space<vmem>>, vector<16x16xf32>
      tpu.vector_store %arg6[%c0_14, %c0_15], %15 {strides = array<i32>} : memref<16x16xf32, #tpu.memory_space<vmem>>, vector<16x16xf32>,
    } else {
    }
    return
  }
  func.func @transform_0(%arg0: i32, %arg1: i32, %arg2: i32) -> (i32, i32) {
    %c0_i32 = arith.constant 0 : i32
    return %arg0, %arg2 : i32, i32
  }
  func.func @transform_1(%arg0: i32, %arg1: i32, %arg2: i32) -> (i32, i32) {
    %c0_i32 = arith.constant 0 : i32
    return %arg2, %arg1 : i32, i32
  }
  func.func @transform_2(%arg0: i32, %arg1: i32, %arg2: i32) -> (i32, i32) {
    %c0_i32 = arith.constant 0 : i32
    %c0_i32_0 = arith.constant 0 : i32
    return %c0_i32, %arg1 : i32, i32
  }
  func.func @transform_3(%arg0: i32, %arg1: i32, %arg2: i32) -> (i32, i32) {
    %c0_i32 = arith.constant 0 : i32
    return %arg0, %arg1 : i32, i32
  }
}

</mosaic_0001>

<bundles_post_ra>
// kernel: nformer_forward.15
= control target key start
LH: loop header
LB: loop body
LE: loop exit
PB: predicated region body
PF: predicated region fallthrough
CT: control target
= control target key end

     0   :  { %vm18_vm0 = vcmask 261120   ;;  %v106_v4 = vmov 32.0   ;;  %vm86_vm6 = vcmask 257024   ;;  %s162_s0 = inlined_call_operand.vmem [shape: f32[16,32], index: 0, kind: input, shape index: {}]   ;;  %s163_s1 = inlined_call_operand.vmem [shape: f32[1,32], index: 1, kind: input, shape index: {}]   ;;  %s164_s2 = inlined_call_operand.vmem [shape: f32[1,32], index: 2, kind: input, shape index: {}]   ;;  %s165_s3 = inlined_call_operand.vmem [shape: f32[16,32], index: 3, kind: output, shape index: {0}]   ;;  %s166_s4 = inlined_call_operand.vmem [shape: bf16[16,32], index: 4, kind: output, shape index: {1}]  }
   0x1   :  { %v16_v0 = vld [vmem:[%s162_s0] sm:$0xff]  ;;  %v17_v2 = vld [vmem:[%s162_s0 + $0x8] sm:$0xff]  ;;  %100 = vrcp.f32 %v106_v4 }
   0x2   :  { %v19_v1 = vsel %vm18_vm0, %v16_v0, 0.0  ;;  %v22_v3 = vsel %vm18_vm0, %v17_v2, 0.0  ;;  %v98_v35 = vld [vmem:[%s163_s1] ss:$0 sm:$0xff] }
   0x3   :  { %20 = vadd.xlane.f32.xlu0 %v19_v1  ;;  %v99_v38 = vld [vmem:[%s164_s2] ss:$0 sm:$0xff] }
   0x7   :  { %v101_v5 = vpop.eup %100 }
   0x8   :  { %v26_v6 = vmul.f32 32.0, %v101_v5  ;;  %vm30_vm1 = vweird.f32 %v101_v5 }
   0xa   :  { %v27_v7 = vsub.f32 1.0, %v26_v6 }
   0xb   :  { %23 = vadd.xlane.f32.xlu0 %v22_v3 }
   0xc   :  { %v28_v8 = vmul.f32 %v101_v5, %v27_v7 }
   0xe   :  { %v29_v9 = vadd.f32 %v101_v5, %v28_v8 }
  0x10   :  { %v31_v10 = vsel %vm30_vm1, %v101_v5, %v29_v9 }
  0x76   :  { %v21_v11 = vpop.xlane.xlu0 %20 }
  0x77   :  { %v32_v12 = vmul.f32 %v31_v10, %v21_v11 }
  0x79   :  { %v34_v13 = vsub.f32 %v16_v0, %v32_v12 }
  0x7b   :  { %v36_v14 = vmul.f32 %v34_v13, %v34_v13 }
  0x7d   :  { %v38_v15 = vsel %vm18_vm0, %v36_v14, 0.0 }
  0x7e   :  { %39 = vadd.xlane.f32.xlu1 %v38_v15  ;;  %v24_v16 = vpop.xlane.xlu0 %23 }
  0x7f   :  { %v33_v17 = vmul.f32 %v31_v10, %v24_v16 }
  0x81   :  { %v35_v18 = vsub.f32 %v17_v2, %v33_v17 }
  0x83   :  { %v37_v19 = vmul.f32 %v35_v18, %v35_v18 }
  0x85   :  { %v41_v20 = vsel %vm18_vm0, %v37_v19, 0.0 }
  0x86   :  { %42 = vadd.xlane.f32.xlu1 %v41_v20 }
  0xf1   :  { %v40_v21 = vpop.xlane.xlu1 %39 }
  0xf2   :  { %v44_v22 = vmul.f32 %v40_v21, %v31_v10 }
  0xf4   :  { %v47_v23 = vadd.f32 1e-05, %v44_v22 }
  0xf6   :  { %102 = vrsqrt.f32 %v47_v23  ;;  %vm55_vm3 = vweird.f32 %v47_v23 }
  0xf9   :  { %v43_v24 = vpop.xlane.xlu1 %42 }
  0xfa   :  { %v45_v25 = vmul.f32 %v43_v24, %v31_v10 }
  0xfc   :  { %v103_v26 = vpop.eup %102  ;;  %v48_v27 = vadd.f32 1e-05, %v45_v25 }
  0xfd   :  { %v50_v28 = vmul.f32 %v103_v26, %v47_v23  ;;  %vm56_vm2 = vweird.f32 %v103_v26 }
  0xfe   :  { %104 = vrsqrt.f32 %v48_v27  ;;  %vm57_vm4 = vmor %vm55_vm3, %vm56_vm2  ;;  %vm65_vm7 = vweird.f32 %v48_v27 }
  0xff   :  { %v51_v29 = vmul.f32 %v103_v26, %v50_v28 }
 0x101   :  { %v52_v30 = vmul.f32 0.5, %v51_v29 }
 0x103   :  { %v53_v31 = vsub.f32 1.5, %v52_v30 }
 0x104   :  { %v105_v32 = vpop.eup %104 }
 0x105   :  { %v54_v33 = vmul.f32 %v103_v26, %v53_v31  ;;  %v60_v34 = vmul.f32 %v105_v32, %v48_v27  ;;  %vm66_vm5 = vweird.f32 %v105_v32 }
 0x106   :  { %vm67_vm8 = vmor %vm65_vm7, %vm66_vm5 }
 0x107   :  { %v58_v36 = vsel %vm57_vm4, %v103_v26, %v54_v33  ;;  %v61_v37 = vmul.f32 %v105_v32, %v60_v34 }
 0x108   :  { %v69_v39 = vmul.f32 %v58_v36, %v34_v13 }
 0x109   :  { %v62_v40 = vmul.f32 0.5, %v61_v37 }
 0x10a   :  { %v74_v41 = vmul.f32 %v98_v35, %v69_v39 }
 0x10b   :  { %v63_v42 = vsub.f32 1.5, %v62_v40 }
 0x10c   :  { %v80_v43 = vadd.f32 %v99_v38, %v74_v41 }
 0x10d   :  { %v64_v44 = vmul.f32 %v105_v32, %v63_v42 }
 0x10e   :  { %82 = vst.msk [vmem:[%s165_s3] sm:$0xff] %vm18_vm0, %v80_v43  ;;  %v84_v45 = vpack.c.bf16 %v80_v43, %v80_v43 }
 0x10f   :  { %v68_v46 = vsel %vm67_vm8, %v105_v32, %v64_v44 }
 0x110   :  { %87 = vst.msk [vmem:[%s166_s4] sm:$0xf] %vm86_vm6, %v84_v45  ;;  %v70_v47 = vmul.f32 %v68_v46, %v35_v18 }
 0x112   :  { %v75_v48 = vmul.f32 %v98_v35, %v70_v47 }
 0x114   :  { %v81_v49 = vadd.f32 %v99_v38, %v75_v48 }
 0x116   :  { %83 = vst.msk [vmem:[%s165_s3 + $0x8] sm:$0xff] %vm18_vm0, %v81_v49  ;;  %v85_v50 = vpack.c.bf16 %v81_v49, %v81_v49 }
 0x118   :  { %88 = vst.msk [vmem:[%s166_s4 + $0x4] sm:$0xf] %vm86_vm6, %v85_v50 }

// kernel: nformer_forward.16
= control target key start
LH: loop header
LB: loop body
LE: loop exit
PB: predicated region body
PF: predicated region fallthrough
CT: control target
= control target key end

     0   :  { %s247_s6 = smov 0   ;;  %s267_s0 = inlined_call_operand.vmem [shape: f32[2,8,32], index: 0, kind: input, shape index: {}]   ;;  %s268_s1 = inlined_call_operand.vmem [shape: f32[2,8,8], index: 1, kind: output, shape index: {}]  }
   0x1 LB: > { %s208_s7 = sadd.s32 4294967295, %s235_s6   ;;  %p212_p0 = scmp.ge.s32.totalorder %s235_s6, 1  ;;  %s235_s6 = sphi %s247_s6, %s11_s6  }
   0x2   : > { %p86_p1 = scmp.lt.s32.totalorder %s235_s6, 3 }
   0x4   : > { %p87_p2 = pnand %p212_p0, %p86_p1 }
   0x5   : > { %p104_p3 = scmp.lt.s32.totalorder (!%p87_p2), %s208_s7, 1 }
   0x6   : > { %90 = sbr.rel (%p87_p2) target bundleno = 286 (0x11e), region = 24 }
   0xb   : > { %s270_s7 = smov (!%p104_p3, %s208_s7), 1  ;;  %vm114_vm0 = vcmask 261120   ;;  %vm153_vm4 = vcmask 64512  }
   0xc   : > { %s213_s8 = sshll.u32 %s270_s7, 3 }
   0xd   : > { %s107_s11 = scalar_lea.vmem %s267_s0, %s213_s8  ;;  %s111_s14 = scalar_lea.vmem %s268_s1, %s213_s8 }
   0xe   : > { %v112_v0 = vld [vmem:[%s107_s11] sm:$0xff] }
   0xf   : > { %v113_v1 = vmul.f32 %v112_v0, %v112_v0 }
  0x11   : > { %v115_v2 = vsel %vm114_vm0, %v113_v1, 0.0 }
  0x12   : > { %116 = vadd.xlane.f32.xlu0 %v115_v2 }
  0x85   : > { %v117_v3 = vpop.xlane.xlu0 %116 }
  0x86   : > { %v118_v4 = vmax.f32 %v117_v3, 1e-24 }
  0x88   : > { %227 = vrsqrt.f32 %v118_v4  ;;  %vm125_vm2 = vweird.f32 %v118_v4 }
  0x8e   : > { %v228_v5 = vpop.eup %227 }
  0x8f   : > { %v120_v6 = vmul.f32 %v228_v5, %v118_v4  ;;  %vm126_vm1 = vweird.f32 %v228_v5 }
  0x90   : > { %vm127_vm3 = vmor %vm125_vm2, %vm126_vm1 }
  0x91   : > { %v121_v7 = vmul.f32 %v228_v5, %v120_v6 }
  0x93   : > { %v122_v8 = vmul.f32 0.5, %v121_v7 }
  0x95   : > { %v123_v9 = vsub.f32 1.5, %v122_v8 }
  0x97   : > { %v124_v10 = vmul.f32 %v228_v5, %v123_v9 }
  0x99   : > { %v128_v11 = vsel %vm127_vm3, %v228_v5, %v124_v10 }
  0x9a   : > { %v129_v12 = vmul.f32 %v128_v11, %v112_v0 }
  0x9c   : > { %215 = vmatpush.xpose.msk.msra.mxu0 %vm114_vm0, %v129_v12 }
  0x9f   : > { %216 = vmatmul.msk.f32.vlgmr.msra.gmra.mxu0 %vm114_vm0, %v129_v12 }
 0x11c   : > { %v150_v13 = vpop.f32.mrf.mxu0 }
 0x11d   : > { %154 = vst.msk [vmem:[%s111_s14] sm:$0xff] %vm153_vm4, %v150_v13 }
 0x11e PF: > { %s11_s6 = sadd.s32 1, %s235_s6  }
 0x11f   : > { %p8_p4 = scmp.ge.s32.totalorder %s11_s6, 4  }
 0x121   :  { %10 = sbr.rel (!%p8_p4) target bundleno = 1 (0x1), region = 54 }

// kernel: nformer_forward.17
= control target key start
LH: loop header
LB: loop body
LE: loop exit
PB: predicated region body
PF: predicated region fallthrough
CT: control target
= control target key end

     0   :  { %vm19_vm0 = vcmask 785408   ;;  %v108_v1 = vmov 0.0   ;;  %vm47_vm1 = vcmask 261120   ;;  %vm83_vm2 = vcmask 781312   ;;  %s151_s1 = inlined_call_operand.vmem [shape: bf16[32,96], index: 1, kind: input, shape index: {}]   ;;  %s152_s2 = inlined_call_operand.vmem [shape: f32[1,96], index: 2, kind: input, shape index: {}]   ;;  %s153_s0 = inlined_call_operand.vmem [shape: bf16[16,32], index: 0, kind: input, shape index: {}]   ;;  %s154_s3 = inlined_call_operand.vmem [shape: bf16[16,96], index: 3, kind: output, shape index: {}]  }
   0x1   :  { %v105_v0 = vld [vmem:[%s151_s1 + $0x8] sm:$0xff]  ;;  %20 = vst.msk [vmem:[#allocation2] sm:$0xff] %vm19_vm0, %v108_v1  ;;  %v104_v2 = vld [vmem:[%s151_s1] sm:$0xff] }
   0x2   :  { %21 = vst.msk [vmem:[#allocation2 + $0x8] sm:$0xff] %vm19_vm0, %v108_v1  ;;  %57 = vmatpush.bf16.msra.mxu0 %v105_v0  ;;  %v103_v3 = vld [vmem:[%s153_s0] sm:$0xff] }
   0x3   :  { %v107_v8 = vld [vmem:[%s152_s2] ss:$0 sm:$0xff] }
   0x6   :  { %58 = vmatpush.bf16.msra.mxu0 %v104_v2 }
   0x8   :  { %v22_v4 = vld [vmem:[#allocation2] sm:$0xff] }
   0x9   :  { %102 = vmatmul.msk.bf16.vlgmr.msra.gmra.mxu0 %vm47_vm1, %v103_v3  ;;  %v23_v7 = vld [vmem:[#allocation2 + $0x8] sm:$0xff] }
  0x86   :  { %v60_v5 = vpop.f32.mrf.mxu0 }
  0x87   :  { %v65_v6 = vadd.f32 %v60_v5, %v22_v4 }
  0x89   :  { %68 = vst.msk [vmem:[#allocation2] sm:$0xff] %vm19_vm0, %v65_v6 }
  0x8e   :  { %v62_v9 = vpop.f32.mrf.mxu0 }
  0x8f   :  { %v66_v10 = vadd.f32 %v62_v9, %v23_v7 }
  0x90   :  { %v73_v11 = vld [vmem:[#allocation2] sm:$0xff] }
  0x91   :  { %v79_v12 = vadd.f32 %v107_v8, %v73_v11  ;;  %69 = vst.msk [vmem:[#allocation2 + $0x8] sm:$0xff] %vm19_vm0, %v66_v10 }
  0x93   :  { %v81_v13 = vpack.c.bf16 %v79_v12, %v79_v12 }
  0x95   :  { %84 = vst.msk [vmem:[%s154_s3] sm:$0xf] %vm83_vm2, %v81_v13 }
  0x98   :  { %v74_v14 = vld [vmem:[#allocation2 + $0x8] sm:$0xff] }
  0x99   :  { %v80_v15 = vadd.f32 %v107_v8, %v74_v14 }
  0x9b   :  { %v82_v16 = vpack.c.bf16 %v80_v15, %v80_v15 }
  0x9d   :  { %85 = vst.msk [vmem:[%s154_s3 + $0x4] sm:$0xf] %vm83_vm2, %v82_v16 }

// kernel: nformer_forward.20
= control target key start
LH: loop header
LB: loop body
LE: loop exit
PB: predicated region body
PF: predicated region fallthrough
CT: control target
= control target key end

     0   :  { %vm46_vm0 = vcmask 261120   ;;  %s166_s1 = inlined_call_operand.vmem [shape: bf16[32,128], index: 1, kind: input, shape index: {}]   ;;  %s167_s2 = inlined_call_operand.vmem [shape: f32[1,128], index: 2, kind: input, shape index: {}]   ;;  %s168_s0 = inlined_call_operand.vmem [shape: bf16[16,32], index: 0, kind: input, shape index: {}]   ;;  %s169_s3 = inlined_call_operand.vmem [shape: bf16[16,128], index: 3, kind: output, shape index: {}]  }
   0x1   :  { %v120_v0 = vld [vmem:[%s166_s1 + $0x8] sm:$0xff]  ;;  %v119_v1 = vld [vmem:[%s166_s1] sm:$0xff] }
   0x2   :  { %56 = vmatpush.bf16.msra.mxu0 %v120_v0  ;;  %v118_v2 = vld [vmem:[%s168_s0] sm:$0xff] }
   0x3   :  { %v126_v3 = vld [vmem:[%s167_s2] ss:$0 sm:$0xff] }
   0x6   :  { %57 = vmatpush.bf16.msra.mxu0 %v119_v1 }
   0x9   :  { %117 = vmatmul.msk.bf16.vlgmr.msra.gmra.mxu0 %vm46_vm0, %v118_v2 }
  0x86   :  { %v59_v4 = vpop.f32.mrf.mxu0 }
  0x87   :  { %v77_v5 = vadd.f32 %v126_v3, %v59_v4 }
  0x89   :  { %v81_v6 = vmul.f32 0.044715, %v77_v5  ;;  %v79_v21 = vmul.f32 0.5, %v77_v5 }
  0x8b   :  { %v83_v7 = vmul.f32 %v81_v6, %v77_v5 }
  0x8d   :  { %v85_v8 = vmul.f32 %v83_v7, %v77_v5 }
  0x8e   :  { %v61_v9 = vpop.f32.mrf.mxu0 }
  0x8f   :  { %v87_v10 = vadd.f32 %v85_v8, %v77_v5  ;;  %v78_v11 = vadd.f32 %v126_v3, %v61_v9 }
  0x91   :  { %v82_v12 = vmul.f32 0.044715, %v78_v11  ;;  %v89_v13 = vmul.f32 0.7978846, %v87_v10  ;;  %v80_v22 = vmul.f32 0.5, %v78_v11 }
  0x93   :  { %v84_v14 = vmul.f32 %v82_v12, %v78_v11  ;;  %127 = vtanh.f32 %v89_v13 }
  0x95   :  { %v86_v15 = vmul.f32 %v84_v14, %v78_v11 }
  0x97   :  { %v88_v16 = vadd.f32 %v86_v15, %v78_v11 }
  0x99   :  { %v90_v17 = vmul.f32 0.7978846, %v88_v16  ;;  %v128_v18 = vpop.eup %127 }
  0x9a   :  { %v93_v19 = vadd.f32 1.0, %v128_v18 }
  0x9b   :  { %129 = vtanh.f32 %v90_v17 }
  0x9c   :  { %v95_v24 = vmul.f32 %v93_v19, %v79_v21 }
  0xa1   :  { %v130_v20 = vpop.eup %129 }
  0xa2   :  { %v94_v23 = vadd.f32 1.0, %v130_v20 }
  0xa4   :  { %v96_v25 = vmul.f32 %v94_v23, %v80_v22 }
  0xa6   :  { %v124_v26 = vpack.c.bf16 %v96_v25, %v95_v24 }
  0xa8   :  { %125 = vst [vmem:[%s169_s3] sm:$0xff] %v124_v26  }

// kernel: nformer_forward.19
= control target key start
LH: loop header
LB: loop body
LE: loop exit
PB: predicated region body
PF: predicated region fallthrough
CT: control target
= control target key end

     0   :  { %vm30_vm0 = vcmask 261120   ;;  %v200_v1 = vmov 0.0   ;;  %v201_v21 = vmov 32.0   ;;  %vm162_vm6 = vcmask 257024   ;;  %s289_s1 = inlined_call_operand.vmem [shape: bf16[32,32], index: 1, kind: input, shape index: {}]   ;;  %s290_s0 = inlined_call_operand.vmem [shape: bf16[16,32], index: 0, kind: input, shape index: {}]   ;;  %s291_s2 = inlined_call_operand.vmem [shape: f32[1,32], index: 2, kind: input, shape index: {}]   ;;  %s292_s3 = inlined_call_operand.vmem [shape: f32[16,32], index: 3, kind: input, shape index: {}]   ;;  %s293_s4 = inlined_call_operand.vmem [shape: f32[1,32], index: 4, kind: input, shape index: {}]   ;;  %s294_s5 = inlined_call_operand.vmem [shape: f32[1,32], index: 5, kind: input, shape index: {}]   ;;  %s295_s6 = inlined_call_operand.vmem [shape: f32[16,32], index: 6, kind: output, shape index: {0}]   ;;  %s296_s7 = inlined_call_operand.vmem [shape: bf16[16,32], index: 7, kind: output, shape index: {1}]  }
   0x1   :  { %v188_v0 = vld [vmem:[%s289_s1 + $0x8] sm:$0xff]  ;;  %31 = vst.msk [vmem:[#allocation2] sm:$0xff] %vm30_vm0, %v200_v1  ;;  %v187_v2 = vld [vmem:[%s289_s1] sm:$0xff]  ;;  %194 = vrcp.f32 %v201_v21 }
   0x2   :  { %32 = vst.msk [vmem:[#allocation2 + $0x8] sm:$0xff] %vm30_vm0, %v200_v1  ;;  %68 = vmatpush.bf16.msra.mxu0 %v188_v0  ;;  %v186_v3 = vld [vmem:[%s290_s0] sm:$0xff]  ;;  %v92_v17 = vld [vmem:[%s292_s3 + $0x8] sm:$0xff] }
   0x3   :  { %v191_v8 = vld [vmem:[%s291_s2] ss:$0 sm:$0xff] }
   0x4   :  { %v91_v12 = vld [vmem:[%s292_s3] sm:$0xff] }
   0x5   :  { %v192_v52 = vld [vmem:[%s293_s4] ss:$0 sm:$0xff] }
   0x6   :  { %69 = vmatpush.bf16.msra.mxu0 %v187_v2  ;;  %v193_v55 = vld [vmem:[%s294_s5] ss:$0 sm:$0xff] }
   0x7   :  { %v195_v22 = vpop.eup %194 }
   0x8   :  { %v33_v4 = vld [vmem:[#allocation2] sm:$0xff]  ;;  %v102_v23 = vmul.f32 32.0, %v195_v22  ;;  %vm106_vm1 = vweird.f32 %v195_v22 }
   0x9   :  { %185 = vmatmul.msk.bf16.vlgmr.msra.gmra.mxu0 %vm30_vm0, %v186_v3  ;;  %v34_v7 = vld [vmem:[#allocation2 + $0x8] sm:$0xff] }
   0xa   :  { %v103_v24 = vsub.f32 1.0, %v102_v23 }
   0xc   :  { %v104_v25 = vmul.f32 %v195_v22, %v103_v24 }
   0xe   :  { %v105_v26 = vadd.f32 %v195_v22, %v104_v25 }
  0x10   :  { %v107_v27 = vsel %vm106_vm1, %v195_v22, %v105_v26 }
  0x86   :  { %v71_v5 = vpop.f32.mrf.mxu0 }
  0x87   :  { %v76_v6 = vadd.f32 %v71_v5, %v33_v4 }
  0x89   :  { %78 = vst.msk [vmem:[#allocation2] sm:$0xff] %vm30_vm0, %v76_v6 }
  0x8e   :  { %v73_v9 = vpop.f32.mrf.mxu0 }
  0x8f   :  { %v77_v10 = vadd.f32 %v73_v9, %v34_v7 }
  0x90   :  { %v83_v11 = vld [vmem:[#allocation2] sm:$0xff] }
  0x91   :  { %79 = vst.msk [vmem:[#allocation2 + $0x8] sm:$0xff] %vm30_vm0, %v77_v10  ;;  %v89_v13 = vadd.f32 %v191_v8, %v83_v11 }
  0x93   :  { %v93_v14 = vadd.f32 %v91_v12, %v89_v13 }
  0x95   :  { %v95_v15 = vsel %vm30_vm0, %v93_v14, 0.0 }
  0x96   :  { %96 = vadd.xlane.f32.xlu0 %v95_v15 }
  0x98   :  { %v84_v16 = vld [vmem:[#allocation2 + $0x8] sm:$0xff] }
  0x99   :  { %v90_v18 = vadd.f32 %v191_v8, %v84_v16 }
  0x9b   :  { %v94_v19 = vadd.f32 %v92_v17, %v90_v18 }
  0x9d   :  { %v98_v20 = vsel %vm30_vm0, %v94_v19, 0.0 }
  0x9e   :  { %99 = vadd.xlane.f32.xlu0 %v98_v20 }
 0x109   :  { %v97_v28 = vpop.xlane.xlu0 %96 }
 0x10a   :  { %v108_v29 = vmul.f32 %v107_v27, %v97_v28 }
 0x10c   :  { %v110_v30 = vsub.f32 %v93_v14, %v108_v29 }
 0x10e   :  { %v112_v31 = vmul.f32 %v110_v30, %v110_v30 }
 0x110   :  { %v114_v32 = vsel %vm30_vm0, %v112_v31, 0.0 }
 0x111   :  { %115 = vadd.xlane.f32.xlu1 %v114_v32  ;;  %v100_v33 = vpop.xlane.xlu0 %99 }
 0x112   :  { %v109_v34 = vmul.f32 %v107_v27, %v100_v33 }
 0x114   :  { %v111_v35 = vsub.f32 %v94_v19, %v109_v34 }
 0x116   :  { %v113_v36 = vmul.f32 %v111_v35, %v111_v35 }
 0x118   :  { %v117_v37 = vsel %vm30_vm0, %v113_v36, 0.0 }
 0x119   :  { %118 = vadd.xlane.f32.xlu1 %v117_v37 }
 0x184   :  { %v116_v38 = vpop.xlane.xlu1 %115 }
 0x185   :  { %v120_v39 = vmul.f32 %v116_v38, %v107_v27 }
 0x187   :  { %v123_v40 = vadd.f32 1e-05, %v120_v39 }
 0x189   :  { %196 = vrsqrt.f32 %v123_v40  ;;  %vm131_vm3 = vweird.f32 %v123_v40 }
 0x18c   :  { %v119_v41 = vpop.xlane.xlu1 %118 }
 0x18d   :  { %v121_v42 = vmul.f32 %v119_v41, %v107_v27 }
 0x18f   :  { %v197_v43 = vpop.eup %196  ;;  %v124_v44 = vadd.f32 1e-05, %v121_v42 }
 0x190   :  { %v126_v45 = vmul.f32 %v197_v43, %v123_v40  ;;  %vm132_vm2 = vweird.f32 %v197_v43 }
 0x191   :  { %198 = vrsqrt.f32 %v124_v44  ;;  %vm133_vm4 = vmor %vm131_vm3, %vm132_vm2  ;;  %vm141_vm7 = vweird.f32 %v124_v44 }
 0x192   :  { %v127_v46 = vmul.f32 %v197_v43, %v126_v45 }
 0x194   :  { %v128_v47 = vmul.f32 0.5, %v127_v46 }
 0x196   :  { %v129_v48 = vsub.f32 1.5, %v128_v47 }
 0x197   :  { %v199_v49 = vpop.eup %198 }
 0x198   :  { %v130_v50 = vmul.f32 %v197_v43, %v129_v48  ;;  %v136_v51 = vmul.f32 %v199_v49, %v124_v44  ;;  %vm142_vm5 = vweird.f32 %v199_v49 }
 0x199   :  { %vm143_vm8 = vmor %vm141_vm7, %vm142_vm5 }
 0x19a   :  { %v134_v53 = vsel %vm133_vm4, %v197_v43, %v130_v50  ;;  %v137_v54 = vmul.f32 %v199_v49, %v136_v51 }
 0x19b   :  { %v145_v56 = vmul.f32 %v134_v53, %v110_v30 }
 0x19c   :  { %v138_v57 = vmul.f32 0.5, %v137_v54 }
 0x19d   :  { %v150_v58 = vmul.f32 %v192_v52, %v145_v56 }
 0x19e   :  { %v139_v59 = vsub.f32 1.5, %v138_v57 }
 0x19f   :  { %v156_v60 = vadd.f32 %v193_v55, %v150_v58 }
 0x1a0   :  { %v140_v61 = vmul.f32 %v199_v49, %v139_v59 }
 0x1a1   :  { %158 = vst.msk [vmem:[%s295_s6] sm:$0xff] %vm30_vm0, %v156_v60  ;;  %v160_v62 = vpack.c.bf16 %v156_v60, %v156_v60 }
 0x1a2   :  { %v144_v63 = vsel %vm143_vm8, %v199_v49, %v140_v61 }
 0x1a3   :  { %163 = vst.msk [vmem:[%s296_s7] sm:$0xf] %vm162_vm6, %v160_v62  ;;  %v146_v0 = vmul.f32 %v144_v63, %v111_v35 }
 0x1a5   :  { %v151_v1 = vmul.f32 %v192_v52, %v146_v0 }
 0x1a7   :  { %v157_v2 = vadd.f32 %v193_v55, %v151_v1 }
 0x1a9   :  { %159 = vst.msk [vmem:[%s295_s6 + $0x8] sm:$0xff] %vm30_vm0, %v157_v2  ;;  %v161_v3 = vpack.c.bf16 %v157_v2, %v157_v2 }
 0x1ab   :  { %164 = vst.msk [vmem:[%s296_s7 + $0x4] sm:$0xf] %vm162_vm6, %v161_v3 }

// kernel: nformer_forward.18
= control target key start
LH: loop header
LB: loop body
LE: loop exit
PB: predicated region body
PF: predicated region fallthrough
CT: control target
= control target key end

     0   :  { %s751_s12 = smov 0   ;;  %s848_s0 = inlined_call_operand.vmem [shape: s32[2,8,4], index: 0, kind: input, shape index: {}]   ;;  %s849_s1 = inlined_call_operand.vmem [shape: s32[2,4,8], index: 1, kind: input, shape index: {}]   ;;  %s850_s2 = inlined_call_operand.vmem [shape: bf16[2,8,96], index: 2, kind: input, shape index: {}]   ;;  %s851_s3 = inlined_call_operand.vmem [shape: bf16[2,8,32], index: 3, kind: output, shape index: {}]  }
   0x1 LB: > { %s639_s13 = sadd.s32 4294967295, %s711_s12   ;;  %p643_p0 = scmp.ge.s32.totalorder %s711_s12, 1  ;;  %s711_s12 = sphi %s751_s12, %s13_s12  }
   0x2   : > { %p154_p1 = scmp.lt.s32.totalorder %s711_s12, 3 }
   0x4   : > { %p155_p2 = pnand %p643_p0, %p154_p1 }
   0x5   : > { %p184_p3 = scmp.lt.s32.totalorder (!%p155_p2), %s639_s13, 1  ;;  %s715_s22 = smov (!%p155_p2), 96  }
   0x6   : > { %158 = sbr.rel (%p155_p2) target bundleno = 933 (0x3a5), region = 32  ;;  %s717_s23 = smov (!%p155_p2), 88  }
   0x7   : > { %s718_s24 = smov (!%p155_p2), 120   ;;  %s719_s25 = smov (!%p155_p2), 64  }
   0x8   : > { %s720_s26 = smov (!%p155_p2), 72   ;;  %s721_s27 = smov (!%p155_p2), 104  }
   0x9   : > { %s722_s28 = smov (!%p155_p2), 56   ;;  %s724_s29 = smov (!%p155_p2), 80  }
   0xa   : > { %s725_s30 = smov (!%p155_p2), 112   ;;  %s726_s7 = smov (!%p155_p2), 48  }
   0xb   : > { %v713_v0 = vmov 1   ;;  %v714_v1 = vmov 0   ;;  %s859_s13 = smov (!%p184_p3, %s639_s13), 1  ;;  %v716_v7 = vmov 2   ;;  %vm244_vm0 = vcmask 64512   ;;  %s727_s11 = smov 40  }
   0xc   : > { %685 = vset.pattern.permute.xlu1 %v713_v0  ;;  %684 = vset.pattern.permute.xlu0 %v714_v1  ;;  %s644_s14 = sshll.u32 %s859_s13, 3  ;;  %s759_s15 = sshll.u32 %s859_s13, 2  ;;  %v203_v14 = vlaneseq  ;;  %v723_v15 = vmov 3  }
   0xd   : > { %s187_s18 = scalar_lea.vmem %s848_s0, %s644_s14  ;;  %s768_s21 = scalar_lea.vmem %s850_s2, %s759_s15  ;;  %687 = vset.pattern.permute.xlu2 %v723_v15 }
   0xe   : > { %v201_v2 = vld [vmem:[%s187_s18] sm:$0xff]  ;;  %v204_v18 = vand.u32 127, %v203_v14  ;;  %s191_s6 = scalar_lea.vmem %s849_s1, %s759_s15  ;;  %v206_v34 = vshrl.u32 %v203_v14, 7  ;;  %s827_s10 = scalar_lea.vmem %s851_s3, %s759_s15 }
   0xf   : > { %214 = vperm.xlu1 %685, %v201_v2   ;;  %v238_v3 = vld [vmem:[%s768_s21] sm:$0xf]  ;;  %230 = vperm.xlu2 %687, %v201_v2   ;;  %s728_s13 = smov 8   ;;  %s729_s14 = smov 16  }
  0x10   : > { %v240_v4 = vunpack.c.l.b16 %v238_v3  ;;  %v316_v6 = vld [vmem:[%s768_s21] sm:$0xf]  ;;  %s730_s15 = smov 24  }
  0x11   : > { %v318_v8 = vunpack.c.l.b16 %v316_v6  ;;  %v480_v10 = vld [vmem:[%s768_s21] sm:$0xf] }
  0x12   : > { %v241_v5 = vpack.c.b16 %v240_v4, %v240_v4  ;;  %v482_v11 = vunpack.c.l.b16 %v480_v10  ;;  %v398_v20 = vld [vmem:[%s768_s21] sm:$0xf] }
  0x13   : > { %v319_v9 = vpack.c.b16 %v318_v8, %v318_v8  ;;  %v400_v21 = vunpack.c.l.b16 %v398_v20  ;;  %v202_v33 = vld [vmem:[%s191_s6] sm:$0xf] }
  0x14   : > { %242 = vrot.lane.b32.xlu0 %v241_v5, %s715_s22  ;;  %v773_v12 = vpack.c.b16 %v482_v11, %v482_v11  ;;  %v211_v35 = vperm.slane %v202_v33, 0  ;;  %v218_v36 = vperm.slane %v202_v33, 1  ;;  %v226_v37 = vperm.slane %v202_v33, 2 }
  0x15   : > { %v401_v23 = vpack.c.b16 %v400_v21, %v400_v21  ;;  %v234_v38 = vperm.slane %v202_v33, 3 }
  0x16   : > { %vm212_vm6 = vcmp.eq.s32.totalorder %v206_v34, %v211_v35  ;;  %vm219_vm7 = vcmp.eq.s32.totalorder %v206_v34, %v218_v36  ;;  %vm227_vm9 = vcmp.eq.s32.totalorder %v206_v34, %v226_v37 }
  0x17   : > { %686 = vset.pattern.permute.xlu1 %v716_v7  ;;  %vm220_vm8 = vmor %vm212_vm6, %vm219_vm7  ;;  %vm235_vm11 = vcmp.eq.s32.totalorder %v206_v34, %v234_v38  ;;  %vm314_vm6 = vcmask 60416  }
  0x18   : > { %222 = vperm.xlu1 %686, %v201_v2   ;;  %vm228_vm10 = vmor %vm220_vm8, %vm227_vm9 }
  0x19   : > { %vm236_vm13 = vmor %vm228_vm10, %vm235_vm11 }
  0x1c   : > { %208 = vperm.xlu0 %684, %v201_v2  }
  0x20   : > { %322 = vrot.lane.b32.xlu1 %v319_v9, %s717_s23 }
  0x24   : > { %320 = vrot.lane.b32.xlu0 %v319_v9, %s718_s24 }
  0x25   : > { %688 = vset.pattern.permute.xlu0 %v723_v15 }
  0x28   : > { %275 = vrot.lane.b32.xlu1 %v241_v5, %s719_s25 }
  0x2c   : > { %404 = vrot.lane.b32.xlu0 %v401_v23, %s724_s29 }
  0x30   : > { %486 = vrot.lane.b32.xlu1 %v773_v12, %s720_s26 }
  0x34   : > { %402 = vrot.lane.b32.xlu0 %v401_v23, %s725_s30 }
  0x38   : > { %484 = vrot.lane.b32.xlu1 %v773_v12, %s721_s27 }
  0x40   : > { %354 = vrot.lane.b32.xlu1 %v319_v9, %s722_s28 }
  0x69   : > { %v231_v39 = vpop.permute.xlu2 %230 }
  0x6a   : > { %vm232_vm12 = vcmp.eq.s32.totalorder %v204_v18, %v231_v39 }
  0x81   : > { %v215_v13 = vpop.permute.xlu1 %214 }
  0x82   : > { %vm216_vm1 = vcmp.eq.s32.totalorder %v204_v18, %v215_v13 }
  0x86   : > { %v243_v16 = vpop.permute.xlu0 %242 }
  0x87   : > { %v249_v17 = vsel %vm244_vm0, %v243_v16, 0 }
  0x88   : > { %258 = vmatpush.bf16.xpose.msra.mxu0 %v249_v17 }
  0x8a   : > { %v223_v19 = vpop.permute.xlu1 %222 }
  0x8b   : > { %vm224_vm4 = vcmp.eq.s32.totalorder %v204_v18, %v223_v19 }
  0x8e   : > { %v209_v22 = vpop.permute.xlu0 %208 }
  0x8f   : > { %648 = vmatmul.msk.bf16.vlgmr.msra.gmra.mxu0 %vm244_vm0, %v238_v3  ;;  %vm210_vm2 = vcmp.eq.s32.totalorder %v204_v18, %v209_v22 }
  0x90   : > { %vm780_vm3 = vmor %vm210_vm2, %vm216_vm1  ;;  %vm280_vm1 = vcmask 1043456  }
  0x91   : > { %vm790_vm5 = vmor %vm780_vm3, %vm224_vm4 }
  0x92   : > { %v323_v25 = vpop.permute.xlu1 %322  ;;  %vm233_vm14 = vmor %vm790_vm5, %vm232_vm12 }
  0x93   : > { %v328_v26 = vsel %vm244_vm0, %v323_v25, 0  ;;  %vm800_vm15 = vmand %vm233_vm14, %vm236_vm13 }
  0x94   : > { %337 = vmatpush.bf16.xpose.msra.mxu2 %v328_v26 }
  0x96   : > { %v321_v27 = vpop.permute.xlu0 %320 }
  0x9a   : > { %v276_v28 = vpop.permute.xlu1 %275 }
  0x9b   : > { %650 = vmatmul.msk.bf16.vlgmr.msra.gmra.mxu2 %vm244_vm0, %v321_v27  ;;  %v282_v53 = vsel %vm280_vm1, %v276_v28, 0 }
  0x9c   : > { %291 = vmatpush.bf16.msra.mxu1 %v282_v53 }
  0x9e   : > { %v405_v54 = vpop.permute.xlu0 %404 }
  0x9f   : > { %v410_v55 = vsel %vm244_vm0, %v405_v54, 0 }
  0xa0   : > { %419 = vmatpush.bf16.xpose.msrb.mxu1 %v410_v55 }
  0xa2   : > { %v487_v29 = vpop.permute.xlu1 %486 }
  0xa3   : > { %v492_v30 = vsel %vm244_vm0, %v487_v29, 0 }
  0xa4   : > { %501 = vmatpush.bf16.xpose.msrb.mxu0 %v492_v30 }
  0xa6   : > { %v403_v61 = vpop.permute.xlu0 %402 }
  0xaa   : > { %v485_v31 = vpop.permute.xlu1 %484 }
  0xab   : > { %654 = vmatmul.msk.bf16.vlgmr.msrb.gmra.mxu0 %vm244_vm0, %v485_v31 }
  0xb2   : > { %v355_v56 = vpop.permute.xlu1 %354 }
  0xb3   : > { %v360_v57 = vsel %vm280_vm1, %v355_v56, 0 }
  0xb4   : > { %369 = vmatpush.bf16.msra.mxu3 %v360_v57 }
 0x10c   : > { %v260_v41 = vpop.f32.mrf.mxu0 }
 0x10d   : > { %v264_v42 = vsel %vm800_vm15, %v260_v41, -1e+09 }
 0x10e   : > { %v265_v43 = vsel %vm244_vm0, %v264_v42, -inf }
 0x10f   : > { %266 = vmax.xlane.f32.xlu2 %v265_v43 }
 0x114   : > { %v262_v44 = vpop.f32.mrf.mxu0 }
 0x11e   : > { %v339_v45 = vpop.f32.mrf.mxu2 }
 0x11f   : > { %v343_v46 = vsel %vm800_vm15, %v339_v45, -1e+09 }
 0x120   : > { %v344_v47 = vsel %vm244_vm0, %v343_v46, -inf }
 0x121   : > { %345 = vmax.xlane.f32.xlu0 %v344_v47 }
 0x126   : > { %v341_v48 = vpop.f32.mrf.mxu2 }
 0x127   : > { %436 = vrot.lane.b32.xlu2 %v401_v23, %s726_s7 }
 0x128   : > { %v503_v49 = vpop.f32.mrf.mxu0 }
 0x129   : > { %v812_v50 = vsel %vm800_vm15, %v503_v49, -1e+09 }
 0x12a   : > { %v508_v51 = vsel %vm244_vm0, %v812_v50, -inf }
 0x12b   : > { %509 = vmax.xlane.f32.xlu1 %v508_v51 }
 0x130   : > { %v505_v52 = vpop.f32.mrf.mxu0 }
 0x182   : > { %v267_v58 = vpop.xlane.xlu2 %266 }
 0x183   : > { %v268_v59 = vsub.f32 %v264_v42, %v267_v58 }
 0x185   : > { %v269_v60 = vmul.f32 1.442695, %v268_v59 }
 0x187   : > { %689 = vpow2.f32 %v269_v60 }
 0x18a   : > { %v437_v23 = vpop.permute.xlu2 %436 }
 0x18b   : > { %v442_v24 = vsel %vm280_vm1, %v437_v23, 0 }
 0x18c   : > { %451 = vmatpush.bf16.msrb.mxu3 %v442_v24 }
 0x18d   : > { %v690_v62 = vpop.eup %689 }
 0x18e   : > { %v271_v63 = vsel %vm244_vm0, %v690_v62, 0.0  ;;  %v274_v0 = vpack.c.bf16 %v690_v62, %v690_v62 }
 0x18f   : > { %272 = vadd.xlane.f32.xlu1 %v271_v63 }
 0x190   : > { %649 = vmatmul.msk.bf16.vlgmr.msra.gmra.mxu1 %vm244_vm0, %v274_v0 }
 0x194   : > { %v346_v1 = vpop.xlane.xlu0 %345 }
 0x195   : > { %v347_v2 = vsub.f32 %v343_v46, %v346_v1 }
 0x197   : > { %v348_v3 = vmul.f32 1.442695, %v347_v2 }
 0x199   : > { %691 = vpow2.f32 %v348_v3 }
 0x19e   : > { %v510_v6 = vpop.xlane.xlu1 %509 }
 0x19f   : > { %v692_v4 = vpop.eup %691  ;;  %v511_v32 = vsub.f32 %v812_v50, %v510_v6 }
 0x1a0   : > { %652 = vmatmul.msk.bf16.vlgmr.msrb.gmra.mxu1 %vm244_vm0, %v403_v61  ;;  %v353_v5 = vpack.c.bf16 %v692_v4, %v692_v4  ;;  %v350_v31 = vsel %vm244_vm0, %v692_v4, 0.0 }
 0x1a1   : > { %v512_v33 = vmul.f32 1.442695, %v511_v32 }
 0x1a2   : > { %651 = vmatmul.msk.bf16.vlgmr.msra.gmra.mxu3 %vm244_vm0, %v353_v5 }
 0x202   : > { %v273_v7 = vpop.xlane.xlu1 %272 }
 0x203   : > { %693 = vrcp.f32 %v273_v7  ;;  %v308_v13 = vand.u32 2147483648, %v273_v7  ;;  %v306_v15 = vand.u32 2147483647, %v273_v7  ;;  %vm302_vm3 = vweird.f32 %v273_v7 }
 0x204   : > { %695 = vpow2.f32 %v512_v33 }
 0x205   : > { %v309_v17 = vor.u32 1.1754944e-38, %v308_v13  ;;  %vm307_vm5 = vcmp.eq.f32.partialorder %v306_v15, 8.507059e+37 }
 0x209   : > { %v694_v8 = vpop.eup %693 }
 0x20a   : > { %v298_v9 = vmul.f32 %v694_v8, %v273_v7  ;;  %vm303_vm2 = vweird.f32 %v694_v8  ;;  %v696_v37 = vpop.eup %695 }
 0x20b   : > { %vm304_vm4 = vmor %vm302_vm3, %vm303_vm2  ;;  %v517_v41 = vpack.c.bf16 %v696_v37, %v696_v37  ;;  %v514_v43 = vsel %vm244_vm0, %v696_v37, 0.0  ;;  %vm396_vm3 = vcmask 126016  }
 0x20c   : > { %v299_v10 = vsub.f32 1.0, %v298_v9 }
 0x20d   : > { %v293_v11 = vpop.f32.mrf.mxu1 }
 0x20e   : > { %v300_v14 = vmul.f32 %v694_v8, %v299_v10 }
 0x210   : > { %v301_v16 = vadd.f32 %v694_v8, %v300_v14 }
 0x212   : > { %v305_v18 = vsel %vm304_vm4, %v694_v8, %v301_v16  ;;  %vm478_vm4 = vcmask 191616  }
 0x213   : > { %v310_v19 = vsel %vm307_vm5, %v309_v17, %v305_v18  ;;  %vm560_vm5 = vcmask 257216  }
 0x214   : > { %v312_v20 = vmul.f32 %v310_v19, %v293_v11 }
 0x215   : > { %v295_v21 = vpop.f32.mrf.mxu1 }
 0x216   : > { %v313_v22 = vpack.c.bf16 %v312_v20, %v312_v20 }
 0x218   : > { %315 = vst.msk [vmem:[%s827_s10] sm:$0xf] %vm314_vm6, %v313_v22 }
 0x21d   : > { %v421_v25 = vpop.f32.mrf.mxu1 }
 0x21e   : > { %v425_v26 = vsel %vm800_vm15, %v421_v25, -1e+09 }
 0x21f   : > { %v426_v27 = vsel %vm244_vm0, %v425_v26, -inf }
 0x220   : > { %427 = vmax.xlane.f32.xlu2 %v426_v27 }
 0x225   : > { %v423_v28 = vpop.f32.mrf.mxu1  ;;  %v371_v29 = vpop.f32.mrf.mxu3 }
 0x22d   : > { %v373_v30 = vpop.f32.mrf.mxu3 }
 0x238   : > { %518 = vrot.lane.b32.xlu2 %v773_v12, %s727_s11 }
 0x261   : > { %351 = vadd.xlane.f32.xlu2 %v350_v31 }
 0x293   : > { %v428_v34 = vpop.xlane.xlu2 %427 }
 0x294   : > { %v429_v35 = vsub.f32 %v425_v26, %v428_v34 }
 0x296   : > { %v430_v36 = vmul.f32 1.442695, %v429_v35 }
 0x298   : > { %697 = vpow2.f32 %v430_v36 }
 0x29b   : > { %v519_v38 = vpop.permute.xlu2 %518 }
 0x29c   : > { %v524_v39 = vsel %vm280_vm1, %v519_v38, 0 }
 0x29d   : > { %533 = vmatpush.bf16.msrb.mxu2 %v524_v39 }
 0x29e   : > { %v698_v40 = vpop.eup %697 }
 0x29f   : > { %v432_v12 = vsel %vm244_vm0, %v698_v40, 0.0  ;;  %v435_v42 = vpack.c.bf16 %v698_v40, %v698_v40 }
 0x2a0   : > { %433 = vadd.xlane.f32.xlu0 %v432_v12  ;;  %655 = vmatmul.msk.bf16.vlgmr.msrb.gmra.mxu2 %vm244_vm0, %v517_v41 }
 0x2a1   : > { %653 = vmatmul.msk.bf16.vlgmr.msrb.gmra.mxu3 %vm244_vm0, %v435_v42 }
 0x2a8   : > { %515 = vadd.xlane.f32.xlu0 %v514_v43 }
 0x2d4   : > { %v352_v44 = vpop.xlane.xlu2 %351 }
 0x2d5   : > { %699 = vrcp.f32 %v352_v44  ;;  %v386_v48 = vand.u32 2147483648, %v352_v44  ;;  %v384_v50 = vand.u32 2147483647, %v352_v44  ;;  %vm380_vm8 = vweird.f32 %v352_v44 }
 0x2d7   : > { %v387_v52 = vor.u32 1.1754944e-38, %v386_v48  ;;  %vm385_vm10 = vcmp.eq.f32.partialorder %v384_v50, 8.507059e+37 }
 0x2db   : > { %v700_v45 = vpop.eup %699 }
 0x2dc   : > { %v376_v46 = vmul.f32 %v700_v45, %v352_v44  ;;  %vm381_vm7 = vweird.f32 %v700_v45 }
 0x2dd   : > { %vm382_vm9 = vmor %vm380_vm8, %vm381_vm7 }
 0x2de   : > { %v377_v47 = vsub.f32 1.0, %v376_v46 }
 0x2e0   : > { %v378_v49 = vmul.f32 %v700_v45, %v377_v47 }
 0x2e2   : > { %v379_v51 = vadd.f32 %v700_v45, %v378_v49 }
 0x2e4   : > { %v383_v53 = vsel %vm382_vm9, %v700_v45, %v379_v51 }
 0x2e5   : > { %v388_v54 = vsel %vm385_vm10, %v387_v52, %v383_v53 }
 0x2e6   : > { %v390_v55 = vmul.f32 %v388_v54, %v371_v29 }
 0x2e8   : > { %v391_v56 = vpack.c.bf16 %v390_v55, %v390_v55 }
 0x2ea   : > { %393 = vrot.lane.b32.xlu0 %v391_v56, %s728_s13 }
 0x313   : > { %v434_v57 = vpop.xlane.xlu0 %433 }
 0x314   : > { %701 = vrcp.f32 %v434_v57  ;;  %v468_v62 = vand.u32 2147483648, %v434_v57  ;;  %v466_v0 = vand.u32 2147483647, %v434_v57  ;;  %vm462_vm11 = vweird.f32 %v434_v57 }
 0x316   : > { %v469_v3 = vor.u32 1.1754944e-38, %v468_v62  ;;  %vm467_vm13 = vcmp.eq.f32.partialorder %v466_v0, 8.507059e+37 }
 0x31a   : > { %v702_v58 = vpop.eup %701 }
 0x31b   : > { %v458_v59 = vmul.f32 %v702_v58, %v434_v57  ;;  %v516_v60 = vpop.xlane.xlu0 %515  ;;  %vm463_vm0 = vweird.f32 %v702_v58 }
 0x31c   : > { %703 = vrcp.f32 %v516_v60  ;;  %vm464_vm12 = vmor %vm462_vm11, %vm463_vm0  ;;  %v550_v11 = vand.u32 2147483648, %v516_v60  ;;  %v548_v14 = vand.u32 2147483647, %v516_v60  ;;  %vm544_vm15 = vweird.f32 %v516_v60 }
 0x31d   : > { %v459_v61 = vsub.f32 1.0, %v458_v59 }
 0x31e   : > { %v551_v17 = vor.u32 1.1754944e-38, %v550_v11  ;;  %vm549_vm2 = vcmp.eq.f32.partialorder %v548_v14, 8.507059e+37 }
 0x31f   : > { %v460_v63 = vmul.f32 %v702_v58, %v459_v61 }
 0x321   : > { %v461_v1 = vadd.f32 %v702_v58, %v460_v63 }
 0x322   : > { %v704_v2 = vpop.eup %703 }
 0x323   : > { %v540_v4 = vmul.f32 %v704_v2, %v516_v60  ;;  %v535_v5 = vpop.f32.mrf.mxu2  ;;  %v465_v6 = vsel %vm464_vm12, %v702_v58, %v461_v1  ;;  %vm545_vm14 = vweird.f32 %v704_v2 }
 0x324   : > { %v453_v7 = vpop.f32.mrf.mxu3  ;;  %v470_v8 = vsel %vm467_vm13, %v469_v3, %v465_v6  ;;  %vm546_vm1 = vmor %vm544_vm15, %vm545_vm14 }
 0x325   : > { %v541_v9 = vsub.f32 1.0, %v540_v4  ;;  %v472_v10 = vmul.f32 %v470_v8, %v453_v7 }
 0x327   : > { %v542_v13 = vmul.f32 %v704_v2, %v541_v9  ;;  %v473_v15 = vpack.c.bf16 %v472_v10, %v472_v10 }
 0x329   : > { %v543_v16 = vadd.f32 %v704_v2, %v542_v13  ;;  %475 = vrot.lane.b32.xlu1 %v473_v15, %s729_s14 }
 0x32b   : > { %v547_v18 = vsel %vm546_vm1, %v704_v2, %v543_v16  ;;  %v537_v19 = vpop.f32.mrf.mxu2 }
 0x32c   : > { %v552_v20 = vsel %vm549_vm2, %v551_v17, %v547_v18  ;;  %v455_v21 = vpop.f32.mrf.mxu3 }
 0x32d   : > { %v554_v22 = vmul.f32 %v552_v20, %v535_v5 }
 0x32f   : > { %v555_v23 = vpack.c.bf16 %v554_v22, %v554_v22 }
 0x331   : > { %557 = vrot.lane.b32.xlu0 %v555_v23, %s730_s15 }
 0x35c   : > { %v394_v24 = vpop.permute.xlu0 %393 }
 0x35d   : > { %397 = vst.msk [vmem:[%s827_s10] sm:$0xf] %vm396_vm3, %v394_v24 }
 0x39b   : > { %v476_v25 = vpop.permute.xlu1 %475 }
 0x39c   : > { %479 = vst.msk [vmem:[%s827_s10] sm:$0xf] %vm478_vm4, %v476_v25 }
 0x3a3   : > { %v558_v26 = vpop.permute.xlu0 %557 }
 0x3a4   : > { %561 = vst.msk [vmem:[%s827_s10] sm:$0xf] %vm560_vm5, %v558_v26 }
 0x3a5 PF: > { %s13_s12 = sadd.s32 1, %s711_s12  }
 0x3a6   : > { %p10_p4 = scmp.ge.s32.totalorder %s13_s12, 4  }
 0x3a8   :  { %12 = sbr.rel (!%p10_p4) target bundleno = 1 (0x1), region = 68 }

// kernel: nformer_forward.21
= control target key start
LH: loop header
LB: loop body
LE: loop exit
PB: predicated region body
PF: predicated region fallthrough
CT: control target
= control target key end

     0   :  { %vm29_vm0 = vcmask 261120   ;;  %v274_v2 = vmov 0.0   ;;  %v275_v27 = vmov 32.0   ;;  %vm207_vm6 = vcmask 257024   ;;  %s380_s1 = inlined_call_operand.vmem [shape: bf16[128,32], index: 1, kind: input, shape index: {}]   ;;  %s381_s0 = inlined_call_operand.vmem [shape: bf16[16,128], index: 0, kind: input, shape index: {}]   ;;  %s382_s2 = inlined_call_operand.vmem [shape: f32[1,32], index: 2, kind: input, shape index: {}]   ;;  %s383_s3 = inlined_call_operand.vmem [shape: f32[16,32], index: 3, kind: input, shape index: {}]   ;;  %s384_s4 = inlined_call_operand.vmem [shape: f32[1,32], index: 4, kind: input, shape index: {}]   ;;  %s385_s5 = inlined_call_operand.vmem [shape: f32[1,32], index: 5, kind: input, shape index: {}]   ;;  %s386_s6 = inlined_call_operand.vmem [shape: f32[16,32], index: 6, kind: output, shape index: {0}]   ;;  %s387_s7 = inlined_call_operand.vmem [shape: bf16[16,32], index: 7, kind: output, shape index: {1}]  }
   0x1   :  { %v262_v0 = vld [vmem:[%s380_s1 + $0x38] sm:$0xff]  ;;  %v261_v1 = vld [vmem:[%s380_s1 + $0x30] sm:$0xff]  ;;  %30 = vst.msk [vmem:[#allocation2] sm:$0xff] %vm29_vm0, %v274_v2  ;;  %v260_v3 = vld [vmem:[%s380_s1 + $0x28] sm:$0xff]  ;;  %268 = vrcp.f32 %v275_v27 }
   0x2   :  { %106 = vmatpush.bf16.msra.mxu0 %v262_v0  ;;  %31 = vst.msk [vmem:[#allocation2 + $0x8] sm:$0xff] %vm29_vm0, %v274_v2  ;;  %v259_v4 = vld [vmem:[%s380_s1 + $0x20] sm:$0xff]  ;;  %v258_v5 = vld [vmem:[%s380_s1 + $0x18] sm:$0xff]  ;;  %v257_v6 = vld [vmem:[%s380_s1 + $0x10] sm:$0xff] }
   0x3   :  { %v256_v7 = vld [vmem:[%s380_s1 + $0x8] sm:$0xff]  ;;  %v255_v8 = vld [vmem:[%s380_s1] sm:$0xff] }
   0x4   :  { %v254_v9 = vld [vmem:[%s381_s0] sm:$0xff]  ;;  %v137_v23 = vld [vmem:[%s383_s3 + $0x8] sm:$0xff] }
   0x5   :  { %v265_v14 = vld [vmem:[%s382_s2] ss:$0 sm:$0xff] }
   0x6   :  { %107 = vmatpush.bf16.msra.mxu0 %v261_v1  ;;  %v136_v18 = vld [vmem:[%s383_s3] sm:$0xff] }
   0x7   :  { %v269_v28 = vpop.eup %268  ;;  %v266_v58 = vld [vmem:[%s384_s4] ss:$0 sm:$0xff] }
   0x8   :  { %v32_v10 = vld [vmem:[#allocation2] sm:$0xff]  ;;  %v147_v29 = vmul.f32 32.0, %v269_v28  ;;  %vm151_vm1 = vweird.f32 %v269_v28 }
   0x9   :  { %v33_v13 = vld [vmem:[#allocation2 + $0x8] sm:$0xff]  ;;  %v267_v61 = vld [vmem:[%s385_s5] ss:$0 sm:$0xff] }
   0xa   :  { %108 = vmatpush.bf16.msra.mxu0 %v260_v3  ;;  %v148_v30 = vsub.f32 1.0, %v147_v29 }
   0xc   :  { %v149_v31 = vmul.f32 %v269_v28, %v148_v30 }
   0xe   :  { %109 = vmatpush.bf16.msra.mxu0 %v259_v4  ;;  %v150_v32 = vadd.f32 %v269_v28, %v149_v31 }
  0x10   :  { %v152_v33 = vsel %vm151_vm1, %v269_v28, %v150_v32 }
  0x12   :  { %110 = vmatpush.bf16.msra.mxu0 %v258_v5 }
  0x16   :  { %111 = vmatpush.bf16.msra.mxu0 %v257_v6 }
  0x1a   :  { %112 = vmatpush.bf16.msra.mxu0 %v256_v7 }
  0x1e   :  { %113 = vmatpush.bf16.msra.mxu0 %v255_v8 }
  0x21   :  { %114 = vmatmul.bf16.vlgmr.msra.gmra.mxu0 %v254_v9 }
  0x9e   :  { %v115_v11 = vpop.f32.mrf.mxu0 }
  0x9f   :  { %v120_v12 = vadd.f32 %v115_v11, %v32_v10 }
  0xa1   :  { %123 = vst.msk [vmem:[#allocation2] sm:$0xff] %vm29_vm0, %v120_v12 }
  0xa6   :  { %v117_v15 = vpop.f32.mrf.mxu0 }
  0xa7   :  { %v121_v16 = vadd.f32 %v117_v15, %v33_v13 }
  0xa8   :  { %v128_v17 = vld [vmem:[#allocation2] sm:$0xff] }
  0xa9   :  { %124 = vst.msk [vmem:[#allocation2 + $0x8] sm:$0xff] %vm29_vm0, %v121_v16  ;;  %v134_v19 = vadd.f32 %v265_v14, %v128_v17 }
  0xab   :  { %v138_v20 = vadd.f32 %v136_v18, %v134_v19 }
  0xad   :  { %v140_v21 = vsel %vm29_vm0, %v138_v20, 0.0 }
  0xae   :  { %141 = vadd.xlane.f32.xlu0 %v140_v21 }
  0xb0   :  { %v129_v22 = vld [vmem:[#allocation2 + $0x8] sm:$0xff] }
  0xb1   :  { %v135_v24 = vadd.f32 %v265_v14, %v129_v22 }
  0xb3   :  { %v139_v25 = vadd.f32 %v137_v23, %v135_v24 }
  0xb5   :  { %v143_v26 = vsel %vm29_vm0, %v139_v25, 0.0 }
  0xb6   :  { %144 = vadd.xlane.f32.xlu0 %v143_v26 }
 0x121   :  { %v142_v34 = vpop.xlane.xlu0 %141 }
 0x122   :  { %v153_v35 = vmul.f32 %v152_v33, %v142_v34 }
 0x124   :  { %v155_v36 = vsub.f32 %v138_v20, %v153_v35 }
 0x126   :  { %v157_v37 = vmul.f32 %v155_v36, %v155_v36 }
 0x128   :  { %v159_v38 = vsel %vm29_vm0, %v157_v37, 0.0 }
 0x129   :  { %160 = vadd.xlane.f32.xlu1 %v159_v38  ;;  %v145_v39 = vpop.xlane.xlu0 %144 }
 0x12a   :  { %v154_v40 = vmul.f32 %v152_v33, %v145_v39 }
 0x12c   :  { %v156_v41 = vsub.f32 %v139_v25, %v154_v40 }
 0x12e   :  { %v158_v42 = vmul.f32 %v156_v41, %v156_v41 }
 0x130   :  { %v162_v43 = vsel %vm29_vm0, %v158_v42, 0.0 }
 0x131   :  { %163 = vadd.xlane.f32.xlu1 %v162_v43 }
 0x19c   :  { %v161_v44 = vpop.xlane.xlu1 %160 }
 0x19d   :  { %v165_v45 = vmul.f32 %v161_v44, %v152_v33 }
 0x19f   :  { %v168_v46 = vadd.f32 1e-05, %v165_v45 }
 0x1a1   :  { %270 = vrsqrt.f32 %v168_v46  ;;  %vm176_vm3 = vweird.f32 %v168_v46 }
 0x1a4   :  { %v164_v47 = vpop.xlane.xlu1 %163 }
 0x1a5   :  { %v166_v48 = vmul.f32 %v164_v47, %v152_v33 }
 0x1a7   :  { %v271_v49 = vpop.eup %270  ;;  %v169_v50 = vadd.f32 1e-05, %v166_v48 }
 0x1a8   :  { %v171_v51 = vmul.f32 %v271_v49, %v168_v46  ;;  %vm177_vm2 = vweird.f32 %v271_v49 }
 0x1a9   :  { %272 = vrsqrt.f32 %v169_v50  ;;  %vm178_vm4 = vmor %vm176_vm3, %vm177_vm2  ;;  %vm186_vm7 = vweird.f32 %v169_v50 }
 0x1aa   :  { %v172_v52 = vmul.f32 %v271_v49, %v171_v51 }
 0x1ac   :  { %v173_v53 = vmul.f32 0.5, %v172_v52 }
 0x1ae   :  { %v174_v54 = vsub.f32 1.5, %v173_v53 }
 0x1af   :  { %v273_v55 = vpop.eup %272 }
 0x1b0   :  { %v175_v56 = vmul.f32 %v271_v49, %v174_v54  ;;  %v181_v57 = vmul.f32 %v273_v55, %v169_v50  ;;  %vm187_vm5 = vweird.f32 %v273_v55 }
 0x1b1   :  { %vm188_vm8 = vmor %vm186_vm7, %vm187_vm5 }
 0x1b2   :  { %v179_v59 = vsel %vm178_vm4, %v271_v49, %v175_v56  ;;  %v182_v60 = vmul.f32 %v273_v55, %v181_v57 }
 0x1b3   :  { %v190_v62 = vmul.f32 %v179_v59, %v155_v36 }
 0x1b4   :  { %v183_v63 = vmul.f32 0.5, %v182_v60 }
 0x1b5   :  { %v195_v0 = vmul.f32 %v266_v58, %v190_v62 }
 0x1b6   :  { %v184_v1 = vsub.f32 1.5, %v183_v63 }
 0x1b7   :  { %v201_v2 = vadd.f32 %v267_v61, %v195_v0 }
 0x1b8   :  { %v185_v3 = vmul.f32 %v273_v55, %v184_v1 }
 0x1b9   :  { %203 = vst.msk [vmem:[%s386_s6] sm:$0xff] %vm29_vm0, %v201_v2  ;;  %v205_v4 = vpack.c.bf16 %v201_v2, %v201_v2 }
 0x1ba   :  { %v189_v5 = vsel %vm188_vm8, %v273_v55, %v185_v3 }
 0x1bb   :  { %208 = vst.msk [vmem:[%s387_s7] sm:$0xf] %vm207_vm6, %v205_v4  ;;  %v191_v6 = vmul.f32 %v189_v5, %v156_v41 }
 0x1bd   :  { %v196_v7 = vmul.f32 %v266_v58, %v191_v6 }
 0x1bf   :  { %v202_v8 = vadd.f32 %v267_v61, %v196_v7 }
 0x1c1   :  { %204 = vst.msk [vmem:[%s386_s6 + $0x8] sm:$0xff] %vm29_vm0, %v202_v8  ;;  %v206_v9 = vpack.c.bf16 %v202_v8, %v202_v8 }
 0x1c3   :  { %209 = vst.msk [vmem:[%s387_s7 + $0x4] sm:$0xf] %vm207_vm6, %v206_v9 }

// kernel: nformer_forward.27
= control target key start
LH: loop header
LB: loop body
LE: loop exit
PB: predicated region body
PF: predicated region fallthrough
CT: control target
= control target key end

     0   :  { %vm12_vm0 = vcmask 253952   ;;  %vm18_vm1 = vcmask 261120   ;;  %v75_v0 = vmov 0.0   ;;  %s104_s0 = inlined_call_operand.vmem [shape: f32[16,32], index: 0, kind: input, shape index: {}]   ;;  %s105_s1 = inlined_call_operand.vmem [shape: f32[2,32], index: 1, kind: output, shape index: {}]  }
   0x1   :  { %13 = vst.msk [vmem:[#allocation2] sm:$0x1] %vm12_vm0, %v75_v0  ;;  %v15_v1 = vld [vmem:[%s104_s0] sm:$0xff]  ;;  %v16_v2 = vld [vmem:[%s104_s0 + $0x8] sm:$0xff] }
   0x2   :  { %14 = vst.msk [vmem:[#allocation3] sm:$0x1] %vm12_vm0, %v75_v0  ;;  %v19_v3 = vsel %vm18_vm1, %v15_v1, 0.0  ;;  %v20_v4 = vsel %vm18_vm1, %v16_v2, 0.0  ;;  %v32_v5 = vmul.f32 %v15_v1, %v15_v1  ;;  %v33_v6 = vmul.f32 %v16_v2, %v16_v2 }
   0x3   :  { %v21_v7 = vadd.f32 %v20_v4, %v19_v3 }
   0x4   :  { %v34_v8 = vsel %vm18_vm1, %v32_v5, 0.0  ;;  %v35_v9 = vsel %vm18_vm1, %v33_v6, 0.0 }
   0x5   :  { %v22_v10 = vrot.slane %v21_v7, 4  ;;  %v36_v11 = vadd.f32 %v35_v9, %v34_v8 }
   0x7   :  { %v23_v12 = vadd.f32 %v22_v10, %v21_v7  ;;  %v37_v13 = vrot.slane %v36_v11, 4 }
   0x8   :  { %v17_v20 = vld [vmem:[#allocation2] sm:$0x1] }
   0x9   :  { %v24_v14 = vrot.slane %v23_v12, 2  ;;  %v38_v15 = vadd.f32 %v37_v13, %v36_v11  ;;  %v31_v23 = vld [vmem:[#allocation3] sm:$0x1] }
   0xb   :  { %v25_v16 = vadd.f32 %v24_v14, %v23_v12  ;;  %v39_v17 = vrot.slane %v38_v15, 2 }
   0xd   :  { %v26_v18 = vrot.slane %v25_v16, 1  ;;  %v40_v19 = vadd.f32 %v39_v17, %v38_v15 }
   0xf   :  { %v27_v21 = vadd.f32 %v26_v18, %v25_v16  ;;  %v41_v22 = vrot.slane %v40_v19, 1 }
  0x11   :  { %v28_v24 = vadd.f32 %v27_v21, %v17_v20  ;;  %v42_v25 = vadd.f32 %v41_v22, %v40_v19 }
  0x13   :  { %30 = vst.msk [vmem:[#allocation2] sm:$0x1] %vm12_vm0, %v28_v24  ;;  %v43_v26 = vadd.f32 %v42_v25, %v31_v23 }
  0x15   :  { %44 = vst.msk [vmem:[#allocation3] sm:$0x1] %vm12_vm0, %v43_v26 }
  0x1a   :  { %v48_v27 = vld [vmem:[#allocation2] sm:$0x1] }
  0x1b   :  { %v49_v28 = vmul.f32 0.0625, %v48_v27 }
  0x1c   :  { %v50_v29 = vld [vmem:[#allocation3] sm:$0x1] }
  0x1d   :  { %v51_v30 = vmul.f32 0.0625, %v50_v29  ;;  %v52_v31 = vmul.f32 %v49_v28, %v49_v28  ;;  %55 = vst.msk [vmem:[%s105_s1] sm:$0x1] %vm12_vm0, %v49_v28 }
  0x1f   :  { %v53_v32 = vsub.f32 %v51_v30, %v52_v31 }
  0x21   :  { %v54_v33 = vmax.f32 %v53_v32, 0.0 }
  0x23   :  { %v56_v34 = vadd.f32 1e-05, %v54_v33 }
  0x25   :  { %73 = vrsqrt.f32 %v56_v34  ;;  %vm63_vm3 = vweird.f32 %v56_v34 }
  0x2b   :  { %v74_v35 = vpop.eup %73 }
  0x2c   :  { %v58_v36 = vmul.f32 %v74_v35, %v56_v34  ;;  %vm64_vm2 = vweird.f32 %v74_v35 }
  0x2d   :  { %vm65_vm4 = vmor %vm63_vm3, %vm64_vm2 }
  0x2e   :  { %v59_v37 = vmul.f32 %v74_v35, %v58_v36 }
  0x30   :  { %v60_v38 = vmul.f32 0.5, %v59_v37 }
  0x32   :  { %v61_v39 = vsub.f32 1.5, %v60_v38 }
  0x34   :  { %v62_v40 = vmul.f32 %v74_v35, %v61_v39 }
  0x36   :  { %v66_v41 = vsel %vm65_vm4, %v74_v35, %v62_v40 }
  0x37   :  { %67 = vst.msk [vmem:[%s105_s1 + $0x1] sm:$0x1] %vm12_vm0, %v66_v41 }

// kernel: nformer_forward.28
= control target key start
LH: loop header
LB: loop body
LE: loop exit
PB: predicated region body
PF: predicated region fallthrough
CT: control target
= control target key end

     0   :  { %vm41_vm0 = vcmask 257024   ;;  %s101_s0 = inlined_call_operand.vmem [shape: f32[16,32], index: 0, kind: input, shape index: {}]   ;;  %s102_s1 = inlined_call_operand.vmem [shape: f32[2,32], index: 1, kind: input, shape index: {}]   ;;  %s103_s2 = inlined_call_operand.vmem [shape: f32[1,32], index: 2, kind: input, shape index: {}]   ;;  %s104_s3 = inlined_call_operand.vmem [shape: f32[1,32], index: 3, kind: input, shape index: {}]   ;;  %s105_s4 = inlined_call_operand.vmem [shape: bf16[16,32], index: 4, kind: output, shape index: {}]  }
   0x1   :  { %v17_v0 = vld [vmem:[%s101_s0] sm:$0xff]  ;;  %v18_v5 = vld [vmem:[%s101_s0 + $0x8] sm:$0xff] }
   0x2   :  { %v48_v1 = vld [vmem:[%s102_s1] ss:$0 sm:$0xff]  ;;  %v49_v2 = vld [vmem:[%s102_s1 + $0x1] ss:$0 sm:$0xff] }
   0x3   :  { %v23_v3 = vsub.f32 %v17_v0, %v48_v1  ;;  %v50_v4 = vld [vmem:[%s103_s2] ss:$0 sm:$0xff]  ;;  %v24_v6 = vsub.f32 %v18_v5, %v48_v1 }
   0x4   :  { %v51_v8 = vld [vmem:[%s104_s3] ss:$0 sm:$0xff] }
   0x5   :  { %v26_v7 = vmul.f32 %v49_v2, %v23_v3  ;;  %v27_v9 = vmul.f32 %v49_v2, %v24_v6 }
   0x7   :  { %v31_v10 = vmul.f32 %v50_v4, %v26_v7  ;;  %v32_v11 = vmul.f32 %v50_v4, %v27_v9 }
   0x9   :  { %v37_v12 = vadd.f32 %v51_v8, %v31_v10  ;;  %v38_v13 = vadd.f32 %v51_v8, %v32_v11 }
   0xb   :  { %v39_v14 = vpack.c.bf16 %v37_v12, %v37_v12  ;;  %v40_v15 = vpack.c.bf16 %v38_v13, %v38_v13 }
   0xd   :  { %42 = vst.msk [vmem:[%s105_s4] sm:$0xf] %vm41_vm0, %v39_v14 }
   0xe   :  { %43 = vst.msk [vmem:[%s105_s4 + $0x4] sm:$0xf] %vm41_vm0, %v40_v15 }

// kernel: nformer_forward.26
= control target key start
LH: loop header
LB: loop body
LE: loop exit
PB: predicated region body
PF: predicated region fallthrough
CT: control target
= control target key end

     0   :  { %vm30_vm0 = vcmask 261120   ;;  %v318_v2 = vmov 0.0   ;;  %s426_s0 = inlined_call_operand.vmem [shape: bf16[16,128], index: 0, kind: input, shape index: {}]   ;;  %s427_s1 = inlined_call_operand.vmem [shape: bf16[128,32], index: 1, kind: input, shape index: {}]   ;;  %s428_s2 = inlined_call_operand.vmem [shape: f32[1,32], index: 2, kind: input, shape index: {}]   ;;  %s429_s3 = inlined_call_operand.vmem [shape: f32[16,32], index: 3, kind: input, shape index: {}]   ;;  %s430_s4 = inlined_call_operand.vmem [shape: f32[1,32], index: 4, kind: input, shape index: {}]   ;;  %s431_s5 = inlined_call_operand.vmem [shape: f32[1,32], index: 5, kind: input, shape index: {}]   ;;  %s432_s6 = inlined_call_operand.vmem [shape: f32[16,32], index: 6, kind: output, shape index: {0}]   ;;  %s433_s7 = inlined_call_operand.hbm [shape: bf16[16,32], index: 7, kind: output, shape index: {1}]  }
   0x1   :  { %v277_v0 = vld [vmem:[%s427_s1 + $0x38] sm:$0xff]  ;;  %v276_v1 = vld [vmem:[%s427_s1 + $0x30] sm:$0xff]  ;;  %31 = vst.msk [vmem:[#allocation2] sm:$0xff] %vm30_vm0, %v318_v2 }
   0x2   :  { %107 = vmatpush.bf16.msra.mxu0 %v277_v0  ;;  %32 = vst.msk [vmem:[#allocation2 + $0x8] sm:$0xff] %vm30_vm0, %v318_v2 }
   0x3   :  { %13 = vsyncpa [#allocation4], 0  ;;  %v275_v3 = vld [vmem:[%s427_s1 + $0x28] sm:$0xff]  ;;  %v274_v4 = vld [vmem:[%s427_s1 + $0x20] sm:$0xff]  ;;  %v319_v27 = vmov 32.0   ;;  %vm208_vm7 = vcmask 257024  }
   0x4   :  { %v273_v5 = vld [vmem:[%s427_s1 + $0x18] sm:$0xff]  ;;  %v272_v6 = vld [vmem:[%s427_s1 + $0x10] sm:$0xff]  ;;  %v271_v7 = vld [vmem:[%s427_s1 + $0x8] sm:$0xff]  ;;  %286 = vrcp.f32 %v319_v27  ;;  %s219_s29 = sshll.u32 %s433_s7, 4  ;;  %s321_s9 = smov 64   ;;  %s220_s29 = int_to_ptr.hbm [resolvable:$true] %s219_s29 }
   0x5   :  { %v270_v8 = vld [vmem:[%s427_s1] sm:$0xff]  ;;  %v138_v23 = vld [vmem:[%s429_s3 + $0x8] sm:$0xff]  ;;  %s322_s10 = smov 4  }
   0x6   :  { %108 = vmatpush.bf16.msra.mxu0 %v276_v1  ;;  %v269_v9 = vld [vmem:[%s426_s0] sm:$0xff] }
   0x7   :  { %v283_v14 = vld [vmem:[%s428_s2] ss:$0 sm:$0xff] }
   0x8   :  { %v33_v10 = vld [vmem:[#allocation2] sm:$0xff] }
   0x9   :  { %v34_v13 = vld [vmem:[#allocation2 + $0x8] sm:$0xff]  ;;  %v137_v18 = vld [vmem:[%s429_s3] sm:$0xff] }
   0xa   :  { %109 = vmatpush.bf16.msra.mxu0 %v275_v3  ;;  %v287_v28 = vpop.eup %286  ;;  %v284_v58 = vld [vmem:[%s430_s4] ss:$0 sm:$0xff]  ;;  %s320_s4 = smov [#allocation3]  }
   0xb   :  { %v148_v29 = vmul.f32 32.0, %v287_v28  ;;  %vm152_vm1 = vweird.f32 %v287_v28  ;;  %v285_v61 = vld [vmem:[%s431_s5] ss:$0 sm:$0xff]  ;;  %s217_s5 = sshll.u32 %s320_s4, 4  ;;  %s218_s5 = int_to_ptr.vmem [resolvable:$true] %s217_s5 }
   0xd   :  { %v149_v30 = vsub.f32 1.0, %v148_v29 }
   0xe   :  { %110 = vmatpush.bf16.msra.mxu0 %v274_v4 }
   0xf   :  { %v150_v31 = vmul.f32 %v287_v28, %v149_v30 }
  0x11   :  { %v151_v32 = vadd.f32 %v287_v28, %v150_v31 }
  0x12   :  { %111 = vmatpush.bf16.msra.mxu0 %v273_v5 }
  0x13   :  { %v153_v33 = vsel %vm152_vm1, %v287_v28, %v151_v32 }
  0x16   :  { %112 = vmatpush.bf16.msra.mxu0 %v272_v6 }
  0x1a   :  { %113 = vmatpush.bf16.msra.mxu0 %v271_v7 }
  0x1e   :  { %114 = vmatpush.bf16.msra.mxu0 %v270_v8 }
  0x21   :  { %115 = vmatmul.bf16.vlgmr.msra.gmra.mxu0 %v269_v9 }
  0x9e   :  { %v116_v11 = vpop.f32.mrf.mxu0 }
  0x9f   :  { %v121_v12 = vadd.f32 %v116_v11, %v33_v10 }
  0xa1   :  { %124 = vst.msk [vmem:[#allocation2] sm:$0xff] %vm30_vm0, %v121_v12 }
  0xa6   :  { %v118_v15 = vpop.f32.mrf.mxu0 }
  0xa7   :  { %v122_v16 = vadd.f32 %v118_v15, %v34_v13 }
  0xa8   :  { %v129_v17 = vld [vmem:[#allocation2] sm:$0xff] }
  0xa9   :  { %125 = vst.msk [vmem:[#allocation2 + $0x8] sm:$0xff] %vm30_vm0, %v122_v16  ;;  %v135_v19 = vadd.f32 %v283_v14, %v129_v17 }
  0xab   :  { %v139_v20 = vadd.f32 %v137_v18, %v135_v19 }
  0xad   :  { %v141_v21 = vsel %vm30_vm0, %v139_v20, 0.0 }
  0xae   :  { %142 = vadd.xlane.f32.xlu0 %v141_v21 }
  0xb0   :  { %v130_v22 = vld [vmem:[#allocation2 + $0x8] sm:$0xff] }
  0xb1   :  { %v136_v24 = vadd.f32 %v283_v14, %v130_v22 }
  0xb3   :  { %v140_v25 = vadd.f32 %v138_v23, %v136_v24 }
  0xb5   :  { %v144_v26 = vsel %vm30_vm0, %v140_v25, 0.0 }
  0xb6   :  { %145 = vadd.xlane.f32.xlu0 %v144_v26 }
 0x121   :  { %v143_v34 = vpop.xlane.xlu0 %142 }
 0x122   :  { %v154_v35 = vmul.f32 %v153_v33, %v143_v34 }
 0x124   :  { %v156_v36 = vsub.f32 %v139_v20, %v154_v35 }
 0x126   :  { %v158_v37 = vmul.f32 %v156_v36, %v156_v36 }
 0x128   :  { %v160_v38 = vsel %vm30_vm0, %v158_v37, 0.0 }
 0x129   :  { %161 = vadd.xlane.f32.xlu1 %v160_v38  ;;  %v146_v39 = vpop.xlane.xlu0 %145 }
 0x12a   :  { %v155_v40 = vmul.f32 %v153_v33, %v146_v39 }
 0x12c   :  { %v157_v41 = vsub.f32 %v140_v25, %v155_v40 }
 0x12e   :  { %v159_v42 = vmul.f32 %v157_v41, %v157_v41 }
 0x130   :  { %v163_v43 = vsel %vm30_vm0, %v159_v42, 0.0 }
 0x131   :  { %164 = vadd.xlane.f32.xlu1 %v163_v43 }
 0x19c   :  { %v162_v44 = vpop.xlane.xlu1 %161 }
 0x19d   :  { %v166_v45 = vmul.f32 %v162_v44, %v153_v33 }
 0x19f   :  { %v169_v46 = vadd.f32 1e-05, %v166_v45 }
 0x1a1   :  { %288 = vrsqrt.f32 %v169_v46  ;;  %vm177_vm3 = vweird.f32 %v169_v46 }
 0x1a4   :  { %v165_v47 = vpop.xlane.xlu1 %164 }
 0x1a5   :  { %v167_v48 = vmul.f32 %v165_v47, %v153_v33 }
 0x1a7   :  { %v289_v49 = vpop.eup %288  ;;  %v170_v50 = vadd.f32 1e-05, %v167_v48 }
 0x1a8   :  { %v172_v51 = vmul.f32 %v289_v49, %v169_v46  ;;  %vm178_vm2 = vweird.f32 %v289_v49 }
 0x1a9   :  { %290 = vrsqrt.f32 %v170_v50  ;;  %vm179_vm4 = vmor %vm177_vm3, %vm178_vm2  ;;  %vm187_vm6 = vweird.f32 %v170_v50 }
 0x1aa   :  { %v173_v52 = vmul.f32 %v289_v49, %v172_v51 }
 0x1ac   :  { %v174_v53 = vmul.f32 0.5, %v173_v52 }
 0x1ae   :  { %v175_v54 = vsub.f32 1.5, %v174_v53 }
 0x1af   :  { %v291_v55 = vpop.eup %290 }
 0x1b0   :  { %v176_v56 = vmul.f32 %v289_v49, %v175_v54  ;;  %v182_v57 = vmul.f32 %v291_v55, %v170_v50  ;;  %vm188_vm5 = vweird.f32 %v291_v55 }
 0x1b1   :  { %vm189_vm8 = vmor %vm187_vm6, %vm188_vm5 }
 0x1b2   :  { %v180_v59 = vsel %vm179_vm4, %v289_v49, %v176_v56  ;;  %v183_v60 = vmul.f32 %v291_v55, %v182_v57 }
 0x1b3   :  { %v191_v62 = vmul.f32 %v180_v59, %v156_v36 }
 0x1b4   :  { %v184_v63 = vmul.f32 0.5, %v183_v60 }
 0x1b5   :  { %v196_v0 = vmul.f32 %v284_v58, %v191_v62 }
 0x1b6   :  { %v185_v1 = vsub.f32 1.5, %v184_v63 }
 0x1b7   :  { %v202_v2 = vadd.f32 %v285_v61, %v196_v0 }
 0x1b8   :  { %v186_v3 = vmul.f32 %v291_v55, %v185_v1 }
 0x1b9   :  { %204 = vst.msk [vmem:[%s432_s6] sm:$0xff] %vm30_vm0, %v202_v2  ;;  %v206_v4 = vpack.c.bf16 %v202_v2, %v202_v2 }
 0x1ba   :  { %v190_v5 = vsel %vm189_vm8, %v291_v55, %v186_v3 }
 0x1bb   :  { %v192_v6 = vmul.f32 %v190_v5, %v157_v41  ;;  %209 = vst.msk [vmem:[#allocation3] sm:$0xf] %vm208_vm7, %v206_v4 }
 0x1bd   :  { %v197_v7 = vmul.f32 %v284_v58, %v192_v6 }
 0x1bf   :  { %v203_v8 = vadd.f32 %v285_v61, %v197_v7 }
 0x1c1   :  { %205 = vst.msk [vmem:[%s432_s6 + $0x8] sm:$0xff] %vm30_vm0, %v203_v8  ;;  %v207_v9 = vpack.c.bf16 %v203_v8, %v203_v8 }
 0x1c3   :  { %210 = vst.msk [vmem:[#allocation3 + $0x4] sm:$0xf] %vm208_vm7, %v207_v9 }
 0x1c4   :  { %225 = dma.vmem_to_hbm [thread:$0]  %s218_s5, 128, %s220_s29, [#allocation4], %s321_s9, %s321_s9, %s322_s10  }
 0x1c5   :  { %316 = dma.done.wait [#allocation4], 128  }
 0x1c6   :  { %317 = vsyncadd [#allocation4], 4294967168 }
 0x1c7   :  { %232 = vsyncpa [#allocation4], 1 }

// kernel: nformer_forward.29
= control target key start
LH: loop header
LB: loop body
LE: loop exit
PB: predicated region body
PF: predicated region fallthrough
CT: control target
= control target key end

     0   :  { %vm20_vm0 = vcmask 130048   ;;  %v149_v1 = vmov 0.0   ;;  %s194_s0 = inlined_call_operand.vmem [shape: bf16[16,32], index: 0, kind: input, shape index: {}]   ;;  %s195_s1 = inlined_call_operand.vmem [shape: bf16[32,16], index: 1, kind: input, shape index: {}]   ;;  %s196_s2 = inlined_call_operand.vmem [shape: f32[1,16], index: 2, kind: input, shape index: {}]   ;;  %s197_s3 = inlined_call_operand.hbm [shape: f32[16,16], index: 3, kind: output, shape index: {}]  }
   0x1   :  { %v117_v0 = vld [vmem:[%s195_s1 + $0x8] sm:$0xff]  ;;  %21 = vst.msk [vmem:[#allocation2] sm:$0xff] %vm20_vm0, %v149_v1 }
   0x2   :  { %8 = vsyncpa [#allocation4], 0  ;;  %58 = vmatpush.bf16.msra.mxu0 %v117_v0  ;;  %v116_v2 = vld [vmem:[%s195_s1] sm:$0xff]  ;;  %22 = vst.msk [vmem:[#allocation2 + $0x8] sm:$0xff] %vm20_vm0, %v149_v1  ;;  %vm48_vm1 = vcmask 261120   ;;  %s90_s22 = sshll.u32 %s197_s3, 4  ;;  %s91_s22 = int_to_ptr.hbm [resolvable:$true] %s90_s22 }
   0x3   :  { %v115_v3 = vld [vmem:[%s194_s0] sm:$0xff]  ;;  %s150_s0 = smov [#allocation3]   ;;  %s152_s23 = smov 8  }
   0x4   :  { %v122_v8 = vld [vmem:[%s196_s2] ss:$0 sm:$0xff]  ;;  %s88_s1 = sshll.u32 %s150_s0, 4  ;;  %s151_s2 = smov 128   ;;  %s89_s1 = int_to_ptr.vmem [resolvable:$true] %s88_s1 }
   0x6   :  { %59 = vmatpush.bf16.msra.mxu0 %v116_v2 }
   0x8   :  { %v23_v4 = vld [vmem:[#allocation2] sm:$0xff] }
   0x9   :  { %114 = vmatmul.msk.bf16.vlgmr.msra.gmra.mxu0 %vm48_vm1, %v115_v3  ;;  %v24_v7 = vld [vmem:[#allocation2 + $0x8] sm:$0xff] }
  0x86   :  { %v61_v5 = vpop.f32.mrf.mxu0 }
  0x87   :  { %v66_v6 = vadd.f32 %v61_v5, %v23_v4 }
  0x89   :  { %69 = vst.msk [vmem:[#allocation2] sm:$0xff] %vm20_vm0, %v66_v6 }
  0x8e   :  { %v63_v9 = vpop.f32.mrf.mxu0 }
  0x8f   :  { %v67_v10 = vadd.f32 %v63_v9, %v24_v7 }
  0x90   :  { %v74_v11 = vld [vmem:[#allocation2] sm:$0xff] }
  0x91   :  { %70 = vst.msk [vmem:[#allocation2 + $0x8] sm:$0xff] %vm20_vm0, %v67_v10  ;;  %v80_v12 = vadd.f32 %v122_v8, %v74_v11 }
  0x93   :  { %82 = vst.msk [vmem:[#allocation3] sm:$0xff] %vm20_vm0, %v80_v12 }
  0x98   :  { %v75_v13 = vld [vmem:[#allocation2 + $0x8] sm:$0xff] }
  0x99   :  { %v81_v14 = vadd.f32 %v122_v8, %v75_v13 }
  0x9b   :  { %83 = vst.msk [vmem:[#allocation3 + $0x8] sm:$0xff] %vm20_vm0, %v81_v14 }
  0x9c   :  { %96 = dma.vmem_to_hbm [thread:$0]  %s89_s1, 256, %s91_s22, [#allocation4], %s151_s2, %s151_s2, %s152_s23  }
  0x9d   :  { %147 = dma.done.wait [#allocation4], 256  }
  0x9e   :  { %148 = vsyncadd [#allocation4], 4294967040 }
  0x9f   :  { %101 = vsyncpa [#allocation4], 1 }

</bundles_post_ra>
